<compile_context>
chip_gen: v7x
topology: tpu7x:2x2x1
jax: 0.10.0
libtpu: 0.0.40
codegen_flags: <defaults>
</compile_context>

<pallas_src>
import jax
import jax.numpy as jnp
from jax.experimental import pallas as pl
from jax.experimental.pallas import tpu as pltpu


# ----------------------------------------------------------------------------
# Fused forward kernel
# ----------------------------------------------------------------------------

def artifact_cnn_kernel(p1_ref, w1e_ref, b1_ref, e2_ref, b2_ref,
                        wf1_ref, bf1_ref, wf2_ref, bf2_ref,
                        out_ref, pad_ref):
    tb = p1_ref.shape[0]

    # --- conv1 + ReLU: one lane-dense matmul -------------------------------
    # patches rows = (tb, h%2, h//2), lanes = (w, tap); W1E is block-diagonal,
    # its columns are permuted to (w%2, w//2, c_out)  -> y1 lanes (p, w2, c).
    patches = p1_ref[...].reshape(tb * 32, 288)
    y1 = jnp.dot(patches, w1e_ref[...], preferred_element_type=jnp.float32)
    y1 = jnp.maximum(y1 + b1_ref[...], 0.0).reshape(tb, 32, 512)

    # --- 2x2 / stride-2 max-pool: row halves = H parity, lane halves = W parity
    hp = jnp.maximum(y1[:, :16, :], y1[:, 16:, :])           # (tb, 16, 512)
    pooled = jnp.maximum(hp[:, :, :256], hp[:, :, 256:])     # (tb, 16, 256): lanes (w, c)

    # --- H-padded copy of the pooled map for the conv2 row taps ------------
    pad_ref[...] = jnp.zeros(pad_ref.shape, pad_ref.dtype)
    pad_ref[:, 1:17, :] = pooled                             # rows 0 and 17 stay zero

    # --- conv2 + ReLU: 3 row-tap matmuls against (256, 512) expansion mats --
    acc = jnp.zeros((tb * 16, 512), jnp.float32)
    for ki in range(3):
        rows = pad_ref[:, ki:ki + 16, :].reshape(tb * 16, 256)
        acc = acc + jnp.dot(rows, e2_ref[ki], preferred_element_type=jnp.float32)
    y2 = jnp.maximum(acc + b2_ref[...], 0.0).reshape(tb, 16, 512)  # lanes (w, c_out)

    # --- fc1 + ReLU (NCHW flatten folded into wf1; bf16 operands, f32 acc) --
    h1 = jnp.zeros((tb, 128), jnp.float32)
    for h in range(16):
        h1 = h1 + jnp.dot(y2[:, h, :].astype(jnp.bfloat16), wf1_ref[h],
                          preferred_element_type=jnp.float32)
    h1 = jnp.maximum(h1 + bf1_ref[...], 0.0)
    # Dropout(p=0.25) is identity at inference time.

    # --- fc2 + softmax (num_classes lanes intentionally left unpadded) ------
    logits = jnp.dot(h1, wf2_ref[...], preferred_element_type=jnp.float32) + bf2_ref[...]
    m = jnp.max(logits, axis=1, keepdims=True)
    e = jnp.exp(logits - m)
    out_ref[...] = e / jnp.sum(e, axis=1, keepdims=True)


# ----------------------------------------------------------------------------
# Wrapper: conv1 patch extraction (XLA glue) + the single pallas_call
# ----------------------------------------------------------------------------

def artifact_cnn_forward(x_nchw, kp):
    """x_nchw: (B, 1, 64, 64) float32 -> (B, num_classes) softmax probabilities."""
    B = x_nchw.shape[0]
    tb = 8 if B % 8 == 0 else B
    assert B % tb == 0
    nc = kp["wf2"].shape[1]

    # Stride-2 im2col for conv1 (tiny: 36 KiB/image).  Rows are permuted by H
    # parity and lanes ordered (w, tap) so the kernel's pool is two slice-maxes.
    x = x_nchw[:, 0, :, :]
    xpad = jnp.pad(x, ((0, 0), (1, 1), (1, 1)))                       # (B, 66, 66)
    taps = [xpad[:, ki:ki + 64:2, kj:kj + 64:2]
            for ki in range(3) for kj in range(3)]                    # 9 x (B, 32, 32)
    p = jnp.stack(taps, axis=-1)                                      # (B, 32, 32, 9)
    p = p.reshape(B, 16, 2, 32, 9).transpose(0, 2, 1, 3, 4)           # (B, q, h2, w, t)
    p1 = p.reshape(B, 32, 288)

    w2d = lambda shape: pl.BlockSpec(shape, lambda i: (0, 0))
    w3d = lambda shape: pl.BlockSpec(shape, lambda i: (0, 0, 0))

    return pl.pallas_call(
        artifact_cnn_kernel,
        out_shape=jax.ShapeDtypeStruct((B, nc), jnp.float32),
        grid=(B // tb,),
        in_specs=[
            pl.BlockSpec((tb, 32, 288), lambda i: (i, 0, 0)),  # conv1 patches
            w2d((288, 512)),       # w1e  (conv1 expansion weight)
            w2d((1, 512)),         # b1
            w3d((3, 256, 512)),    # e2   (conv2 row-tap expansion weights)
            w2d((1, 512)),         # b2
            w3d((16, 512, 128)),   # wf1  (bf16, flatten-permuted)
            w2d((1, 128)),         # bf1
            w2d((128, nc)),        # wf2
            w2d((1, nc)),          # bf2
        ],
        out_specs=pl.BlockSpec((tb, nc), lambda i: (i, 0)),
        scratch_shapes=[pltpu.VMEM((tb, 18, 256), jnp.float32)],
        compiler_params=pltpu.CompilerParams(dimension_semantics=("parallel",)),
    )(p1, kp["w1e"], kp["b1"], kp["e2"], kp["b2"],
      kp["wf1"], kp["bf1"], kp["wf2"], kp["bf2"])


# ----------------------------------------------------------------------------
# Parameter preparation (PyTorch layout -> kernel layout)
# ----------------------------------------------------------------------------

def init_torch_params(key, num_classes=2):
    ks = jax.random.split(key, 8)

    def uinit(k, shape, fan_in):
        b = 1.0 / jnp.sqrt(jnp.float32(fan_in))
        return jax.random.uniform(k, shape, jnp.float32, -b, b)

    return {
        "conv1_w": uinit(ks[0], (16, 1, 3, 3), 9),
        "conv1_b": uinit(ks[1], (16,), 9),
        "conv2_w": uinit(ks[2], (32, 16, 3, 3), 16 * 9),
        "conv2_b": uinit(ks[3], (32,), 16 * 9),
        "fc1_w": uinit(ks[4], (128, 32 * 16 * 16), 32 * 16 * 16),
        "fc1_b": uinit(ks[5], (128,), 32 * 16 * 16),
        "fc2_w": uinit(ks[6], (num_classes, 128), 128),
        "fc2_b": uinit(ks[7], (num_classes,), 128),
    }


def prepare_params(pt):
    nc = pt["fc2_w"].shape[0]

    # conv1 -> block-diagonal expansion weight; columns permuted to (w%2, w//2, c).
    w1_mat = pt["conv1_w"].reshape(16, 9).T                          # (tap, c_out)
    w1e = jnp.kron(jnp.eye(32, dtype=jnp.float32), w1_mat)           # (288, 512)
    w1e = w1e.reshape(288, 16, 2, 16).transpose(0, 2, 1, 3).reshape(288, 512)
    b1 = jnp.tile(pt["conv1_b"], 32).reshape(1, 512)

    # conv2 -> 3 row-tap expansion matrices; W taps and W zero-padding folded in.
    w2t = pt["conv2_w"].transpose(2, 3, 1, 0)                        # (ki, kj, c_in, c_out)
    w_in = jnp.arange(16)[:, None, None]
    w_out = jnp.arange(16)[None, :, None]
    kj = jnp.arange(3)[None, None, :]
    ind = (w_in == w_out + kj - 1).astype(jnp.float32)               # (16, 16, 3)
    e2 = jnp.einsum("awj,kjic->kaiwc", ind, w2t).reshape(3, 256, 512)
    b2 = jnp.tile(pt["conv2_b"], 16).reshape(1, 512)

    # fc1: fold PyTorch's NCHW flatten order into the weight and keep it as
    # (h, w*32 + c_out, 128) to match the kernel's (H, W*C) activation layout.
    wf1 = pt["fc1_w"].reshape(128, 32, 16, 16).transpose(2, 3, 1, 0)  # (h, w, c, o)
    wf1 = wf1.reshape(16, 512, 128).astype(jnp.bfloat16)
    bf1 = pt["fc1_b"].reshape(1, 128)

    wf2 = pt["fc2_w"].T                                               # (128, nc)
    bf2 = pt["fc2_b"].reshape(1, nc)

    return {"w1e": w1e, "b1": b1, "e2": e2, "b2": b2,
            "wf1": wf1, "bf1": bf1, "wf2": wf2, "bf2": bf2}


# ----------------------------------------------------------------------------
# Plain-JAX reference (PyTorch semantics) for a numerical sanity check
# ----------------------------------------------------------------------------

def reference_forward(x_nchw, pt):
    dn = ("NCHW", "OIHW", "NCHW")
    y = jax.lax.conv_general_dilated(x_nchw, pt["conv1_w"], (2, 2), ((1, 1), (1, 1)),
                                     dimension_numbers=dn)
    y = jax.nn.relu(y + pt["conv1_b"][None, :, None, None])
    y = jax.lax.reduce_window(y, -jnp.inf, jax.lax.max,
                              (1, 1, 2, 2), (1, 1, 2, 2), "VALID")
    y = jax.lax.conv_general_dilated(y, pt["conv2_w"], (1, 1), ((1, 1), (1, 1)),
                                     dimension_numbers=dn)
    y = jax.nn.relu(y + pt["conv2_b"][None, :, None, None])
    feat = y.reshape(y.shape[0], -1)
    h = jax.nn.relu(feat @ pt["fc1_w"].T + pt["fc1_b"])
    logits = h @ pt["fc2_w"].T + pt["fc2_b"]
    return jax.nn.softmax(logits, axis=1)


# ----------------------------------------------------------------------------

if __name__ == "__main__":
    key = jax.random.PRNGKey(0)
    k_x, k_p = jax.random.split(key)

    # fc1 requires 32*16*16 features, which implies 64x64 single-channel input.
    x = jax.random.normal(k_x, (2, 1, 64, 64), dtype=jnp.float32)
    pt_params = init_torch_params(k_p, num_classes=2)
    k_params = prepare_params(pt_params)

    out = jax.block_until_ready(jax.jit(artifact_cnn_forward)(x, k_params))

    assert out.shape == (2, 2), out.shape
    assert bool(jnp.all(jnp.abs(jnp.sum(out, axis=1) - 1.0) < 1e-5))

    # Sanity check vs. plain-JAX reference (tolerance covers bf16 fc1 operands).
    ref = jax.block_until_ready(jax.jit(reference_forward)(x, pt_params))
    assert bool(jnp.allclose(out, ref, atol=2e-2)), (out, ref)

    print("KERNEL_OK")
</pallas_src>

<mosaic_0001>
module attributes {stable_mosaic.version = 11 : i64} {
  func.func @artifact_cnn_kernel(%arg0: i32, %arg1: memref<2x32x288xf32, #tpu.memory_space<vmem>>, %arg2: memref<288x512xf32, #tpu.memory_space<vmem>>, %arg3: memref<1x512xf32, #tpu.memory_space<vmem>>, %arg4: memref<3x256x512xf32, #tpu.memory_space<vmem>>, %arg5: memref<1x512xf32, #tpu.memory_space<vmem>>, %arg6: memref<16x512x128xbf16, #tpu.memory_space<vmem>>, %arg7: memref<1x128xf32, #tpu.memory_space<vmem>>, %arg8: memref<128x2xf32, #tpu.memory_space<vmem>>, %arg9: memref<1x2xf32, #tpu.memory_space<vmem>>, %arg10: memref<2x2xf32, #tpu.memory_space<vmem>>, %arg11: memref<2x18x256xf32, #tpu.memory_space<vmem>>) attributes {dimension_semantics = [#tpu.dimension_semantics<parallel>], iteration_bounds = array<i64: 1>, scalar_prefetch = 0 : i64, scratch_operands = 1 : i64, tpu.core_type = #tpu.core_type<tc>, window_params = [{transform_indices = @transform_0, window_bounds = array<i64: 2, 32, 288>}, {pipeline_mode = #tpu.pipeline_mode<synchronous>, transform_indices = @transform_1, window_bounds = array<i64: 288, 512>}, {pipeline_mode = #tpu.pipeline_mode<synchronous>, transform_indices = @transform_2, window_bounds = array<i64: 1, 512>}, {pipeline_mode = #tpu.pipeline_mode<synchronous>, transform_indices = @transform_3, window_bounds = array<i64: 3, 256, 512>}, {pipeline_mode = #tpu.pipeline_mode<synchronous>, transform_indices = @transform_4, window_bounds = array<i64: 1, 512>}, {pipeline_mode = #tpu.pipeline_mode<synchronous>, transform_indices = @transform_5, window_bounds = array<i64: 16, 512, 128>}, {pipeline_mode = #tpu.pipeline_mode<synchronous>, transform_indices = @transform_6, window_bounds = array<i64: 1, 128>}, {pipeline_mode = #tpu.pipeline_mode<synchronous>, transform_indices = @transform_7, window_bounds = array<i64: 128, 2>}, {pipeline_mode = #tpu.pipeline_mode<synchronous>, transform_indices = @transform_8, window_bounds = array<i64: 1, 2>}, {transform_indices = @transform_9, window_bounds = array<i64: 2, 2>}]} {
    %c0 = arith.constant 0 : index
    %c0_0 = arith.constant 0 : index
    %c0_1 = arith.constant 0 : index
    %0 = vector.load %arg1[%c0, %c0_0, %c0_1] : memref<2x32x288xf32, #tpu.memory_space<vmem>>, vector<2x32x288xf32>
    %1 = vector.shape_cast %0 : vector<2x32x288xf32> to vector<64x288xf32>
    %c0_2 = arith.constant 0 : index
    %c0_3 = arith.constant 0 : index
    %2 = vector.load %arg2[%c0_2, %c0_3] : memref<288x512xf32, #tpu.memory_space<vmem>>, vector<288x512xf32>
    %cst = arith.constant dense<0.000000e+00> : vector<64x512xf32>
    %3 = tpu.matmul %1, %2, %cst {dimension_numbers = #tpu.dot_dimension_numbers<[1], [0], [0], [1], [0, 0, 1, 1], [], []>} : vector<64x288xf32>, vector<288x512xf32>, vector<64x512xf32> -> vector<64x512xf32>
    %c0_4 = arith.constant 0 : index
    %c0_5 = arith.constant 0 : index
    %4 = vector.load %arg3[%c0_4, %c0_5] : memref<1x512xf32, #tpu.memory_space<vmem>>, vector<1x512xf32>
    %5 = vector.broadcast %4 : vector<1x512xf32> to vector<64x512xf32>
    %6 = arith.addf %3, %5 : vector<64x512xf32>
    %cst_6 = arith.constant 0.000000e+00 : f32
    %7 = vector.broadcast %cst_6 : f32 to vector<64x512xf32>
    %8 = arith.maximumf %6, %7 : vector<64x512xf32>
    %9 = vector.shape_cast %8 : vector<64x512xf32> to vector<2x32x512xf32>
    %10 = vector.extract_strided_slice %9 {offsets = [0, 0, 0], sizes = [2, 16, 512], strides = [1, 1, 1]} : vector<2x32x512xf32> to vector<2x16x512xf32>
    %11 = vector.extract_strided_slice %9 {offsets = [0, 16, 0], sizes = [2, 16, 512], strides = [1, 1, 1]} : vector<2x32x512xf32> to vector<2x16x512xf32>
    %12 = arith.maximumf %10, %11 : vector<2x16x512xf32>
    %13 = vector.extract_strided_slice %12 {offsets = [0, 0, 0], sizes = [2, 16, 256], strides = [1, 1, 1]} : vector<2x16x512xf32> to vector<2x16x256xf32>
    %14 = vector.extract_strided_slice %12 {offsets = [0, 0, 256], sizes = [2, 16, 256], strides = [1, 1, 1]} : vector<2x16x512xf32> to vector<2x16x256xf32>
    %15 = arith.maximumf %13, %14 : vector<2x16x256xf32>
    %cst_7 = arith.constant 0.000000e+00 : f32
    %16 = vector.broadcast %cst_7 : f32 to vector<2x18x256xf32>
    %c0_8 = arith.constant 0 : index
    %c0_9 = arith.constant 0 : index
    %c0_10 = arith.constant 0 : index
    %17 = vector.load %arg11[%c0_8, %c0_9, %c0_10] : memref<2x18x256xf32, #tpu.memory_space<vmem>>, vector<2x18x256xf32>
    tpu.vector_store %arg11[%c0_8, %c0_9, %c0_10], %16 {strides = array<i32>} : memref<2x18x256xf32, #tpu.memory_space<vmem>>, vector<2x18x256xf32>,
    %c0_11 = arith.constant 0 : index
    %c1 = arith.constant 1 : index
    %c0_12 = arith.constant 0 : index
    %18 = vector.load %arg11[%c0_11, %c1, %c0_12] : memref<2x18x256xf32, #tpu.memory_space<vmem>>, vector<2x16x256xf32>
    tpu.vector_store %arg11[%c0_11, %c1, %c0_12], %15 {strides = array<i32>} : memref<2x18x256xf32, #tpu.memory_space<vmem>>, vector<2x16x256xf32>,
    %cst_13 = arith.constant 0.000000e+00 : f32
    %19 = vector.broadcast %cst_13 : f32 to vector<32x512xf32>
    %c0_14 = arith.constant 0 : index
    %c0_15 = arith.constant 0 : index
    %c0_16 = arith.constant 0 : index
    %20 = vector.load %arg11[%c0_14, %c0_15, %c0_16] : memref<2x18x256xf32, #tpu.memory_space<vmem>>, vector<2x16x256xf32>
    %21 = vector.shape_cast %20 : vector<2x16x256xf32> to vector<32x256xf32>
    %c0_17 = arith.constant 0 : index
    %c0_18 = arith.constant 0 : index
    %c0_19 = arith.constant 0 : index
    %22 = vector.load %arg4[%c0_17, %c0_18, %c0_19] : memref<3x256x512xf32, #tpu.memory_space<vmem>>, vector<1x256x512xf32>
    %23 = vector.shape_cast %22 : vector<1x256x512xf32> to vector<256x512xf32>
    %cst_20 = arith.constant dense<0.000000e+00> : vector<32x512xf32>
    %24 = tpu.matmul %21, %23, %cst_20 {dimension_numbers = #tpu.dot_dimension_numbers<[1], [0], [0], [1], [0, 0, 1, 1], [], []>} : vector<32x256xf32>, vector<256x512xf32>, vector<32x512xf32> -> vector<32x512xf32>
    %25 = arith.addf %19, %24 : vector<32x512xf32>
    %c0_21 = arith.constant 0 : index
    %c1_22 = arith.constant 1 : index
    %c0_23 = arith.constant 0 : index
    %26 = vector.load %arg11[%c0_21, %c1_22, %c0_23] : memref<2x18x256xf32, #tpu.memory_space<vmem>>, vector<2x16x256xf32>
    %27 = vector.shape_cast %26 : vector<2x16x256xf32> to vector<32x256xf32>
    %c1_24 = arith.constant 1 : index
    %c0_25 = arith.constant 0 : index
    %c0_26 = arith.constant 0 : index
    %28 = vector.load %arg4[%c1_24, %c0_25, %c0_26] : memref<3x256x512xf32, #tpu.memory_space<vmem>>, vector<1x256x512xf32>
    %29 = vector.shape_cast %28 : vector<1x256x512xf32> to vector<256x512xf32>
    %cst_27 = arith.constant dense<0.000000e+00> : vector<32x512xf32>
    %30 = tpu.matmul %27, %29, %cst_27 {dimension_numbers = #tpu.dot_dimension_numbers<[1], [0], [0], [1], [0, 0, 1, 1], [], []>} : vector<32x256xf32>, vector<256x512xf32>, vector<32x512xf32> -> vector<32x512xf32>
    %31 = arith.addf %25, %30 : vector<32x512xf32>
    %c0_28 = arith.constant 0 : index
    %c2 = arith.constant 2 : index
    %c0_29 = arith.constant 0 : index
    %32 = vector.load %arg11[%c0_28, %c2, %c0_29] : memref<2x18x256xf32, #tpu.memory_space<vmem>>, vector<2x16x256xf32>
    %33 = vector.shape_cast %32 : vector<2x16x256xf32> to vector<32x256xf32>
    %c2_30 = arith.constant 2 : index
    %c0_31 = arith.constant 0 : index
    %c0_32 = arith.constant 0 : index
    %34 = vector.load %arg4[%c2_30, %c0_31, %c0_32] : memref<3x256x512xf32, #tpu.memory_space<vmem>>, vector<1x256x512xf32>
    %35 = vector.shape_cast %34 : vector<1x256x512xf32> to vector<256x512xf32>
    %cst_33 = arith.constant dense<0.000000e+00> : vector<32x512xf32>
    %36 = tpu.matmul %33, %35, %cst_33 {dimension_numbers = #tpu.dot_dimension_numbers<[1], [0], [0], [1], [0, 0, 1, 1], [], []>} : vector<32x256xf32>, vector<256x512xf32>, vector<32x512xf32> -> vector<32x512xf32>
    %37 = arith.addf %31, %36 : vector<32x512xf32>
    %c0_34 = arith.constant 0 : index
    %c0_35 = arith.constant 0 : index
    %38 = vector.load %arg5[%c0_34, %c0_35] : memref<1x512xf32, #tpu.memory_space<vmem>>, vector<1x512xf32>
    %39 = vector.broadcast %38 : vector<1x512xf32> to vector<32x512xf32>
    %40 = arith.addf %37, %39 : vector<32x512xf32>
    %cst_36 = arith.constant 0.000000e+00 : f32
    %41 = vector.broadcast %cst_36 : f32 to vector<32x512xf32>
    %42 = arith.maximumf %40, %41 : vector<32x512xf32>
    %43 = vector.shape_cast %42 : vector<32x512xf32> to vector<2x16x512xf32>
    %cst_37 = arith.constant 0.000000e+00 : f32
    %44 = vector.broadcast %cst_37 : f32 to vector<2x128xf32>
    %45 = vector.extract_strided_slice %43 {offsets = [0, 0, 0], sizes = [2, 1, 512], strides = [1, 1, 1]} : vector<2x16x512xf32> to vector<2x1x512xf32>
    %46 = vector.shape_cast %45 : vector<2x1x512xf32> to vector<2x512xf32>
    %47 = arith.truncf %46 : vector<2x512xf32> to vector<2x512xbf16>
    %c0_38 = arith.constant 0 : index
    %c0_39 = arith.constant 0 : index
    %c0_40 = arith.constant 0 : index
    %48 = vector.load %arg6[%c0_38, %c0_39, %c0_40] : memref<16x512x128xbf16, #tpu.memory_space<vmem>>, vector<1x512x128xbf16>
    %49 = vector.shape_cast %48 : vector<1x512x128xbf16> to vector<512x128xbf16>
    %cst_41 = arith.constant dense<0.000000e+00> : vector<2x128xf32>
    %50 = tpu.matmul %47, %49, %cst_41 {dimension_numbers = #tpu.dot_dimension_numbers<[1], [0], [0], [1], [0, 0, 1, 1], [], []>} : vector<2x512xbf16>, vector<512x128xbf16>, vector<2x128xf32> -> vector<2x128xf32>
    %51 = arith.addf %44, %50 : vector<2x128xf32>
    %52 = vector.extract_strided_slice %43 {offsets = [0, 1, 0], sizes = [2, 1, 512], strides = [1, 1, 1]} : vector<2x16x512xf32> to vector<2x1x512xf32>
    %53 = vector.shape_cast %52 : vector<2x1x512xf32> to vector<2x512xf32>
    %54 = arith.truncf %53 : vector<2x512xf32> to vector<2x512xbf16>
    %c1_42 = arith.constant 1 : index
    %c0_43 = arith.constant 0 : index
    %c0_44 = arith.constant 0 : index
    %55 = vector.load %arg6[%c1_42, %c0_43, %c0_44] : memref<16x512x128xbf16, #tpu.memory_space<vmem>>, vector<1x512x128xbf16>
    %56 = vector.shape_cast %55 : vector<1x512x128xbf16> to vector<512x128xbf16>
    %cst_45 = arith.constant dense<0.000000e+00> : vector<2x128xf32>
    %57 = tpu.matmul %54, %56, %cst_45 {dimension_numbers = #tpu.dot_dimension_numbers<[1], [0], [0], [1], [0, 0, 1, 1], [], []>} : vector<2x512xbf16>, vector<512x128xbf16>, vector<2x128xf32> -> vector<2x128xf32>
    %58 = arith.addf %51, %57 : vector<2x128xf32>
    %59 = vector.extract_strided_slice %43 {offsets = [0, 2, 0], sizes = [2, 1, 512], strides = [1, 1, 1]} : vector<2x16x512xf32> to vector<2x1x512xf32>
    %60 = vector.shape_cast %59 : vector<2x1x512xf32> to vector<2x512xf32>
    %61 = arith.truncf %60 : vector<2x512xf32> to vector<2x512xbf16>
    %c2_46 = arith.constant 2 : index
    %c0_47 = arith.constant 0 : index
    %c0_48 = arith.constant 0 : index
    %62 = vector.load %arg6[%c2_46, %c0_47, %c0_48] : memref<16x512x128xbf16, #tpu.memory_space<vmem>>, vector<1x512x128xbf16>
    %63 = vector.shape_cast %62 : vector<1x512x128xbf16> to vector<512x128xbf16>
    %cst_49 = arith.constant dense<0.000000e+00> : vector<2x128xf32>
    %64 = tpu.matmul %61, %63, %cst_49 {dimension_numbers = #tpu.dot_dimension_numbers<[1], [0], [0], [1], [0, 0, 1, 1], [], []>} : vector<2x512xbf16>, vector<512x128xbf16>, vector<2x128xf32> -> vector<2x128xf32>
    %65 = arith.addf %58, %64 : vector<2x128xf32>
    %66 = vector.extract_strided_slice %43 {offsets = [0, 3, 0], sizes = [2, 1, 512], strides = [1, 1, 1]} : vector<2x16x512xf32> to vector<2x1x512xf32>
    %67 = vector.shape_cast %66 : vector<2x1x512xf32> to vector<2x512xf32>
    %68 = arith.truncf %67 : vector<2x512xf32> to vector<2x512xbf16>
    %c3 = arith.constant 3 : index
    %c0_50 = arith.constant 0 : index
    %c0_51 = arith.constant 0 : index
    %69 = vector.load %arg6[%c3, %c0_50, %c0_51] : memref<16x512x128xbf16, #tpu.memory_space<vmem>>, vector<1x512x128xbf16>
    %70 = vector.shape_cast %69 : vector<1x512x128xbf16> to vector<512x128xbf16>
    %cst_52 = arith.constant dense<0.000000e+00> : vector<2x128xf32>
    %71 = tpu.matmul %68, %70, %cst_52 {dimension_numbers = #tpu.dot_dimension_numbers<[1], [0], [0], [1], [0, 0, 1, 1], [], []>} : vector<2x512xbf16>, vector<512x128xbf16>, vector<2x128xf32> -> vector<2x128xf32>
    %72 = arith.addf %65, %71 : vector<2x128xf32>
    %73 = vector.extract_strided_slice %43 {offsets = [0, 4, 0], sizes = [2, 1, 512], strides = [1, 1, 1]} : vector<2x16x512xf32> to vector<2x1x512xf32>
    %74 = vector.shape_cast %73 : vector<2x1x512xf32> to vector<2x512xf32>
    %75 = arith.truncf %74 : vector<2x512xf32> to vector<2x512xbf16>
    %c4 = arith.constant 4 : index
    %c0_53 = arith.constant 0 : index
    %c0_54 = arith.constant 0 : index
    %76 = vector.load %arg6[%c4, %c0_53, %c0_54] : memref<16x512x128xbf16, #tpu.memory_space<vmem>>, vector<1x512x128xbf16>
    %77 = vector.shape_cast %76 : vector<1x512x128xbf16> to vector<512x128xbf16>
    %cst_55 = arith.constant dense<0.000000e+00> : vector<2x128xf32>
    %78 = tpu.matmul %75, %77, %cst_55 {dimension_numbers = #tpu.dot_dimension_numbers<[1], [0], [0], [1], [0, 0, 1, 1], [], []>} : vector<2x512xbf16>, vector<512x128xbf16>, vector<2x128xf32> -> vector<2x128xf32>
    %79 = arith.addf %72, %78 : vector<2x128xf32>
    %80 = vector.extract_strided_slice %43 {offsets = [0, 5, 0], sizes = [2, 1, 512], strides = [1, 1, 1]} : vector<2x16x512xf32> to vector<2x1x512xf32>
    %81 = vector.shape_cast %80 : vector<2x1x512xf32> to vector<2x512xf32>
    %82 = arith.truncf %81 : vector<2x512xf32> to vector<2x512xbf16>
    %c5 = arith.constant 5 : index
    %c0_56 = arith.constant 0 : index
    %c0_57 = arith.constant 0 : index
    %83 = vector.load %arg6[%c5, %c0_56, %c0_57] : memref<16x512x128xbf16, #tpu.memory_space<vmem>>, vector<1x512x128xbf16>
    %84 = vector.shape_cast %83 : vector<1x512x128xbf16> to vector<512x128xbf16>
    %cst_58 = arith.constant dense<0.000000e+00> : vector<2x128xf32>
    %85 = tpu.matmul %82, %84, %cst_58 {dimension_numbers = #tpu.dot_dimension_numbers<[1], [0], [0], [1], [0, 0, 1, 1], [], []>} : vector<2x512xbf16>, vector<512x128xbf16>, vector<2x128xf32> -> vector<2x128xf32>
    %86 = arith.addf %79, %85 : vector<2x128xf32>
    %87 = vector.extract_strided_slice %43 {offsets = [0, 6, 0], sizes = [2, 1, 512], strides = [1, 1, 1]} : vector<2x16x512xf32> to vector<2x1x512xf32>
    %88 = vector.shape_cast %87 : vector<2x1x512xf32> to vector<2x512xf32>
    %89 = arith.truncf %88 : vector<2x512xf32> to vector<2x512xbf16>
    %c6 = arith.constant 6 : index
    %c0_59 = arith.constant 0 : index
    %c0_60 = arith.constant 0 : index
    %90 = vector.load %arg6[%c6, %c0_59, %c0_60] : memref<16x512x128xbf16, #tpu.memory_space<vmem>>, vector<1x512x128xbf16>
    %91 = vector.shape_cast %90 : vector<1x512x128xbf16> to vector<512x128xbf16>
    %cst_61 = arith.constant dense<0.000000e+00> : vector<2x128xf32>
    %92 = tpu.matmul %89, %91, %cst_61 {dimension_numbers = #tpu.dot_dimension_numbers<[1], [0], [0], [1], [0, 0, 1, 1], [], []>} : vector<2x512xbf16>, vector<512x128xbf16>, vector<2x128xf32> -> vector<2x128xf32>
    %93 = arith.addf %86, %92 : vector<2x128xf32>
    %94 = vector.extract_strided_slice %43 {offsets = [0, 7, 0], sizes = [2, 1, 512], strides = [1, 1, 1]} : vector<2x16x512xf32> to vector<2x1x512xf32>
    %95 = vector.shape_cast %94 : vector<2x1x512xf32> to vector<2x512xf32>
    %96 = arith.truncf %95 : vector<2x512xf32> to vector<2x512xbf16>
    %c7 = arith.constant 7 : index
    %c0_62 = arith.constant 0 : index
    %c0_63 = arith.constant 0 : index
    %97 = vector.load %arg6[%c7, %c0_62, %c0_63] : memref<16x512x128xbf16, #tpu.memory_space<vmem>>, vector<1x512x128xbf16>
    %98 = vector.shape_cast %97 : vector<1x512x128xbf16> to vector<512x128xbf16>
    %cst_64 = arith.constant dense<0.000000e+00> : vector<2x128xf32>
    %99 = tpu.matmul %96, %98, %cst_64 {dimension_numbers = #tpu.dot_dimension_numbers<[1], [0], [0], [1], [0, 0, 1, 1], [], []>} : vector<2x512xbf16>, vector<512x128xbf16>, vector<2x128xf32> -> vector<2x128xf32>
    %100 = arith.addf %93, %99 : vector<2x128xf32>
    %101 = vector.extract_strided_slice %43 {offsets = [0, 8, 0], sizes = [2, 1, 512], strides = [1, 1, 1]} : vector<2x16x512xf32> to vector<2x1x512xf32>
    %102 = vector.shape_cast %101 : vector<2x1x512xf32> to vector<2x512xf32>
    %103 = arith.truncf %102 : vector<2x512xf32> to vector<2x512xbf16>
    %c8 = arith.constant 8 : index
    %c0_65 = arith.constant 0 : index
    %c0_66 = arith.constant 0 : index
    %104 = vector.load %arg6[%c8, %c0_65, %c0_66] : memref<16x512x128xbf16, #tpu.memory_space<vmem>>, vector<1x512x128xbf16>
    %105 = vector.shape_cast %104 : vector<1x512x128xbf16> to vector<512x128xbf16>
    %cst_67 = arith.constant dense<0.000000e+00> : vector<2x128xf32>
    %106 = tpu.matmul %103, %105, %cst_67 {dimension_numbers = #tpu.dot_dimension_numbers<[1], [0], [0], [1], [0, 0, 1, 1], [], []>} : vector<2x512xbf16>, vector<512x128xbf16>, vector<2x128xf32> -> vector<2x128xf32>
    %107 = arith.addf %100, %106 : vector<2x128xf32>
    %108 = vector.extract_strided_slice %43 {offsets = [0, 9, 0], sizes = [2, 1, 512], strides = [1, 1, 1]} : vector<2x16x512xf32> to vector<2x1x512xf32>
    %109 = vector.shape_cast %108 : vector<2x1x512xf32> to vector<2x512xf32>
    %110 = arith.truncf %109 : vector<2x512xf32> to vector<2x512xbf16>
    %c9 = arith.constant 9 : index
    %c0_68 = arith.constant 0 : index
    %c0_69 = arith.constant 0 : index
    %111 = vector.load %arg6[%c9, %c0_68, %c0_69] : memref<16x512x128xbf16, #tpu.memory_space<vmem>>, vector<1x512x128xbf16>
    %112 = vector.shape_cast %111 : vector<1x512x128xbf16> to vector<512x128xbf16>
    %cst_70 = arith.constant dense<0.000000e+00> : vector<2x128xf32>
    %113 = tpu.matmul %110, %112, %cst_70 {dimension_numbers = #tpu.dot_dimension_numbers<[1], [0], [0], [1], [0, 0, 1, 1], [], []>} : vector<2x512xbf16>, vector<512x128xbf16>, vector<2x128xf32> -> vector<2x128xf32>
    %114 = arith.addf %107, %113 : vector<2x128xf32>
    %115 = vector.extract_strided_slice %43 {offsets = [0, 10, 0], sizes = [2, 1, 512], strides = [1, 1, 1]} : vector<2x16x512xf32> to vector<2x1x512xf32>
    %116 = vector.shape_cast %115 : vector<2x1x512xf32> to vector<2x512xf32>
    %117 = arith.truncf %116 : vector<2x512xf32> to vector<2x512xbf16>
    %c10 = arith.constant 10 : index
    %c0_71 = arith.constant 0 : index
    %c0_72 = arith.constant 0 : index
    %118 = vector.load %arg6[%c10, %c0_71, %c0_72] : memref<16x512x128xbf16, #tpu.memory_space<vmem>>, vector<1x512x128xbf16>
    %119 = vector.shape_cast %118 : vector<1x512x128xbf16> to vector<512x128xbf16>
    %cst_73 = arith.constant dense<0.000000e+00> : vector<2x128xf32>
    %120 = tpu.matmul %117, %119, %cst_73 {dimension_numbers = #tpu.dot_dimension_numbers<[1], [0], [0], [1], [0, 0, 1, 1], [], []>} : vector<2x512xbf16>, vector<512x128xbf16>, vector<2x128xf32> -> vector<2x128xf32>
    %121 = arith.addf %114, %120 : vector<2x128xf32>
    %122 = vector.extract_strided_slice %43 {offsets = [0, 11, 0], sizes = [2, 1, 512], strides = [1, 1, 1]} : vector<2x16x512xf32> to vector<2x1x512xf32>
    %123 = vector.shape_cast %122 : vector<2x1x512xf32> to vector<2x512xf32>
    %124 = arith.truncf %123 : vector<2x512xf32> to vector<2x512xbf16>
    %c11 = arith.constant 11 : index
    %c0_74 = arith.constant 0 : index
    %c0_75 = arith.constant 0 : index
    %125 = vector.load %arg6[%c11, %c0_74, %c0_75] : memref<16x512x128xbf16, #tpu.memory_space<vmem>>, vector<1x512x128xbf16>
    %126 = vector.shape_cast %125 : vector<1x512x128xbf16> to vector<512x128xbf16>
    %cst_76 = arith.constant dense<0.000000e+00> : vector<2x128xf32>
    %127 = tpu.matmul %124, %126, %cst_76 {dimension_numbers = #tpu.dot_dimension_numbers<[1], [0], [0], [1], [0, 0, 1, 1], [], []>} : vector<2x512xbf16>, vector<512x128xbf16>, vector<2x128xf32> -> vector<2x128xf32>
    %128 = arith.addf %121, %127 : vector<2x128xf32>
    %129 = vector.extract_strided_slice %43 {offsets = [0, 12, 0], sizes = [2, 1, 512], strides = [1, 1, 1]} : vector<2x16x512xf32> to vector<2x1x512xf32>
    %130 = vector.shape_cast %129 : vector<2x1x512xf32> to vector<2x512xf32>
    %131 = arith.truncf %130 : vector<2x512xf32> to vector<2x512xbf16>
    %c12 = arith.constant 12 : index
    %c0_77 = arith.constant 0 : index
    %c0_78 = arith.constant 0 : index
    %132 = vector.load %arg6[%c12, %c0_77, %c0_78] : memref<16x512x128xbf16, #tpu.memory_space<vmem>>, vector<1x512x128xbf16>
    %133 = vector.shape_cast %132 : vector<1x512x128xbf16> to vector<512x128xbf16>
    %cst_79 = arith.constant dense<0.000000e+00> : vector<2x128xf32>
    %134 = tpu.matmul %131, %133, %cst_79 {dimension_numbers = #tpu.dot_dimension_numbers<[1], [0], [0], [1], [0, 0, 1, 1], [], []>} : vector<2x512xbf16>, vector<512x128xbf16>, vector<2x128xf32> -> vector<2x128xf32>
    %135 = arith.addf %128, %134 : vector<2x128xf32>
    %136 = vector.extract_strided_slice %43 {offsets = [0, 13, 0], sizes = [2, 1, 512], strides = [1, 1, 1]} : vector<2x16x512xf32> to vector<2x1x512xf32>
    %137 = vector.shape_cast %136 : vector<2x1x512xf32> to vector<2x512xf32>
    %138 = arith.truncf %137 : vector<2x512xf32> to vector<2x512xbf16>
    %c13 = arith.constant 13 : index
    %c0_80 = arith.constant 0 : index
    %c0_81 = arith.constant 0 : index
    %139 = vector.load %arg6[%c13, %c0_80, %c0_81] : memref<16x512x128xbf16, #tpu.memory_space<vmem>>, vector<1x512x128xbf16>
    %140 = vector.shape_cast %139 : vector<1x512x128xbf16> to vector<512x128xbf16>
    %cst_82 = arith.constant dense<0.000000e+00> : vector<2x128xf32>
    %141 = tpu.matmul %138, %140, %cst_82 {dimension_numbers = #tpu.dot_dimension_numbers<[1], [0], [0], [1], [0, 0, 1, 1], [], []>} : vector<2x512xbf16>, vector<512x128xbf16>, vector<2x128xf32> -> vector<2x128xf32>
    %142 = arith.addf %135, %141 : vector<2x128xf32>
    %143 = vector.extract_strided_slice %43 {offsets = [0, 14, 0], sizes = [2, 1, 512], strides = [1, 1, 1]} : vector<2x16x512xf32> to vector<2x1x512xf32>
    %144 = vector.shape_cast %143 : vector<2x1x512xf32> to vector<2x512xf32>
    %145 = arith.truncf %144 : vector<2x512xf32> to vector<2x512xbf16>
    %c14 = arith.constant 14 : index
    %c0_83 = arith.constant 0 : index
    %c0_84 = arith.constant 0 : index
    %146 = vector.load %arg6[%c14, %c0_83, %c0_84] : memref<16x512x128xbf16, #tpu.memory_space<vmem>>, vector<1x512x128xbf16>
    %147 = vector.shape_cast %146 : vector<1x512x128xbf16> to vector<512x128xbf16>
    %cst_85 = arith.constant dense<0.000000e+00> : vector<2x128xf32>
    %148 = tpu.matmul %145, %147, %cst_85 {dimension_numbers = #tpu.dot_dimension_numbers<[1], [0], [0], [1], [0, 0, 1, 1], [], []>} : vector<2x512xbf16>, vector<512x128xbf16>, vector<2x128xf32> -> vector<2x128xf32>
    %149 = arith.addf %142, %148 : vector<2x128xf32>
    %150 = vector.extract_strided_slice %43 {offsets = [0, 15, 0], sizes = [2, 1, 512], strides = [1, 1, 1]} : vector<2x16x512xf32> to vector<2x1x512xf32>
    %151 = vector.shape_cast %150 : vector<2x1x512xf32> to vector<2x512xf32>
    %152 = arith.truncf %151 : vector<2x512xf32> to vector<2x512xbf16>
    %c15 = arith.constant 15 : index
    %c0_86 = arith.constant 0 : index
    %c0_87 = arith.constant 0 : index
    %153 = vector.load %arg6[%c15, %c0_86, %c0_87] : memref<16x512x128xbf16, #tpu.memory_space<vmem>>, vector<1x512x128xbf16>
    %154 = vector.shape_cast %153 : vector<1x512x128xbf16> to vector<512x128xbf16>
    %cst_88 = arith.constant dense<0.000000e+00> : vector<2x128xf32>
    %155 = tpu.matmul %152, %154, %cst_88 {dimension_numbers = #tpu.dot_dimension_numbers<[1], [0], [0], [1], [0, 0, 1, 1], [], []>} : vector<2x512xbf16>, vector<512x128xbf16>, vector<2x128xf32> -> vector<2x128xf32>
    %156 = arith.addf %149, %155 : vector<2x128xf32>
    %c0_89 = arith.constant 0 : index
    %c0_90 = arith.constant 0 : index
    %157 = vector.load %arg7[%c0_89, %c0_90] : memref<1x128xf32, #tpu.memory_space<vmem>>, vector<1x128xf32>
    %158 = vector.broadcast %157 : vector<1x128xf32> to vector<2x128xf32>
    %159 = arith.addf %156, %158 : vector<2x128xf32>
    %cst_91 = arith.constant 0.000000e+00 : f32
    %160 = vector.broadcast %cst_91 : f32 to vector<2x128xf32>
    %161 = arith.maximumf %159, %160 : vector<2x128xf32>
    %c0_92 = arith.constant 0 : index
    %c0_93 = arith.constant 0 : index
    %162 = vector.load %arg8[%c0_92, %c0_93] : memref<128x2xf32, #tpu.memory_space<vmem>>, vector<128x2xf32>
    %cst_94 = arith.constant dense<0.000000e+00> : vector<2x2xf32>
    %163 = tpu.matmul %161, %162, %cst_94 {dimension_numbers = #tpu.dot_dimension_numbers<[1], [0], [0], [1], [0, 0, 1, 1], [], []>} : vector<2x128xf32>, vector<128x2xf32>, vector<2x2xf32> -> vector<2x2xf32>
    %c0_95 = arith.constant 0 : index
    %c0_96 = arith.constant 0 : index
    %164 = vector.load %arg9[%c0_95, %c0_96] : memref<1x2xf32, #tpu.memory_space<vmem>>, vector<1x2xf32>
    %165 = vector.broadcast %164 : vector<1x2xf32> to vector<2x2xf32>
    %166 = arith.addf %163, %165 : vector<2x2xf32>
    %cst_97 = arith.constant dense<0xFF800000> : vector<2xf32>
    %167 = vector.multi_reduction <maximumf>, %166, %cst_97 [1] : vector<2x2xf32> to vector<2xf32>
    %168 = vector.shape_cast %167 : vector<2xf32> to vector<2x1xf32>
    %169 = vector.broadcast %168 : vector<2x1xf32> to vector<2x2xf32>
    %170 = arith.subf %166, %169 : vector<2x2xf32>
    %171 = math.exp %170 : vector<2x2xf32>
    %cst_98 = arith.constant dense<0.000000e+00> : vector<2xf32>
    %172 = vector.multi_reduction <add>, %171, %cst_98 [1] : vector<2x2xf32> to vector<2xf32>
    %173 = vector.shape_cast %172 : vector<2xf32> to vector<2x1xf32>
    %174 = vector.broadcast %173 : vector<2x1xf32> to vector<2x2xf32>
    %175 = arith.divf %171, %174 : vector<2x2xf32>
    %c0_99 = arith.constant 0 : index
    %c0_100 = arith.constant 0 : index
    %176 = vector.load %arg10[%c0_99, %c0_100] : memref<2x2xf32, #tpu.memory_space<vmem>>, vector<2x2xf32>
    tpu.vector_store %arg10[%c0_99, %c0_100], %175 {strides = array<i32>} : memref<2x2xf32, #tpu.memory_space<vmem>>, vector<2x2xf32>,
    return
  }
  func.func @transform_0(%arg0: i32) -> (i32, i32, i32) {
    %c0_i32 = arith.constant 0 : i32
    %c0_i32_0 = arith.constant 0 : i32
    %c0_i32_1 = arith.constant 0 : i32
    return %arg0, %c0_i32, %c0_i32_0 : i32, i32, i32
  }
  func.func @transform_1(%arg0: i32) -> (i32, i32) {
    %c0_i32 = arith.constant 0 : i32
    %c0_i32_0 = arith.constant 0 : i32
    %c0_i32_1 = arith.constant 0 : i32
    return %c0_i32, %c0_i32_0 : i32, i32
  }
  func.func @transform_2(%arg0: i32) -> (i32, i32) {
    %c0_i32 = arith.constant 0 : i32
    %c0_i32_0 = arith.constant 0 : i32
    %c0_i32_1 = arith.constant 0 : i32
    return %c0_i32, %c0_i32_0 : i32, i32
  }
  func.func @transform_3(%arg0: i32) -> (i32, i32, i32) {
    %c0_i32 = arith.constant 0 : i32
    %c0_i32_0 = arith.constant 0 : i32
    %c0_i32_1 = arith.constant 0 : i32
    %c0_i32_2 = arith.constant 0 : i32
    return %c0_i32, %c0_i32_0, %c0_i32_1 : i32, i32, i32
  }
  func.func @transform_4(%arg0: i32) -> (i32, i32) {
    %c0_i32 = arith.constant 0 : i32
    %c0_i32_0 = arith.constant 0 : i32
    %c0_i32_1 = arith.constant 0 : i32
    return %c0_i32, %c0_i32_0 : i32, i32
  }
  func.func @transform_5(%arg0: i32) -> (i32, i32, i32) {
    %c0_i32 = arith.constant 0 : i32
    %c0_i32_0 = arith.constant 0 : i32
    %c0_i32_1 = arith.constant 0 : i32
    %c0_i32_2 = arith.constant 0 : i32
    return %c0_i32, %c0_i32_0, %c0_i32_1 : i32, i32, i32
  }
  func.func @transform_6(%arg0: i32) -> (i32, i32) {
    %c0_i32 = arith.constant 0 : i32
    %c0_i32_0 = arith.constant 0 : i32
    %c0_i32_1 = arith.constant 0 : i32
    return %c0_i32, %c0_i32_0 : i32, i32
  }
  func.func @transform_7(%arg0: i32) -> (i32, i32) {
    %c0_i32 = arith.constant 0 : i32
    %c0_i32_0 = arith.constant 0 : i32
    %c0_i32_1 = arith.constant 0 : i32
    return %c0_i32, %c0_i32_0 : i32, i32
  }
  func.func @transform_8(%arg0: i32) -> (i32, i32) {
    %c0_i32 = arith.constant 0 : i32
    %c0_i32_0 = arith.constant 0 : i32
    %c0_i32_1 = arith.constant 0 : i32
    return %c0_i32, %c0_i32_0 : i32, i32
  }
  func.func @transform_9(%arg0: i32) -> (i32, i32) {
    %c0_i32 = arith.constant 0 : i32
    %c0_i32_0 = arith.constant 0 : i32
    return %arg0, %c0_i32 : i32, i32
  }
}

</mosaic_0001>

<bundles_post_ra>
// kernel: artifact_cnn_forward.1
= control target key start
LH: loop header
LB: loop body
LE: loop exit
PB: predicated region body
PF: predicated region fallthrough
CT: control target
= control target key end

     0   :  { %14 = vsyncpa [#allocation4], 0  ;;  %s15275_s0 = inlined_call_operand.vmem [shape: f32[2,32,288], index: 0, kind: input, shape index: {}]   ;;  %s15276_s1 = inlined_call_operand.hbm [shape: f32[288,512], index: 1, kind: input, shape index: {}]   ;;  %s15277_s2 = inlined_call_operand.vmem [shape: f32[1,512], index: 2, kind: input, shape index: {}]   ;;  %s15278_s3 = inlined_call_operand.vmem [shape: f32[3,256,512], index: 3, kind: input, shape index: {}]   ;;  %s15279_s4 = inlined_call_operand.vmem [shape: f32[1,512], index: 4, kind: input, shape index: {}]   ;;  %s15280_s5 = inlined_call_operand.vmem [shape: bf16[16,512,128], index: 5, kind: input, shape index: {}]   ;;  %s15281_s6 = inlined_call_operand.vmem [shape: f32[1,128], index: 6, kind: input, shape index: {}]   ;;  %s15282_s7 = inlined_call_operand.vmem [shape: f32[128,2], index: 7, kind: input, shape index: {}]   ;;  %s15283_s8 = inlined_call_operand.vmem [shape: f32[1,2], index: 8, kind: input, shape index: {}]   ;;  %s15284_s9 = inlined_call_operand.hbm [shape: f32[2,2], index: 9, kind: output, shape index: {}]  }
   0x1   :  { %15 = vsyncpa [#allocation5], 0  ;;  %s11533_s30 = smov [#allocation3]   ;;  %s11485_s13 = scalar_lea.hbm %s15276_s1, 18432 }
   0x2   :  { %s23_s10 = sshll.u32 %s11533_s30, 4  ;;  %p11486_p0 = scmp.ne.s32.totalorder %s15276_s1, %s11485_s13  ;;  %s24_s10 = int_to_ptr.vmem [resolvable:$true] %s23_s10 }
   0x3   :  { %p11489_p1 = scmp.lt.u32.totalorder %s11485_s13, %s15276_s1 }
   0x5   :  { %p11491_p2 = pnand %p11489_p1, %p11486_p0 }
   0x7   :  { %11494 = shalt.err (!%p11491_p2)
}
   0x8   :  { %s11495_s18 = scalar_lea.vmem %s24_s10, 18432  ;;  %p11500_p4 = scmp.lt.s32.totalorder %s24_s10, %s24_s10 }
   0x9   :  { %p11496_p3 = scmp.ne.s32.totalorder %s24_s10, %s11495_s18  ;;  %p11501_p5 = scmp.lt.s32.totalorder %s11495_s18, %s11495_s18 }
   0xb   :  { %p11502_p6 = por %p11501_p5, %p11500_p4 }
   0xd   :  { %p11503_p7 = pnand %p11502_p6, %p11496_p3 }
   0xf   :  { %11506 = shalt.err (!%p11503_p7)
}
  0x10   :  { %s11534_s19 = smov 512   ;;  %s11535_s20 = smov 32  }
  0x11   :  { %29 = dma.hbm_to_vmem [thread:$0]  %s15276_s1, 18432, %s24_s10, [#allocation4], %s11534_s19, %s11534_s19, %s11535_s20  }
  0x12   :  { %11529 = dma.done.wait [#allocation4], 18432  }
  0x13   :  { %11530 = vsyncadd [#allocation4], 4294948864  ;;  %v11536_v0 = vmov 0.0   ;;  %v73_v1 = vld [vmem:[#allocation3 + $0x8] sm:$0xff]  ;;  %v72_v6 = vld [vmem:[#allocation3] sm:$0xff]  ;;  %vm238_vm0 = vcmask 261120  }
  0x14   :  { %440 = vmatprep.mubr.f32.mxu1 %v11536_v0  ;;  %771 = vst [vmem:[#allocation2] sm:$0xff] %v11536_v0  ;;  %772 = vst [vmem:[#allocation2 + $0x8] sm:$0xff] %v11536_v0  ;;  %v77_v2 = vld [vmem:[#allocation3 + $0x28] sm:$0xff]  ;;  %v76_v7 = vld [vmem:[#allocation3 + $0x20] sm:$0xff]  ;;  %vm791_vm1 = vcmask 1040384   ;;  %vm984_vm2 = vcmask 1046528  }
  0x15   :  { %775 = vst [vmem:[#allocation2 + $0x20] sm:$0x3] %v11536_v0  ;;  %776 = vst [vmem:[#allocation2 + $0x28] sm:$0x3] %v11536_v0  ;;  %v201_v3 = vld [vmem:[#allocation3 + $0x408] sm:$0xff]  ;;  %v10310_v4 = vpack.c.bf16 %v77_v2, %v73_v1  ;;  %v10312_v9 = vpack.c.bf16 %v76_v7, %v72_v6  ;;  %v200_v10 = vld [vmem:[#allocation3 + $0x400] sm:$0xff] }
  0x16   :  { %777 = vst [vmem:[#allocation2 + $0x30] sm:$0xff] %v11536_v0  ;;  %778 = vst [vmem:[#allocation2 + $0x38] sm:$0xff] %v11536_v0  ;;  %v205_v5 = vld [vmem:[#allocation3 + $0x428] sm:$0xff]  ;;  %v204_v11 = vld [vmem:[#allocation3 + $0x420] sm:$0xff]  ;;  %vm1514_vm3 = vcmask 1045504   ;;  %vm2074_vm4 = vcmask 1041409  }
  0x17   :  { %781 = vst [vmem:[#allocation2 + $0x50] sm:$0x3] %v11536_v0  ;;  %782 = vst [vmem:[#allocation2 + $0x58] sm:$0x3] %v11536_v0  ;;  %v10374_v8 = vpack.c.bf16 %v205_v5, %v201_v3  ;;  %v81_v12 = vld [vmem:[#allocation3 + $0x48] sm:$0xff]  ;;  %10311 = vmatprep.subr.bf16.mxu0 %v10310_v4  ;;  %v10376_v13 = vpack.c.bf16 %v204_v11, %v200_v10  ;;  %v80_v19 = vld [vmem:[#allocation3 + $0x40] sm:$0xff] }
  0x18   :  { %v85_v14 = vld [vmem:[#allocation3 + $0x68] sm:$0xff]  ;;  %10313 = vmatpush1.bf16.msra.mxu0 %v10312_v9  ;;  %v84_v20 = vld [vmem:[#allocation3 + $0x60] sm:$0xff]  ;;  %v75_v28 = vld [vmem:[#allocation3 + $0x18] sm:$0xff]  ;;  %vm11538_vm5 = vmmov 0   ;;  %vm7780_vm6 = vcmask 9216  }
  0x19   :  { %v209_v15 = vld [vmem:[#allocation3 + $0x448] sm:$0xff]  ;;  %10375 = vmatprep.subr.bf16.mxu1 %v10374_v8  ;;  %v10314_v17 = vpack.c.bf16 %v85_v14, %v81_v12  ;;  %v208_v21 = vld [vmem:[#allocation3 + $0x440] sm:$0xff]  ;;  %v10316_v22 = vpack.c.bf16 %v84_v20, %v80_v19  ;;  %v79_v29 = vld [vmem:[#allocation3 + $0x38] sm:$0xff] }
  0x1a   :  { %v213_v16 = vld [vmem:[#allocation3 + $0x468] sm:$0xff]  ;;  %10377 = vmatpush1.bf16.msra.mxu1 %v10376_v13  ;;  %v212_v23 = vld [vmem:[#allocation3 + $0x460] sm:$0xff]  ;;  %v11614_v30 = vld [vmem:[%s15275_s0 + $0x10] sm:$0xff]  ;;  %v10382_v31 = vpack.c.bf16 %v79_v29, %v75_v28 }
  0x1b   :  { %v10378_v18 = vpack.c.bf16 %v213_v16, %v209_v15  ;;  %v89_v24 = vld [vmem:[#allocation3 + $0x88] sm:$0xff]  ;;  %10315 = vmatprep.subr.bf16.mxu0 %v10314_v17  ;;  %v10380_v26 = vpack.c.bf16 %v212_v23, %v208_v21  ;;  %v88_v32 = vld [vmem:[#allocation3 + $0x80] sm:$0xff]  ;;  %v74_v34 = vld [vmem:[#allocation3 + $0x10] sm:$0xff] }
  0x1c   :  { %v93_v25 = vld [vmem:[#allocation3 + $0xa8] sm:$0xff]  ;;  %v92_v33 = vld [vmem:[#allocation3 + $0xa0] sm:$0xff]  ;;  %10317 = vmatpush1.bf16.msra.mxu0 %v10316_v22  ;;  %v78_v36 = vld [vmem:[#allocation3 + $0x30] sm:$0xff] }
  0x1d   :  { %10379 = vmatprep.subr.bf16.mxu1 %v10378_v18  ;;  %v10318_v27 = vpack.c.bf16 %v93_v25, %v89_v24  ;;  %v10320_v35 = vpack.c.bf16 %v92_v33, %v88_v32  ;;  %v97_v37 = vld [vmem:[#allocation3 + $0xc8] sm:$0xff]  ;;  %v10384_v39 = vpack.c.bf16 %v78_v36, %v74_v34  ;;  %v83_v41 = vld [vmem:[#allocation3 + $0x58] sm:$0xff]  ;;  %v96_v43 = vld [vmem:[#allocation3 + $0xc0] sm:$0xff] }
  0x1e   :  { %v101_v38 = vld [vmem:[#allocation3 + $0xe8] sm:$0xff]  ;;  %10381 = vmatpush1.bf16.msra.mxu1 %v10380_v26  ;;  %v87_v42 = vld [vmem:[#allocation3 + $0x78] sm:$0xff]  ;;  %v100_v45 = vld [vmem:[#allocation3 + $0xe0] sm:$0xff] }
  0x1f   :  { %10319 = vmatprep.subr.bf16.mxu0 %v10318_v27  ;;  %v10322_v40 = vpack.c.bf16 %v101_v38, %v97_v37  ;;  %10383 = vmatprep.subr.bf16.mxu1 %v10382_v31  ;;  %v10386_v44 = vpack.c.bf16 %v87_v42, %v83_v41  ;;  %v82_v46 = vld [vmem:[#allocation3 + $0x50] sm:$0xff]  ;;  %v105_v48 = vld [vmem:[#allocation3 + $0x108] sm:$0xff]  ;;  %v91_v50 = vld [vmem:[#allocation3 + $0x98] sm:$0xff]  ;;  %v10324_v51 = vpack.c.bf16 %v100_v45, %v96_v43 }
  0x20   :  { %v86_v47 = vld [vmem:[#allocation3 + $0x70] sm:$0xff]  ;;  %v109_v49 = vld [vmem:[#allocation3 + $0x128] sm:$0xff]  ;;  %10321 = vmatpush1.bf16.msra.mxu0 %v10320_v35  ;;  %v95_v52 = vld [vmem:[#allocation3 + $0xb8] sm:$0xff] }
  0x21   :  { %7808 = vmatmul.mubr.msk.f32.vlgmr.msra.gmra.mrb[0].mxu1 %vm238_vm0, %v11614_v30  ;;  %10323 = vmatprep.subr.bf16.mxu0 %v10322_v40  ;;  %v10388_v53 = vpack.c.bf16 %v86_v47, %v82_v46  ;;  %v10326_v54 = vpack.c.bf16 %v109_v49, %v105_v48  ;;  %v104_v55 = vld [vmem:[#allocation3 + $0x100] sm:$0xff]  ;;  %v90_v57 = vld [vmem:[#allocation3 + $0x90] sm:$0xff]  ;;  %v10390_v58 = vpack.c.bf16 %v95_v52, %v91_v50  ;;  %v113_v60 = vld [vmem:[#allocation3 + $0x148] sm:$0xff] }
  0x22   :  { %10385 = vmatpush1.bf16.msra.mxu1 %v10384_v39  ;;  %v108_v56 = vld [vmem:[#allocation3 + $0x120] sm:$0xff]  ;;  %v94_v59 = vld [vmem:[#allocation3 + $0xb0] sm:$0xff]  ;;  %v117_v61 = vld [vmem:[#allocation3 + $0x168] sm:$0xff]  ;;  %446 = vmatprep.mubr.f32.mxu1 %v11536_v0 }
  0x23   :  { %10387 = vmatprep.subr.bf16.mxu1 %v10386_v44  ;;  %v99_v62 = vld [vmem:[#allocation3 + $0xd8] sm:$0xff]  ;;  %v10328_v1 = vpack.c.bf16 %v108_v56, %v104_v55  ;;  %v10392_v2 = vpack.c.bf16 %v94_v59, %v90_v57  ;;  %v10330_v3 = vpack.c.bf16 %v117_v61, %v113_v60  ;;  %v112_v4 = vld [vmem:[#allocation3 + $0x140] sm:$0xff]  ;;  %v98_v6 = vld [vmem:[#allocation3 + $0xd0] sm:$0xff] }
  0x24   :  { %v103_v63 = vld [vmem:[#allocation3 + $0xf8] sm:$0xff]  ;;  %10325 = vmatpush1.bf16.msra.mxu0 %v10324_v51  ;;  %v116_v5 = vld [vmem:[#allocation3 + $0x160] sm:$0xff]  ;;  %v102_v8 = vld [vmem:[#allocation3 + $0xf0] sm:$0xff] }
  0x25   :  { %10327 = vmatprep.subr.bf16.mxu0 %v10326_v54  ;;  %v10394_v7 = vpack.c.bf16 %v103_v63, %v99_v62  ;;  %v121_v9 = vld [vmem:[#allocation3 + $0x188] sm:$0xff]  ;;  %v107_v11 = vld [vmem:[#allocation3 + $0x118] sm:$0xff]  ;;  %v10332_v13 = vpack.c.bf16 %v116_v5, %v112_v4  ;;  %v10396_v14 = vpack.c.bf16 %v102_v8, %v98_v6  ;;  %v120_v16 = vld [vmem:[#allocation3 + $0x180] sm:$0xff] }
  0x26   :  { %10389 = vmatpush1.bf16.msra.mxu1 %v10388_v53  ;;  %v125_v10 = vld [vmem:[#allocation3 + $0x1a8] sm:$0xff]  ;;  %v111_v12 = vld [vmem:[#allocation3 + $0x138] sm:$0xff]  ;;  %v124_v17 = vld [vmem:[#allocation3 + $0x1a0] sm:$0xff] }
  0x27   :  { %10391 = vmatprep.subr.bf16.mxu1 %v10390_v58  ;;  %v10334_v15 = vpack.c.bf16 %v125_v10, %v121_v9  ;;  %v106_v18 = vld [vmem:[#allocation3 + $0x110] sm:$0xff]  ;;  %v10398_v19 = vpack.c.bf16 %v111_v12, %v107_v11  ;;  %v129_v21 = vld [vmem:[#allocation3 + $0x1c8] sm:$0xff]  ;;  %v115_v23 = vld [vmem:[#allocation3 + $0x158] sm:$0xff]  ;;  %v10336_v25 = vpack.c.bf16 %v124_v17, %v120_v16 }
  0x28   :  { %10329 = vmatpush1.bf16.msra.mxu0 %v10328_v1  ;;  %v110_v20 = vld [vmem:[#allocation3 + $0x130] sm:$0xff]  ;;  %v133_v22 = vld [vmem:[#allocation3 + $0x1e8] sm:$0xff]  ;;  %v119_v24 = vld [vmem:[#allocation3 + $0x178] sm:$0xff] }
  0x29   :  { %10331 = vmatprep.subr.bf16.mxu0 %v10330_v3  ;;  %v10400_v26 = vpack.c.bf16 %v110_v20, %v106_v18  ;;  %v10338_v27 = vpack.c.bf16 %v133_v22, %v129_v21  ;;  %v128_v28 = vld [vmem:[#allocation3 + $0x1c0] sm:$0xff]  ;;  %v114_v31 = vld [vmem:[#allocation3 + $0x150] sm:$0xff]  ;;  %v10402_v32 = vpack.c.bf16 %v119_v24, %v115_v23  ;;  %v137_v34 = vld [vmem:[#allocation3 + $0x208] sm:$0xff] }
  0x2a   :  { %10393 = vmatpush1.bf16.msra.mxu1 %v10392_v2  ;;  %v132_v29 = vld [vmem:[#allocation3 + $0x1e0] sm:$0xff]  ;;  %v118_v33 = vld [vmem:[#allocation3 + $0x170] sm:$0xff]  ;;  %v141_v35 = vld [vmem:[#allocation3 + $0x228] sm:$0xff] }
  0x2b   :  { %10395 = vmatprep.subr.bf16.mxu1 %v10394_v7  ;;  %v123_v36 = vld [vmem:[#allocation3 + $0x198] sm:$0xff]  ;;  %v10340_v38 = vpack.c.bf16 %v132_v29, %v128_v28  ;;  %v136_v39 = vld [vmem:[#allocation3 + $0x200] sm:$0xff]  ;;  %v10404_v40 = vpack.c.bf16 %v118_v33, %v114_v31  ;;  %v10342_v41 = vpack.c.bf16 %v141_v35, %v137_v34  ;;  %v122_v43 = vld [vmem:[#allocation3 + $0x190] sm:$0xff] }
  0x2c   :  { %10333 = vmatpush1.bf16.msra.mxu0 %v10332_v13  ;;  %v127_v37 = vld [vmem:[#allocation3 + $0x1b8] sm:$0xff]  ;;  %v140_v42 = vld [vmem:[#allocation3 + $0x220] sm:$0xff]  ;;  %v126_v44 = vld [vmem:[#allocation3 + $0x1b0] sm:$0xff] }
  0x2d   :  { %10335 = vmatprep.subr.bf16.mxu0 %v10334_v15  ;;  %v10406_v45 = vpack.c.bf16 %v127_v37, %v123_v36  ;;  %v145_v46 = vld [vmem:[#allocation3 + $0x248] sm:$0xff]  ;;  %v131_v49 = vld [vmem:[#allocation3 + $0x1d8] sm:$0xff]  ;;  %v10344_v51 = vpack.c.bf16 %v140_v42, %v136_v39  ;;  %v144_v52 = vld [vmem:[#allocation3 + $0x240] sm:$0xff]  ;;  %v10408_v53 = vpack.c.bf16 %v126_v44, %v122_v43 }
  0x2e   :  { %10397 = vmatpush1.bf16.msra.mxu1 %v10396_v14  ;;  %v149_v47 = vld [vmem:[#allocation3 + $0x268] sm:$0xff]  ;;  %v135_v50 = vld [vmem:[#allocation3 + $0x1f8] sm:$0xff]  ;;  %v148_v55 = vld [vmem:[#allocation3 + $0x260] sm:$0xff] }
  0x2f   :  { %10399 = vmatprep.subr.bf16.mxu1 %v10398_v19  ;;  %v11622_v48 = vld [vmem:[%s15275_s0 + $0x28] sm:$0xff]  ;;  %v10346_v54 = vpack.c.bf16 %v149_v47, %v145_v46  ;;  %v130_v56 = vld [vmem:[#allocation3 + $0x1d0] sm:$0xff]  ;;  %v11630_v57 = vld [vmem:[%s15275_s0 + $0x40] sm:$0xff]  ;;  %v10410_v58 = vpack.c.bf16 %v135_v50, %v131_v49  ;;  %v10348_v1 = vpack.c.bf16 %v148_v55, %v144_v52 }
  0x30   :  { %10337 = vmatpush1.bf16.msra.mxu0 %v10336_v25  ;;  %7809 = vmatmul.mubr.msk.f32.gmra.mrb[2].mxu1 %vm238_vm0, %v11622_v48  ;;  %v134_v59 = vld [vmem:[#allocation3 + $0x1f0] sm:$0xff]  ;;  %v153_v60 = vld [vmem:[#allocation3 + $0x288] sm:$0xff]  ;;  %v139_v62 = vld [vmem:[#allocation3 + $0x218] sm:$0xff] }
  0x31   :  { %10339 = vmatprep.subr.bf16.mxu0 %v10338_v27  ;;  %452 = vmatprep.mubr.f32.mxu1 %v11536_v0  ;;  %v157_v61 = vld [vmem:[#allocation3 + $0x2a8] sm:$0xff]  ;;  %v143_v63 = vld [vmem:[#allocation3 + $0x238] sm:$0xff]  ;;  %v10412_v3 = vpack.c.bf16 %v134_v59, %v130_v56  ;;  %v152_v5 = vld [vmem:[#allocation3 + $0x280] sm:$0xff] }
  0x32   :  { %10401 = vmatpush1.bf16.msra.mxu1 %v10400_v26  ;;  %v11638_v2 = vld [vmem:[%s15275_s0 + $0x58] sm:$0xff]  ;;  %v10350_v4 = vpack.c.bf16 %v157_v61, %v153_v60  ;;  %v156_v6 = vld [vmem:[#allocation3 + $0x2a0] sm:$0xff]  ;;  %v138_v7 = vld [vmem:[#allocation3 + $0x210] sm:$0xff]  ;;  %v10414_v8 = vpack.c.bf16 %v143_v63, %v139_v62 }
  0x33   :  { %10403 = vmatprep.subr.bf16.mxu1 %v10402_v32  ;;  %v142_v9 = vld [vmem:[#allocation3 + $0x230] sm:$0xff]  ;;  %v161_v10 = vld [vmem:[#allocation3 + $0x2c8] sm:$0xff]  ;;  %v147_v12 = vld [vmem:[#allocation3 + $0x258] sm:$0xff]  ;;  %v10352_v14 = vpack.c.bf16 %v156_v6, %v152_v5 }
  0x34   :  { %10341 = vmatpush1.bf16.msra.mxu0 %v10340_v38  ;;  %7810 = vmatmul.mubr.msk.f32.gmra.mrb[4].mxu1 %vm238_vm0, %v11630_v57  ;;  %v165_v11 = vld [vmem:[#allocation3 + $0x2e8] sm:$0xff]  ;;  %v151_v13 = vld [vmem:[#allocation3 + $0x278] sm:$0xff]  ;;  %v11646_v15 = vld [vmem:[%s15275_s0 + $0x70] sm:$0xff]  ;;  %v10416_v16 = vpack.c.bf16 %v142_v9, %v138_v7 }
  0x35   :  { %10343 = vmatprep.subr.bf16.mxu0 %v10342_v41  ;;  %458 = vmatprep.mubr.f32.mxu1 %v11536_v0  ;;  %v10354_v17 = vpack.c.bf16 %v165_v11, %v161_v10  ;;  %v160_v18 = vld [vmem:[#allocation3 + $0x2c0] sm:$0xff]  ;;  %v146_v20 = vld [vmem:[#allocation3 + $0x250] sm:$0xff]  ;;  %v10418_v21 = vpack.c.bf16 %v151_v13, %v147_v12  ;;  %v169_v23 = vld [vmem:[#allocation3 + $0x308] sm:$0xff] }
  0x36   :  { %10405 = vmatpush1.bf16.msra.mxu1 %v10404_v40  ;;  %v164_v19 = vld [vmem:[#allocation3 + $0x2e0] sm:$0xff]  ;;  %v150_v22 = vld [vmem:[#allocation3 + $0x270] sm:$0xff]  ;;  %v173_v24 = vld [vmem:[#allocation3 + $0x328] sm:$0xff] }
  0x37   :  { %10407 = vmatprep.subr.bf16.mxu1 %v10406_v45  ;;  %v155_v25 = vld [vmem:[#allocation3 + $0x298] sm:$0xff]  ;;  %v10356_v27 = vpack.c.bf16 %v164_v19, %v160_v18  ;;  %v11654_v28 = vld [vmem:[%s15275_s0 + $0x88] sm:$0xff]  ;;  %v10420_v31 = vpack.c.bf16 %v150_v22, %v146_v20  ;;  %v10358_v32 = vpack.c.bf16 %v173_v24, %v169_v23  ;;  %v168_v33 = vld [vmem:[#allocation3 + $0x300] sm:$0xff] }
  0x38   :  { %10345 = vmatpush1.bf16.msra.mxu0 %v10344_v51  ;;  %7811 = vmatmul.mubr.msk.f32.gmra.mrb[6].mxu1 %vm238_vm0, %v11638_v2  ;;  %v159_v26 = vld [vmem:[#allocation3 + $0x2b8] sm:$0xff]  ;;  %v49_v29 = vld [vmem:[%s15275_s0 + $0x8] sm:$0xff]  ;;  %v172_v34 = vld [vmem:[#allocation3 + $0x320] sm:$0xff] }
  0x39   :  { %10347 = vmatprep.subr.bf16.mxu0 %v10346_v54  ;;  %464 = vmatprep.mubr.f32.mxu1 %v11536_v0  ;;  %v154_v35 = vld [vmem:[#allocation3 + $0x290] sm:$0xff]  ;;  %v10422_v36 = vpack.c.bf16 %v159_v26, %v155_v25  ;;  %v177_v38 = vld [vmem:[#allocation3 + $0x348] sm:$0xff]  ;;  %v163_v40 = vld [vmem:[#allocation3 + $0x2d8] sm:$0xff]  ;;  %v10360_v42 = vpack.c.bf16 %v172_v34, %v168_v33 }
  0x3a   :  { %10409 = vmatpush1.bf16.msra.mxu1 %v10408_v53  ;;  %v158_v37 = vld [vmem:[#allocation3 + $0x2b0] sm:$0xff]  ;;  %v181_v39 = vld [vmem:[#allocation3 + $0x368] sm:$0xff]  ;;  %327 = vmatprep.mubr.f32.mxu0 %v49_v29  ;;  %v167_v41 = vld [vmem:[#allocation3 + $0x2f8] sm:$0xff] }
  0x3b   :  { %10411 = vmatprep.subr.bf16.mxu1 %v10410_v58  ;;  %v11665_v43 = vld [vmem:[%s15275_s0 + $0xa0] sm:$0xff]  ;;  %v10424_v44 = vpack.c.bf16 %v158_v37, %v154_v35  ;;  %v10362_v45 = vpack.c.bf16 %v181_v39, %v177_v38  ;;  %v162_v49 = vld [vmem:[#allocation3 + $0x2d0] sm:$0xff]  ;;  %v10426_v50 = vpack.c.bf16 %v167_v41, %v163_v40  ;;  %v185_v52 = vld [vmem:[#allocation3 + $0x388] sm:$0xff] }
  0x3c   :  { %10349 = vmatpush1.bf16.msra.mxu0 %v10348_v1  ;;  %7812 = vmatmul.mubr.msk.f32.gmra.mrb[8].mxu1 %vm238_vm0, %v11646_v15  ;;  %v176_v46 = vld [vmem:[#allocation3 + $0x340] sm:$0xff]  ;;  %v166_v51 = vld [vmem:[#allocation3 + $0x2f0] sm:$0xff]  ;;  %v189_v53 = vld [vmem:[#allocation3 + $0x3a8] sm:$0xff] }
  0x3d   :  { %10351 = vmatprep.subr.bf16.mxu0 %v10350_v4  ;;  %470 = vmatprep.mubr.f32.mxu1 %v11536_v0  ;;  %v180_v47 = vld [vmem:[#allocation3 + $0x360] sm:$0xff]  ;;  %v171_v54 = vld [vmem:[#allocation3 + $0x318] sm:$0xff]  ;;  %v10428_v60 = vpack.c.bf16 %v166_v51, %v162_v49  ;;  %v10366_v61 = vpack.c.bf16 %v189_v53, %v185_v52  ;;  %v170_v63 = vld [vmem:[#allocation3 + $0x310] sm:$0xff] }
  0x3e   :  { %10413 = vmatpush1.bf16.msra.mxu1 %v10412_v3  ;;  %v175_v55 = vld [vmem:[#allocation3 + $0x338] sm:$0xff]  ;;  %v10364_v56 = vpack.c.bf16 %v180_v47, %v176_v46  ;;  %v184_v58 = vld [vmem:[#allocation3 + $0x380] sm:$0xff]  ;;  %v174_v1 = vld [vmem:[#allocation3 + $0x330] sm:$0xff] }
  0x3f   :  { %10415 = vmatprep.subr.bf16.mxu1 %v10414_v8  ;;  %v11673_v59 = vld [vmem:[%s15275_s0 + $0xb8] sm:$0xff]  ;;  %v188_v62 = vld [vmem:[#allocation3 + $0x3a0] sm:$0xff]  ;;  %v10430_v3 = vpack.c.bf16 %v175_v55, %v171_v54  ;;  %v193_v4 = vld [vmem:[#allocation3 + $0x3c8] sm:$0xff]  ;;  %v10432_v12 = vpack.c.bf16 %v174_v1, %v170_v63 }
  0x40   :  { %10353 = vmatpush1.bf16.msra.mxu0 %v10352_v14  ;;  %7813 = vmatmul.mubr.msk.f32.gmra.mrb[10].mxu1 %vm238_vm0, %v11654_v28  ;;  %v197_v5 = vld [vmem:[#allocation3 + $0x3e8] sm:$0xff]  ;;  %v179_v6 = vld [vmem:[#allocation3 + $0x358] sm:$0xff]  ;;  %v192_v8 = vld [vmem:[#allocation3 + $0x3c0] sm:$0xff]  ;;  %v10368_v9 = vpack.c.bf16 %v188_v62, %v184_v58 }
  0x41   :  { %10355 = vmatprep.subr.bf16.mxu0 %v10354_v17  ;;  %476 = vmatprep.mubr.f32.mxu1 %v11536_v0  ;;  %v183_v7 = vld [vmem:[#allocation3 + $0x378] sm:$0xff]  ;;  %v178_v10 = vld [vmem:[#allocation3 + $0x350] sm:$0xff]  ;;  %v10370_v13 = vpack.c.bf16 %v197_v5, %v193_v4  ;;  %v48_v24 = vld [vmem:[%s15275_s0] sm:$0xff] }
  0x42   :  { %10417 = vmatpush1.bf16.msra.mxu1 %v10416_v16  ;;  %v182_v11 = vld [vmem:[#allocation3 + $0x370] sm:$0xff]  ;;  %v187_v14 = vld [vmem:[#allocation3 + $0x398] sm:$0xff]  ;;  %v10434_v17 = vpack.c.bf16 %v183_v7, %v179_v6  ;;  %v52_v26 = vld [vmem:[%s15275_s0 + $0x20] sm:$0xff] }
  0x43   :  { %10419 = vmatprep.subr.bf16.mxu1 %v10418_v21  ;;  %v191_v16 = vld [vmem:[#allocation3 + $0x3b8] sm:$0xff]  ;;  %v186_v19 = vld [vmem:[#allocation3 + $0x390] sm:$0xff]  ;;  %v10436_v21 = vpack.c.bf16 %v182_v11, %v178_v10  ;;  %v61_v52 = vld [vmem:[%s15275_s0 + $0x68] sm:$0xff] }
  0x44   :  { %10357 = vmatpush1.bf16.msra.mxu0 %v10356_v27  ;;  %7814 = vmatmul.mubr.msk.f32.gmra.mrb[12].mxu1 %vm238_vm0, %v11665_v43  ;;  %v190_v20 = vld [vmem:[#allocation3 + $0x3b0] sm:$0xff]  ;;  %v195_v22 = vld [vmem:[#allocation3 + $0x3d8] sm:$0xff]  ;;  %v10438_v25 = vpack.c.bf16 %v191_v16, %v187_v14  ;;  %v60_v54 = vld [vmem:[%s15275_s0 + $0x60] sm:$0xff] }
  0x45   :  { %10359 = vmatprep.subr.bf16.mxu0 %v10358_v32  ;;  %482 = vmatprep.mubr.f32.mxu1 %v11536_v0  ;;  %v196_v0 = vld [vmem:[#allocation3 + $0x3e0] sm:$0xff]  ;;  %v199_v23 = vld [vmem:[#allocation3 + $0x3f8] sm:$0xff]  ;;  %v194_v27 = vld [vmem:[#allocation3 + $0x3d0] sm:$0xff] }
  0x46   :  { %10421 = vmatpush1.bf16.msra.mxu1 %v10420_v31  ;;  %v10372_v18 = vpack.c.bf16 %v196_v0, %v192_v8  ;;  %v10440_v31 = vpack.c.bf16 %v190_v20, %v186_v19  ;;  %v203_v32 = vld [vmem:[#allocation3 + $0x418] sm:$0xff]  ;;  %v10442_v35 = vpack.c.bf16 %v199_v23, %v195_v22  ;;  %v202_v37 = vld [vmem:[#allocation3 + $0x410] sm:$0xff]  ;;  %v64_v55 = vld [vmem:[%s15275_s0 + $0x80] sm:$0xff] }
  0x47   :  { %10423 = vmatprep.subr.bf16.mxu1 %v10422_v36  ;;  %v207_v33 = vld [vmem:[#allocation3 + $0x438] sm:$0xff]  ;;  %v206_v38 = vld [vmem:[#allocation3 + $0x430] sm:$0xff]  ;;  %v69_v62 = vld [vmem:[%s15275_s0 + $0xa8] sm:$0xff] }
  0x48   :  { %10361 = vmatpush1.bf16.msra.mxu0 %v10360_v42  ;;  %7815 = vmatmul.mubr.msk.f32.gmra.mrb[14].mxu1 %vm238_vm0, %v11673_v59  ;;  %v51_v34 = vld [vmem:[%s15275_s0 + $0x18] sm:$0xff]  ;;  %v54_v42 = vld [vmem:[%s15275_s0 + $0x30] sm:$0xff]  ;;  %v10448_v49 = vpack.c.bf16 %v206_v38, %v202_v37  ;;  %v11722_v63 = vld [vmem:[#allocation2] sm:$0xff] }
  0x49   :  { %10363 = vmatprep.subr.bf16.mxu0 %v10362_v45  ;;  %553 = vmatprep.mubr.f32.mxu1 %v49_v29  ;;  %v198_v29 = vld [vmem:[#allocation3 + $0x3f0] sm:$0xff]  ;;  %v55_v36 = vld [vmem:[%s15275_s0 + $0x38] sm:$0xff]  ;;  %15286 = vst [vmem:[#allocation9_spill] sm:$0xff] %v11722_v63  ;;  %v7833_v6 = vld [vmem:[%s15278_s3 + $0x448] sm:$0xff] }
  0x4a   :  { %10425 = vmatpush1.bf16.msra.mxu1 %v10424_v44  ;;  %v10444_v39 = vpack.c.bf16 %v198_v29, %v194_v27  ;;  %v211_v40 = vld [vmem:[#allocation3 + $0x458] sm:$0xff]  ;;  %v10446_v44 = vpack.c.bf16 %v207_v33, %v203_v32  ;;  %v58_v45 = vld [vmem:[%s15275_s0 + $0x50] sm:$0xff]  ;;  %v7837_v7 = vld [vmem:[%s15278_s3 + $0x468] sm:$0xff] }
  0x4b   :  { %10427 = vmatprep.subr.bf16.mxu1 %v10426_v50  ;;  %v215_v41 = vld [vmem:[#allocation3 + $0x478] sm:$0xff]  ;;  %v210_v46 = vld [vmem:[#allocation3 + $0x450] sm:$0xff]  ;;  %v57_v50 = vld [vmem:[%s15275_s0 + $0x48] sm:$0xff]  ;;  %v10458_v0 = vpack.c.bf16 %v7837_v7, %v7833_v6 }
  0x4c   :  { %10365 = vmatpush1.bf16.msra.mxu0 %v10364_v56  ;;  %v214_v47 = vld [vmem:[#allocation3 + $0x470] sm:$0xff]  ;;  %v10450_v51 = vpack.c.bf16 %v215_v41, %v211_v40  ;;  %v63_v56 = vld [vmem:[%s15275_s0 + $0x78] sm:$0xff]  ;;  %v7832_v10 = vld [vmem:[%s15278_s3 + $0x440] sm:$0xff] }
  0x4d   :  { %10367 = vmatprep.subr.bf16.mxu0 %v10366_v61  ;;  %v10452_v53 = vpack.c.bf16 %v214_v47, %v210_v46  ;;  %v67_v58 = vld [vmem:[%s15275_s0 + $0x98] sm:$0xff]  ;;  %v70_v61 = vld [vmem:[%s15275_s0 + $0xb0] sm:$0xff]  ;;  %v7836_v11 = vld [vmem:[%s15278_s3 + $0x460] sm:$0xff] }
  0x4e   :  { %10429 = vmatpush1.bf16.msra.mxu1 %v10428_v60  ;;  %v66_v60 = vld [vmem:[%s15275_s0 + $0x90] sm:$0xff]  ;;  %v7835_v8 = vld [vmem:[%s15278_s3 + $0x458] sm:$0xff]  ;;  %v7845_v19 = vld [vmem:[%s15278_s3 + $0x4a8] sm:$0xff] }
  0x4f   :  { %10431 = vmatprep.subr.bf16.mxu1 %v10430_v3  ;;  %v7826_v3 = vld [vmem:[%s15278_s3 + $0x410] sm:$0xff]  ;;  %v7843_v20 = vld [vmem:[%s15278_s3 + $0x498] sm:$0xff]  ;;  %v7840_v23 = vld [vmem:[%s15278_s3 + $0x480] sm:$0xff] }
  0x50   :  { %10369 = vmatpush1.bf16.msra.mxu0 %v10368_v9  ;;  %v7830_v4 = vld [vmem:[%s15278_s3 + $0x430] sm:$0xff]  ;;  %v7839_v9 = vld [vmem:[%s15278_s3 + $0x478] sm:$0xff]  ;;  %v7849_v32 = vld [vmem:[%s15278_s3 + $0x4c8] sm:$0xff] }
  0x51   :  { %10371 = vmatprep.subr.bf16.mxu0 %v10370_v13  ;;  %v10520_v5 = vpack.c.bf16 %v7830_v4, %v7826_v3  ;;  %v10460_v13 = vpack.c.bf16 %v7836_v11, %v7832_v10  ;;  %v7834_v14 = vld [vmem:[%s15278_s3 + $0x450] sm:$0xff]  ;;  %v7847_v22 = vld [vmem:[%s15278_s3 + $0x4b8] sm:$0xff]  ;;  %v7853_v33 = vld [vmem:[%s15278_s3 + $0x4e8] sm:$0xff] }
  0x52   :  { %10433 = vmatpush1.bf16.msra.mxu1 %v10432_v12  ;;  %v10522_v12 = vpack.c.bf16 %v7839_v9, %v7835_v8  ;;  %v7838_v16 = vld [vmem:[%s15278_s3 + $0x470] sm:$0xff]  ;;  %v7848_v37 = vld [vmem:[%s15278_s3 + $0x4c0] sm:$0xff]  ;;  %v7861_v46 = vld [vmem:[%s15278_s3 + $0x528] sm:$0xff] }
  0x53   :  { %10435 = vmatprep.subr.bf16.mxu1 %v10434_v17  ;;  %v10524_v17 = vpack.c.bf16 %v7838_v16, %v7834_v14  ;;  %v7842_v27 = vld [vmem:[%s15278_s3 + $0x490] sm:$0xff]  ;;  %v7852_v38 = vld [vmem:[%s15278_s3 + $0x4e0] sm:$0xff]  ;;  %v7859_v47 = vld [vmem:[%s15278_s3 + $0x518] sm:$0xff] }
  0x54   :  { %10373 = vmatpush1.bf16.msra.mxu0 %v10372_v18  ;;  %v7841_v18 = vld [vmem:[%s15278_s3 + $0x488] sm:$0xff]  ;;  %v7846_v29 = vld [vmem:[%s15278_s3 + $0x4b0] sm:$0xff]  ;;  %v10468_v40 = vpack.c.bf16 %v7852_v38, %v7848_v37  ;;  %v7879_v7 = vld [vmem:[%s15278_s3 + $0x5b8] sm:$0xff] }
  0x55   :  { %v7850_v41 = vld [vmem:[%s15278_s3 + $0x4d0] sm:$0xff]  ;;  %v7873_v3 = vld [vmem:[%s15278_s3 + $0x588] sm:$0xff]  ;;  %v7872_v8 = vld [vmem:[%s15278_s3 + $0x580] sm:$0xff] }
  0x56   :  { %10437 = vmatpush1.bf16.msra.mxu1 %v10436_v21  ;;  %v10462_v21 = vpack.c.bf16 %v7845_v19, %v7841_v18  ;;  %v7877_v4 = vld [vmem:[%s15278_s3 + $0x5a8] sm:$0xff]  ;;  %v7874_v11 = vld [vmem:[%s15278_s3 + $0x590] sm:$0xff]  ;;  %v7887_v19 = vld [vmem:[%s15278_s3 + $0x5f8] sm:$0xff] }
  0x57   :  { %10439 = vmatprep.subr.bf16.mxu1 %v10438_v25  ;;  %328 = vmatmul.mubr.f32.vlgmr.msra.gmra.mrb[0].mxu0 %v48_v24  ;;  %v10526_v25 = vpack.c.bf16 %v7847_v22, %v7843_v20  ;;  %v10478_v6 = vpack.c.bf16 %v7877_v4, %v7873_v3  ;;  %v7881_v14 = vld [vmem:[%s15278_s3 + $0x5c8] sm:$0xff]  ;;  %v7880_v20 = vld [vmem:[%s15278_s3 + $0x5c0] sm:$0xff]  ;;  %v7890_v38 = vld [vmem:[%s15278_s3 + $0x610] sm:$0xff] }
  0x58   :  { %333 = vmatprep.mubr.f32.mxu0 %v52_v26  ;;  %v7885_v16 = vld [vmem:[%s15278_s3 + $0x5e8] sm:$0xff]  ;;  %v7919_v4 = vld [vmem:[%s15278_s3 + $0x6f8] sm:$0xff] }
  0x59   :  { %v10482_v18 = vpack.c.bf16 %v7885_v16, %v7881_v14  ;;  %v7927_v16 = vld [vmem:[%s15278_s3 + $0x738] sm:$0xff] }
  0x5a   :  { %10441 = vmatpush1.bf16.msra.mxu1 %v10440_v31  ;;  %v10528_v31 = vpack.c.bf16 %v7846_v29, %v7842_v27  ;;  %v7889_v27 = vld [vmem:[%s15278_s3 + $0x608] sm:$0xff] }
  0x5b   :  { %10443 = vmatprep.subr.bf16.mxu1 %v10442_v35  ;;  %334 = vmatmul.mubr.f32.gmra.mrb[2].mxu0 %v51_v34  ;;  %v10466_v35 = vpack.c.bf16 %v7853_v33, %v7849_v32  ;;  %v7893_v29 = vld [vmem:[%s15278_s3 + $0x628] sm:$0xff]  ;;  %v7895_v33 = vld [vmem:[%s15278_s3 + $0x638] sm:$0xff] }
  0x5c   :  { %339 = vmatprep.mubr.f32.mxu0 %v55_v36  ;;  %v10486_v32 = vpack.c.bf16 %v7893_v29, %v7889_v27  ;;  %v7935_v29 = vld [vmem:[%s15278_s3 + $0x778] sm:$0xff] }
  0x5e   :  { %10445 = vmatpush1.bf16.msra.mxu1 %v10444_v39 }
  0x5f   :  { %10447 = vmatprep.subr.bf16.mxu1 %v10446_v44  ;;  %340 = vmatmul.mubr.f32.gmra.mrb[4].mxu0 %v54_v42 }
  0x60   :  { %345 = vmatprep.mubr.f32.mxu0 %v58_v45 }
  0x61   :  { %554 = vmatmul.mubr.f32.vlgmr.msra.gmra.mrb[16].mxu1 %v48_v24  ;;  %v7844_v24 = vld [vmem:[%s15278_s3 + $0x4a0] sm:$0xff] }
  0x62   :  { %10449 = vmatpush1.bf16.msra.mxu1 %v10448_v49  ;;  %559 = vmatprep.mubr.f32.mxu1 %v52_v26  ;;  %v10464_v26 = vpack.c.bf16 %v7844_v24, %v7840_v23  ;;  %v7882_v24 = vld [vmem:[%s15278_s3 + $0x5d0] sm:$0xff] }
  0x63   :  { %10451 = vmatprep.subr.bf16.mxu1 %v10450_v51  ;;  %346 = vmatmul.mubr.f32.gmra.mrb[6].mxu0 %v57_v50  ;;  %v7856_v51 = vld [vmem:[%s15278_s3 + $0x500] sm:$0xff] }
  0x64   :  { %351 = vmatprep.mubr.f32.mxu0 %v61_v52 }
  0x65   :  { %560 = vmatmul.mubr.f32.gmra.mrb[18].mxu1 %v51_v34  ;;  %v7851_v34 = vld [vmem:[%s15278_s3 + $0x4d8] sm:$0xff] }
  0x66   :  { %565 = vmatprep.mubr.f32.mxu1 %v55_v36  ;;  %10453 = vmatpush1.bf16.msra.mxu1 %v10452_v53  ;;  %v7855_v36 = vld [vmem:[%s15278_s3 + $0x4f8] sm:$0xff] }
  0x67   :  { %352 = vmatmul.mubr.f32.gmra.mrb[8].mxu0 %v60_v54  ;;  %v10530_v39 = vpack.c.bf16 %v7855_v36, %v7851_v34  ;;  %v7888_v34 = vld [vmem:[%s15278_s3 + $0x600] sm:$0xff] }
  0x68   :  { %357 = vmatprep.mubr.f32.mxu0 %v64_v55 }
  0x69   :  { %566 = vmatmul.mubr.f32.gmra.mrb[20].mxu1 %v54_v42  ;;  %v7854_v42 = vld [vmem:[%s15278_s3 + $0x4f0] sm:$0xff] }
  0x6a   :  { %571 = vmatprep.mubr.f32.mxu1 %v58_v45  ;;  %v10532_v44 = vpack.c.bf16 %v7854_v42, %v7850_v41  ;;  %v7857_v45 = vld [vmem:[%s15278_s3 + $0x508] sm:$0xff] }
  0x6b   :  { %358 = vmatmul.mubr.f32.gmra.mrb[10].mxu0 %v63_v56  ;;  %v10470_v49 = vpack.c.bf16 %v7861_v46, %v7857_v45  ;;  %v7897_v41 = vld [vmem:[%s15278_s3 + $0x648] sm:$0xff]  ;;  %v7903_v46 = vld [vmem:[%s15278_s3 + $0x678] sm:$0xff] }
  0x6c   :  { %363 = vmatprep.mubr.f32.mxu0 %v67_v58  ;;  %v7901_v42 = vld [vmem:[%s15278_s3 + $0x668] sm:$0xff] }
  0x6d   :  { %572 = vmatmul.mubr.f32.gmra.mrb[22].mxu1 %v57_v50  ;;  %v7863_v50 = vld [vmem:[%s15278_s3 + $0x538] sm:$0xff]  ;;  %v10490_v45 = vpack.c.bf16 %v7901_v42, %v7897_v41 }
  0x6e   :  { %577 = vmatprep.mubr.f32.mxu1 %v61_v52  ;;  %v7860_v52 = vld [vmem:[%s15278_s3 + $0x520] sm:$0xff]  ;;  %v10534_v53 = vpack.c.bf16 %v7863_v50, %v7859_v47  ;;  %v7943_v42 = vld [vmem:[%s15278_s3 + $0x7b8] sm:$0xff] }
  0x6f   :  { %364 = vmatmul.mubr.f32.gmra.mrb[12].mxu0 %v66_v60  ;;  %v7896_v47 = vld [vmem:[%s15278_s3 + $0x640] sm:$0xff] }
  0x70   :  { %369 = vmatprep.mubr.f32.mxu0 %v70_v61 }
  0x71   :  { %578 = vmatmul.mubr.f32.gmra.mrb[24].mxu1 %v60_v54  ;;  %v10472_v54 = vpack.c.bf16 %v7860_v52, %v7856_v51  ;;  %v7898_v52 = vld [vmem:[%s15278_s3 + $0x650] sm:$0xff] }
  0x72   :  { %583 = vmatprep.mubr.f32.mxu1 %v64_v55  ;;  %v7858_v55 = vld [vmem:[%s15278_s3 + $0x510] sm:$0xff] }
  0x73   :  { %370 = vmatmul.mubr.f32.gmra.mrb[14].mxu0 %v69_v62 }
  0x75   :  { %584 = vmatmul.mubr.f32.gmra.mrb[26].mxu1 %v63_v56  ;;  %v7862_v56 = vld [vmem:[%s15278_s3 + $0x530] sm:$0xff] }
  0x76   :  { %589 = vmatprep.mubr.f32.mxu1 %v67_v58  ;;  %v10536_v58 = vpack.c.bf16 %v7862_v56, %v7858_v55  ;;  %v7905_v55 = vld [vmem:[%s15278_s3 + $0x688] sm:$0xff] }
  0x77   :  { %v7909_v56 = vld [vmem:[%s15278_s3 + $0x6a8] sm:$0xff] }
  0x79   :  { %590 = vmatmul.mubr.f32.gmra.mrb[28].mxu1 %v66_v60  ;;  %v7865_v60 = vld [vmem:[%s15278_s3 + $0x548] sm:$0xff] }
  0x7a   :  { %595 = vmatprep.mubr.f32.mxu1 %v70_v61  ;;  %v7869_v61 = vld [vmem:[%s15278_s3 + $0x568] sm:$0xff] }
  0x7d   :  { %596 = vmatmul.mubr.f32.gmra.mrb[30].mxu1 %v69_v62  ;;  %v7867_v62 = vld [vmem:[%s15278_s3 + $0x558] sm:$0xff] }
  0x7e   :  { %666 = vmatprep.mubr.f32.mxu1 %v11722_v63 }
  0x81   :  { %7816 = vmatmul.mubr.msk.f32.vlgmr.msra.gmra.mrb[16].mxu1 %vm238_vm0, %v11614_v30  ;;  %v7825_v30 = vld [vmem:[%s15278_s3 + $0x408] sm:$0xff] }
  0x82   :  { %672 = vmatprep.mubr.f32.mxu1 %v11722_v63 }
  0x85   :  { %7817 = vmatmul.mubr.msk.f32.gmra.mrb[18].mxu1 %vm238_vm0, %v11622_v48  ;;  %v7829_v48 = vld [vmem:[%s15278_s3 + $0x428] sm:$0xff] }
  0x86   :  { %678 = vmatprep.mubr.f32.mxu1 %v11722_v63 }
  0x89   :  { %7818 = vmatmul.mubr.msk.f32.gmra.mrb[20].mxu1 %vm238_vm0, %v11630_v57  ;;  %v7827_v57 = vld [vmem:[%s15278_s3 + $0x418] sm:$0xff] }
  0x8a   :  { %684 = vmatprep.mubr.f32.mxu1 %v11722_v63 }
  0x8d   :  { %7819 = vmatmul.mubr.msk.f32.gmra.mrb[22].mxu1 %vm238_vm0, %v11638_v2  ;;  %v10454_v2 = vpack.c.bf16 %v7829_v48, %v7825_v30  ;;  %v10474_v30 = vpack.c.bf16 %v7869_v61, %v7865_v60  ;;  %v7871_v48 = vld [vmem:[%s15278_s3 + $0x578] sm:$0xff]  ;;  %v10494_v60 = vpack.c.bf16 %v7909_v56, %v7905_v55 }
  0x8e   :  { %690 = vmatprep.mubr.f32.mxu1 %v11722_v63  ;;  %v7911_v61 = vld [vmem:[%s15278_s3 + $0x6b8] sm:$0xff] }
  0x8f   :  { %10455 = vmatprep.subr.bf16.mxu0 %v10454_v2  ;;  %v7868_v2 = vld [vmem:[%s15278_s3 + $0x560] sm:$0xff]  ;;  %v7951_v56 = vld [vmem:[%s15278_s3 + $0x7f8] sm:$0xff] }
  0x91   :  { %7820 = vmatmul.mubr.msk.f32.gmra.mrb[24].mxu1 %vm238_vm0, %v11646_v15  ;;  %v7831_v15 = vld [vmem:[%s15278_s3 + $0x438] sm:$0xff] }
  0x92   :  { %696 = vmatprep.mubr.f32.mxu1 %v11722_v63 }
  0x95   :  { %7821 = vmatmul.mubr.msk.f32.gmra.mrb[26].mxu1 %vm238_vm0, %v11654_v28  ;;  %v7824_v28 = vld [vmem:[%s15278_s3 + $0x400] sm:$0xff] }
  0x96   :  { %702 = vmatprep.mubr.f32.mxu1 %v11722_v63 }
  0x99   :  { %7822 = vmatmul.mubr.msk.f32.gmra.mrb[28].mxu1 %vm238_vm0, %v11665_v43  ;;  %v7828_v43 = vld [vmem:[%s15278_s3 + $0x420] sm:$0xff] }
  0x9a   :  { %708 = vmatprep.mubr.f32.mxu1 %v11722_v63  ;;  %v10456_v1 = vpack.c.bf16 %v7828_v43, %v7824_v28  ;;  %v7866_v43 = vld [vmem:[%s15278_s3 + $0x550] sm:$0xff] }
  0x9c   :  { %10457 = vmatpush1.bf16.msra.mxu0 %v10456_v1 }
  0x9d   :  { %7823 = vmatmul.mubr.msk.f32.gmra.mrb[30].mxu1 %vm238_vm0, %v11673_v59  ;;  %v10518_v59 = vpack.c.bf16 %v7831_v15, %v7827_v57  ;;  %10459 = vmatprep.subr.bf16.mxu0 %v10458_v0  ;;  %v7864_v57 = vld [vmem:[%s15278_s3 + $0x540] sm:$0xff]  ;;  %v10538_v15 = vpack.c.bf16 %v7871_v48, %v7867_v62 }
  0x9e   :  { %v10476_v28 = vpack.c.bf16 %v7868_v2, %v7864_v57  ;;  %v7876_v0 = vld [vmem:[%s15278_s3 + $0x5a0] sm:$0xff]  ;;  %v7906_v2 = vld [vmem:[%s15278_s3 + $0x690] sm:$0xff] }
  0x9f   :  { %10519 = vmatprep.subr.bf16.mxu1 %v10518_v59  ;;  %v7870_v59 = vld [vmem:[%s15278_s3 + $0x570] sm:$0xff]  ;;  %v10480_v10 = vpack.c.bf16 %v7876_v0, %v7872_v8  ;;  %v7904_v62 = vld [vmem:[%s15278_s3 + $0x680] sm:$0xff] }
  0xa0   :  { %10521 = vmatpush1.bf16.msra.mxu1 %v10520_v5  ;;  %10461 = vmatpush1.bf16.msra.mxu0 %v10460_v13  ;;  %v10540_v1 = vpack.c.bf16 %v7870_v59, %v7866_v43  ;;  %v7875_v5 = vld [vmem:[%s15278_s3 + $0x598] sm:$0xff]  ;;  %v7913_v43 = vld [vmem:[%s15278_s3 + $0x6c8] sm:$0xff]  ;;  %v7914_v0 = vld [vmem:[%s15278_s3 + $0x6d0] sm:$0xff] }
  0xa1   :  { %10523 = vmatprep.subr.bf16.mxu1 %v10522_v12  ;;  %10463 = vmatprep.subr.bf16.mxu0 %v10462_v21  ;;  %v10542_v9 = vpack.c.bf16 %v7879_v7, %v7875_v5  ;;  %v7878_v12 = vld [vmem:[%s15278_s3 + $0x5b0] sm:$0xff]  ;;  %v7884_v21 = vld [vmem:[%s15278_s3 + $0x5e0] sm:$0xff]  ;;  %v7917_v59 = vld [vmem:[%s15278_s3 + $0x6e8] sm:$0xff] }
  0xa2   :  { %v10544_v13 = vpack.c.bf16 %v7878_v12, %v7874_v11  ;;  %v10484_v23 = vpack.c.bf16 %v7884_v21, %v7880_v20  ;;  %v10498_v3 = vpack.c.bf16 %v7917_v59, %v7913_v43  ;;  %v7912_v5 = vld [vmem:[%s15278_s3 + $0x6c0] sm:$0xff]  ;;  %v7921_v11 = vld [vmem:[%s15278_s3 + $0x708] sm:$0xff]  ;;  %v7922_v21 = vld [vmem:[%s15278_s3 + $0x710] sm:$0xff] }
  0xa3   :  { %v7925_v12 = vld [vmem:[%s15278_s3 + $0x728] sm:$0xff]  ;;  %v843_v59 = vld [vmem:[%s15278_s3 + $0x38] sm:$0xff] }
  0xa4   :  { %10525 = vmatpush1.bf16.msra.mxu1 %v10524_v17  ;;  %10465 = vmatpush1.bf16.msra.mxu0 %v10464_v26  ;;  %v7883_v17 = vld [vmem:[%s15278_s3 + $0x5d8] sm:$0xff]  ;;  %v10502_v14 = vpack.c.bf16 %v7925_v12, %v7921_v11 }
  0xa5   :  { %10527 = vmatprep.subr.bf16.mxu1 %v10526_v25  ;;  %10467 = vmatprep.subr.bf16.mxu0 %v10466_v35  ;;  %v10546_v22 = vpack.c.bf16 %v7887_v19, %v7883_v17  ;;  %v7886_v25 = vld [vmem:[%s15278_s3 + $0x5f0] sm:$0xff]  ;;  %v7892_v35 = vld [vmem:[%s15278_s3 + $0x620] sm:$0xff] }
  0xa6   :  { %v10548_v26 = vpack.c.bf16 %v7886_v25, %v7882_v24  ;;  %v10488_v37 = vpack.c.bf16 %v7892_v35, %v7888_v34  ;;  %v7920_v17 = vld [vmem:[%s15278_s3 + $0x700] sm:$0xff]  ;;  %v7929_v24 = vld [vmem:[%s15278_s3 + $0x748] sm:$0xff]  ;;  %v7930_v35 = vld [vmem:[%s15278_s3 + $0x750] sm:$0xff] }
  0xa7   :  { %v7933_v25 = vld [vmem:[%s15278_s3 + $0x768] sm:$0xff] }
  0xa8   :  { %10529 = vmatpush1.bf16.msra.mxu1 %v10528_v31  ;;  %10469 = vmatpush1.bf16.msra.mxu0 %v10468_v40  ;;  %v7891_v31 = vld [vmem:[%s15278_s3 + $0x618] sm:$0xff]  ;;  %v10506_v27 = vpack.c.bf16 %v7933_v25, %v7929_v24 }
  0xa9   :  { %10531 = vmatprep.subr.bf16.mxu1 %v10530_v39  ;;  %10471 = vmatprep.subr.bf16.mxu0 %v10470_v49  ;;  %v10550_v36 = vpack.c.bf16 %v7895_v33, %v7891_v31  ;;  %v7894_v39 = vld [vmem:[%s15278_s3 + $0x630] sm:$0xff]  ;;  %v7900_v49 = vld [vmem:[%s15278_s3 + $0x660] sm:$0xff] }
  0xaa   :  { %v10552_v40 = vpack.c.bf16 %v7894_v39, %v7890_v38  ;;  %v10492_v51 = vpack.c.bf16 %v7900_v49, %v7896_v47  ;;  %v7928_v31 = vld [vmem:[%s15278_s3 + $0x740] sm:$0xff]  ;;  %v7937_v38 = vld [vmem:[%s15278_s3 + $0x788] sm:$0xff]  ;;  %v7938_v49 = vld [vmem:[%s15278_s3 + $0x790] sm:$0xff] }
  0xab   :  { %v7941_v39 = vld [vmem:[%s15278_s3 + $0x7a8] sm:$0xff] }
  0xac   :  { %10533 = vmatpush1.bf16.msra.mxu1 %v10532_v44  ;;  %10473 = vmatpush1.bf16.msra.mxu0 %v10472_v54  ;;  %v7899_v44 = vld [vmem:[%s15278_s3 + $0x658] sm:$0xff]  ;;  %v10510_v41 = vpack.c.bf16 %v7941_v39, %v7937_v38 }
  0xad   :  { %10535 = vmatprep.subr.bf16.mxu1 %v10534_v53  ;;  %10475 = vmatprep.subr.bf16.mxu0 %v10474_v30  ;;  %v10554_v50 = vpack.c.bf16 %v7903_v46, %v7899_v44  ;;  %v7902_v53 = vld [vmem:[%s15278_s3 + $0x670] sm:$0xff]  ;;  %v7908_v30 = vld [vmem:[%s15278_s3 + $0x6a0] sm:$0xff] }
  0xae   :  { %v10556_v54 = vpack.c.bf16 %v7902_v53, %v7898_v52  ;;  %v10496_v57 = vpack.c.bf16 %v7908_v30, %v7904_v62  ;;  %v7936_v44 = vld [vmem:[%s15278_s3 + $0x780] sm:$0xff]  ;;  %v7945_v52 = vld [vmem:[%s15278_s3 + $0x7c8] sm:$0xff]  ;;  %v7946_v30 = vld [vmem:[%s15278_s3 + $0x7d0] sm:$0xff] }
  0xaf   :  { %v7949_v53 = vld [vmem:[%s15278_s3 + $0x7e8] sm:$0xff] }
  0xb0   :  { %10537 = vmatpush1.bf16.msra.mxu1 %v10536_v58  ;;  %10477 = vmatpush1.bf16.msra.mxu0 %v10476_v28  ;;  %v7907_v58 = vld [vmem:[%s15278_s3 + $0x698] sm:$0xff]  ;;  %v10514_v55 = vpack.c.bf16 %v7949_v53, %v7945_v52 }
  0xb1   :  { %10539 = vmatprep.subr.bf16.mxu1 %v10538_v15  ;;  %10479 = vmatprep.subr.bf16.mxu0 %v10478_v6  ;;  %v10558_v48 = vpack.c.bf16 %v7911_v61, %v7907_v58  ;;  %v7910_v15 = vld [vmem:[%s15278_s3 + $0x6b0] sm:$0xff]  ;;  %v7916_v6 = vld [vmem:[%s15278_s3 + $0x6e0] sm:$0xff] }
  0xb2   :  { %v10560_v28 = vpack.c.bf16 %v7910_v15, %v7906_v2  ;;  %v10500_v8 = vpack.c.bf16 %v7916_v6, %v7912_v5  ;;  %v7944_v58 = vld [vmem:[%s15278_s3 + $0x7c0] sm:$0xff]  ;;  %v837_v2 = vld [vmem:[%s15278_s3 + $0x8] sm:$0xff] }
  0xb3   :  { %v841_v15 = vld [vmem:[%s15278_s3 + $0x28] sm:$0xff] }
  0xb4   :  { %10541 = vmatpush1.bf16.msra.mxu1 %v10540_v1  ;;  %10481 = vmatpush1.bf16.msra.mxu0 %v10480_v10  ;;  %v7915_v1 = vld [vmem:[%s15278_s3 + $0x6d8] sm:$0xff]  ;;  %v10582_v43 = vpack.c.bf16 %v841_v15, %v837_v2 }
  0xb5   :  { %10543 = vmatprep.subr.bf16.mxu1 %v10542_v9  ;;  %10483 = vmatprep.subr.bf16.mxu0 %v10482_v18  ;;  %v10562_v7 = vpack.c.bf16 %v7919_v4, %v7915_v1  ;;  %v7918_v9 = vld [vmem:[%s15278_s3 + $0x6f0] sm:$0xff]  ;;  %v7924_v18 = vld [vmem:[%s15278_s3 + $0x720] sm:$0xff] }
  0xb6   :  { %v10564_v10 = vpack.c.bf16 %v7918_v9, %v7914_v0  ;;  %v10504_v20 = vpack.c.bf16 %v7924_v18, %v7920_v17 }
  0xb8   :  { %10545 = vmatpush1.bf16.msra.mxu1 %v10544_v13  ;;  %10485 = vmatpush1.bf16.msra.mxu0 %v10484_v23  ;;  %v7923_v13 = vld [vmem:[%s15278_s3 + $0x718] sm:$0xff] }
  0xb9   :  { %10547 = vmatprep.subr.bf16.mxu1 %v10546_v22  ;;  %10487 = vmatprep.subr.bf16.mxu0 %v10486_v32  ;;  %v10566_v19 = vpack.c.bf16 %v7927_v16, %v7923_v13  ;;  %v7926_v22 = vld [vmem:[%s15278_s3 + $0x730] sm:$0xff]  ;;  %v7932_v32 = vld [vmem:[%s15278_s3 + $0x760] sm:$0xff] }
  0xba   :  { %v10568_v23 = vpack.c.bf16 %v7926_v22, %v7922_v21  ;;  %v10508_v34 = vpack.c.bf16 %v7932_v32, %v7928_v31  ;;  %v12154_v22 = vld [vmem:[%s15277_s2] sm:$0xf] }
  0xbc   :  { %10549 = vmatpush1.bf16.msra.mxu1 %v10548_v26  ;;  %10489 = vmatpush1.bf16.msra.mxu0 %v10488_v37  ;;  %v7931_v26 = vld [vmem:[%s15278_s3 + $0x758] sm:$0xff] }
  0xbd   :  { %10551 = vmatprep.subr.bf16.mxu1 %v10550_v36  ;;  %10491 = vmatprep.subr.bf16.mxu0 %v10490_v45  ;;  %v10570_v33 = vpack.c.bf16 %v7935_v29, %v7931_v26  ;;  %v7934_v36 = vld [vmem:[%s15278_s3 + $0x770] sm:$0xff]  ;;  %v7940_v45 = vld [vmem:[%s15278_s3 + $0x7a0] sm:$0xff] }
  0xbe   :  { %v10572_v37 = vpack.c.bf16 %v7934_v36, %v7930_v35  ;;  %v10512_v47 = vpack.c.bf16 %v7940_v45, %v7936_v44 }
  0xc0   :  { %10553 = vmatpush1.bf16.msra.mxu1 %v10552_v40  ;;  %10493 = vmatpush1.bf16.msra.mxu0 %v10492_v51  ;;  %v7939_v40 = vld [vmem:[%s15278_s3 + $0x798] sm:$0xff] }
  0xc1   :  { %10555 = vmatprep.subr.bf16.mxu1 %v10554_v50  ;;  %10495 = vmatprep.subr.bf16.mxu0 %v10494_v60  ;;  %v10574_v46 = vpack.c.bf16 %v7943_v42, %v7939_v40  ;;  %v7942_v50 = vld [vmem:[%s15278_s3 + $0x7b0] sm:$0xff]  ;;  %v7948_v60 = vld [vmem:[%s15278_s3 + $0x7e0] sm:$0xff] }
  0xc2   :  { %v10576_v51 = vpack.c.bf16 %v7942_v50, %v7938_v49  ;;  %v10516_v62 = vpack.c.bf16 %v7948_v60, %v7944_v58 }
  0xc4   :  { %10557 = vmatpush1.bf16.msra.mxu1 %v10556_v54  ;;  %10497 = vmatpush1.bf16.msra.mxu0 %v10496_v57  ;;  %v7947_v54 = vld [vmem:[%s15278_s3 + $0x7d8] sm:$0xff] }
  0xc5   :  { %10559 = vmatprep.subr.bf16.mxu1 %v10558_v48  ;;  %10499 = vmatprep.subr.bf16.mxu0 %v10498_v3  ;;  %v10578_v61 = vpack.c.bf16 %v7951_v56, %v7947_v54  ;;  %v7950_v48 = vld [vmem:[%s15278_s3 + $0x7f0] sm:$0xff] }
  0xc6   :  { %v10580_v57 = vpack.c.bf16 %v7950_v48, %v7946_v30 }
  0xc8   :  { %10561 = vmatpush1.bf16.msra.mxu1 %v10560_v28  ;;  %10501 = vmatpush1.bf16.msra.mxu0 %v10500_v8  ;;  %v839_v28 = vld [vmem:[%s15278_s3 + $0x18] sm:$0xff] }
  0xc9   :  { %10563 = vmatprep.subr.bf16.mxu1 %v10562_v7  ;;  %10503 = vmatprep.subr.bf16.mxu0 %v10502_v14  ;;  %v10646_v1 = vpack.c.bf16 %v843_v59, %v839_v28  ;;  %v218_v14 = vlaneseq }
  0xcb   :  { %v12144_v18 = vshrl.u32 %v218_v14, 7 }
  0xcc   :  { %10565 = vmatpush1.bf16.msra.mxu1 %v10564_v10  ;;  %10505 = vmatpush1.bf16.msra.mxu0 %v10504_v20 }
  0xcd   :  { %10567 = vmatprep.subr.bf16.mxu1 %v10566_v19  ;;  %10507 = vmatprep.subr.bf16.mxu0 %v10506_v27  ;;  %v220_v21 = vsub.s32 0, %v12144_v18 }
  0xcf   :  { %v221_v24 = vrot.slane %v12154_v22, %v220_v21 }
  0xd0   :  { %10569 = vmatpush1.bf16.msra.mxu1 %v10568_v23  ;;  %10509 = vmatpush1.bf16.msra.mxu0 %v10508_v34  ;;  %v224_v23 = vsub.s32 1, %v12144_v18 }
  0xd1   :  { %10571 = vmatprep.subr.bf16.mxu1 %v10570_v33  ;;  %10511 = vmatprep.subr.bf16.mxu0 %v10510_v41 }
  0xd2   :  { %v225_v25 = vrot.slane %v12154_v22, %v224_v23 }
  0xd4   :  { %10573 = vmatpush1.bf16.msra.mxu1 %v10572_v37  ;;  %10513 = vmatpush1.bf16.msra.mxu0 %v10512_v47 }
  0xd5   :  { %10575 = vmatprep.subr.bf16.mxu1 %v10574_v46  ;;  %10515 = vmatprep.subr.bf16.mxu0 %v10514_v55 }
  0xd8   :  { %10577 = vmatpush1.bf16.msra.mxu1 %v10576_v51  ;;  %10517 = vmatpush1.bf16.msra.mxu0 %v10516_v62 }
  0xd9   :  { %10579 = vmatprep.subr.bf16.mxu1 %v10578_v61  ;;  %10583 = vmatprep.subr.bf16.mxu0 %v10582_v43 }
  0xdc   :  { %10581 = vmatpush1.bf16.msra.mxu1 %v10580_v57 }
  0xdd   :  { %10647 = vmatprep.subr.bf16.mxu1 %v10646_v1 }
  0xf4   :  { %v442_v3 = vpop.f32.mrb[0].mxu1 }
  0xf5   :  { %v444_v4 = vpop.f32.mrb[1].mxu1 }
 0x103   :  { %v448_v5 = vpop.f32.mrb[2].mxu1 }
 0x104   :  { %v450_v6 = vpop.f32.mrb[3].mxu1 }
 0x107   :  { %v454_v7 = vpop.f32.mrb[4].mxu1 }
 0x108   :  { %v456_v8 = vpop.f32.mrb[5].mxu1 }
 0x10b   :  { %v460_v0 = vpop.f32.mrb[6].mxu1 }
 0x10c   :  { %v462_v9 = vpop.f32.mrb[7].mxu1 }
 0x10f   :  { %v466_v10 = vpop.f32.mrb[8].mxu1 }
 0x110   :  { %v468_v11 = vpop.f32.mrb[9].mxu1 }
 0x113   :  { %v472_v12 = vpop.f32.mrb[10].mxu1 }
 0x114   :  { %v474_v13 = vpop.f32.mrb[11].mxu1 }
 0x117   :  { %v478_v16 = vpop.f32.mrb[12].mxu1 }
 0x118   :  { %v480_v17 = vpop.f32.mrb[13].mxu1 }
 0x11b   :  { %v12146_v19 = vpop.f32.mrb[14].mxu1 }
 0x11c   :  { %v12148_v20 = vpop.f32.mrb[15].mxu1 }
 0x12a   :  { %v329_v26 = vpop.f32.mrb[0].mxu0 }
 0x12b   :  { %v330_v27 = vadd.f32 %v329_v26, %v221_v24  ;;  %v331_v29 = vpop.f32.mrb[1].mxu0 }
 0x12c   :  { %v332_v31 = vadd.f32 %v331_v29, %v225_v25 }
 0x12d   :  { %v443_v32 = vadd.f32 %v442_v3, %v330_v27 }
 0x12e   :  { %v445_v33 = vadd.f32 %v444_v4, %v332_v31  ;;  %v335_v34 = vpop.f32.mrb[2].mxu0 }
 0x12f   :  { %v336_v35 = vadd.f32 %v335_v34, %v221_v24  ;;  %v337_v36 = vpop.f32.mrb[3].mxu0  ;;  %v715_v49 = vmax.f32 %v443_v32, 0.0 }
 0x130   :  { %v338_v37 = vadd.f32 %v337_v36, %v225_v25  ;;  %v716_v53 = vmax.f32 %v445_v33, 0.0 }
 0x131   :  { %v449_v38 = vadd.f32 %v448_v5, %v336_v35 }
 0x132   :  { %v451_v39 = vadd.f32 %v450_v6, %v338_v37  ;;  %v341_v40 = vpop.f32.mrb[4].mxu0 }
 0x133   :  { %v342_v41 = vadd.f32 %v341_v40, %v221_v24  ;;  %v343_v42 = vpop.f32.mrb[5].mxu0  ;;  %v719_v30 = vmax.f32 %v449_v38, 0.0 }
 0x134   :  { %v344_v44 = vadd.f32 %v343_v42, %v225_v25  ;;  %v720_v15 = vmax.f32 %v451_v39, 0.0 }
 0x135   :  { %v455_v45 = vadd.f32 %v454_v7, %v342_v41 }
 0x136   :  { %v457_v46 = vadd.f32 %v456_v8, %v344_v44  ;;  %v347_v47 = vpop.f32.mrb[6].mxu0 }
 0x137   :  { %v723_v50 = vmax.f32 %v455_v45, 0.0  ;;  %v348_v51 = vadd.f32 %v347_v47, %v221_v24  ;;  %v349_v52 = vpop.f32.mrb[7].mxu0 }
 0x138   :  { %v724_v54 = vmax.f32 %v457_v46, 0.0  ;;  %v350_v55 = vadd.f32 %v349_v52, %v225_v25 }
 0x139   :  { %v12163_v56 = vmax.f32 %v715_v49, %v723_v50  ;;  %v461_v58 = vadd.f32 %v460_v0, %v348_v51 }
 0x13a   :  { %v12165_v60 = vmax.f32 %v716_v53, %v724_v54  ;;  %v463_v61 = vadd.f32 %v462_v9, %v350_v55  ;;  %v353_v62 = vpop.f32.mrb[8].mxu0 }
 0x13b   :  { %v727_v48 = vmax.f32 %v461_v58, 0.0  ;;  %v354_v57 = vadd.f32 %v353_v62, %v221_v24  ;;  %v355_v2 = vpop.f32.mrb[9].mxu0 }
 0x13c   :  { %v728_v28 = vmax.f32 %v463_v61, 0.0  ;;  %v356_v43 = vadd.f32 %v355_v2, %v225_v25 }
 0x13d   :  { %v12167_v59 = vmax.f32 %v719_v30, %v727_v48  ;;  %v467_v1 = vadd.f32 %v466_v10, %v354_v57 }
 0x13e   :  { %v12169_v3 = vmax.f32 %v720_v15, %v728_v28  ;;  %v469_v4 = vadd.f32 %v468_v11, %v356_v43  ;;  %v359_v5 = vpop.f32.mrb[10].mxu0 }
 0x13f   :  { %v360_v6 = vadd.f32 %v359_v5, %v221_v24  ;;  %v361_v7 = vpop.f32.mrb[11].mxu0  ;;  %v731_v34 = vmax.f32 %v467_v1, 0.0 }
 0x140   :  { %v362_v8 = vadd.f32 %v361_v7, %v225_v25  ;;  %v732_v37 = vmax.f32 %v469_v4, 0.0 }
 0x141   :  { %v473_v0 = vadd.f32 %v472_v12, %v360_v6 }
 0x142   :  { %v475_v9 = vadd.f32 %v474_v13, %v362_v8  ;;  %v365_v14 = vpop.f32.mrb[12].mxu0 }
 0x143   :  { %v366_v26 = vadd.f32 %v365_v14, %v221_v24  ;;  %v367_v27 = vpop.f32.mrb[13].mxu0  ;;  %v735_v41 = vmax.f32 %v473_v0, 0.0 }
 0x144   :  { %v368_v29 = vadd.f32 %v367_v27, %v225_v25 }
 0x145   :  { %v479_v31 = vadd.f32 %v478_v16, %v366_v26  ;;  %v736_v16 = vmax.f32 %v475_v9, 0.0 }
 0x146   :  { %v481_v32 = vadd.f32 %v480_v17, %v368_v29  ;;  %v371_v33 = vpop.f32.mrb[14].mxu0 }
 0x147   :  { %v739_v35 = vmax.f32 %v479_v31, 0.0  ;;  %v372_v36 = vadd.f32 %v371_v33, %v221_v24  ;;  %v373_v10 = vpop.f32.mrb[15].mxu0  ;;  %v228_v24 = vsub.s32 2, %v12144_v18 }
 0x148   :  { %v740_v38 = vmax.f32 %v481_v32, 0.0  ;;  %v374_v11 = vadd.f32 %v373_v10, %v225_v25  ;;  %v232_v25 = vsub.s32 3, %v12144_v18 }
 0x149   :  { %v12171_v39 = vmax.f32 %v731_v34, %v739_v35  ;;  %v485_v40 = vadd.f32 %v12146_v19, %v372_v36  ;;  %v12186_v19 = vrot.slane %v12154_v22, %v228_v24 }
 0x14a   :  { %v12174_v12 = vmax.f32 %v732_v37, %v740_v38  ;;  %v487_v13 = vadd.f32 %v12148_v20, %v374_v11  ;;  %v12191_v20 = vrot.slane %v12154_v22, %v232_v25  ;;  %v12228_v38 = vld [vmem:[%s15278_s3 + $0x48] sm:$0xff] }
 0x14b   :  { %v743_v42 = vmax.f32 %v485_v40, 0.0 }
 0x14c   :  { %v744_v17 = vmax.f32 %v487_v13, 0.0 }
 0x14d   :  { %v12177_v44 = vmax.f32 %v735_v41, %v743_v42  ;;  %v12238_v41 = vld [vmem:[%s15278_s3 + $0x68] sm:$0xff]  ;;  %v12243_v42 = vld [vmem:[%s15278_s3 + $0x58] sm:$0xff] }
 0x14e   :  { %v12179_v45 = vmax.f32 %v736_v16, %v744_v17  ;;  %v12248_v16 = vld [vmem:[%s15278_s3 + $0x78] sm:$0xff] }
 0x154   :  { %v668_v46 = vpop.f32.mrb[16].mxu1 }
 0x155   :  { %v670_v47 = vpop.f32.mrb[17].mxu1  ;;  %v10894_v51 = vadd.f32 %v668_v46, %v12186_v19 }
 0x156   :  { %v10895_v52 = vadd.f32 %v670_v47, %v12191_v20 }
 0x157   :  { %v717_v61 = vmax.f32 %v10894_v51, 0.0 }
 0x158   :  { %v674_v49 = vpop.f32.mrb[18].mxu1  ;;  %v718_v48 = vmax.f32 %v10895_v52, 0.0 }
 0x159   :  { %v676_v50 = vpop.f32.mrb[19].mxu1  ;;  %v10896_v62 = vadd.f32 %v674_v49, %v12186_v19 }
 0x15a   :  { %v10897_v22 = vadd.f32 %v676_v50, %v12191_v20 }
 0x15b   :  { %v721_v5 = vmax.f32 %v10896_v62, 0.0  ;;  %v12274_v62 = vld [vmem:[%s15278_s3 + $0x60] sm:$0xff] }
 0x15c   :  { %v680_v53 = vpop.f32.mrb[20].mxu1  ;;  %v722_v8 = vmax.f32 %v10897_v22, 0.0 }
 0x15d   :  { %v10898_v54 = vadd.f32 %v680_v53, %v12186_v19  ;;  %v682_v55 = vpop.f32.mrb[21].mxu1 }
 0x15e   :  { %v10899_v58 = vadd.f32 %v682_v55, %v12191_v20  ;;  %v10586_v55 = vpack.c.bf16 %v12238_v41, %v12228_v38  ;;  %v852_v38 = vld [vmem:[%s15278_s3 + $0x80] sm:$0xff] }
 0x15f   :  { %v725_v30 = vmax.f32 %v10898_v54, 0.0 }
 0x160   :  { %v726_v57 = vmax.f32 %v10899_v58, 0.0  ;;  %v686_v2 = vpop.f32.mrb[22].mxu1  ;;  %v10650_v58 = vpack.c.bf16 %v12248_v16, %v12243_v42 }
 0x161   :  { %v749_v15 = vmax.f32 %v717_v61, %v725_v30  ;;  %v10900_v28 = vadd.f32 %v686_v2, %v12186_v19  ;;  %v688_v43 = vpop.f32.mrb[23].mxu1  ;;  %v12269_v61 = vld [vmem:[%s15278_s3 + $0x40] sm:$0xff] }
 0x162   :  { %v750_v1 = vmax.f32 %v718_v48, %v726_v57  ;;  %v10901_v4 = vadd.f32 %v688_v43, %v12191_v20 }
 0x163   :  { %v763_v6 = vmax.f32 %v12163_v56, %v749_v15  ;;  %v729_v7 = vmax.f32 %v10900_v28, 0.0  ;;  %v12208_v56 = vld [vmem:[%s15278_s3] sm:$0xff] }
 0x164   :  { %v764_v0 = vmax.f32 %v12165_v60, %v750_v1  ;;  %v730_v9 = vmax.f32 %v10901_v4, 0.0  ;;  %v692_v14 = vpop.f32.mrb[24].mxu1  ;;  %v12213_v60 = vld [vmem:[%s15278_s3 + $0x20] sm:$0xff] }
 0x165   :  { %v792_v26 = vrot.slane %v763_v6, 7  ;;  %v753_v27 = vmax.f32 %v721_v5, %v729_v7  ;;  %v694_v29 = vpop.f32.mrb[25].mxu1  ;;  %v10902_v40 = vadd.f32 %v692_v14, %v12186_v19  ;;  %v10584_v50 = vpack.c.bf16 %v12213_v60, %v12208_v56  ;;  %v850_v14 = vld [vmem:[%s15278_s3 + $0x70] sm:$0xff] }
 0x166   :  { %v793_v31 = vrot.slane %v764_v0, 7  ;;  %v754_v32 = vmax.f32 %v722_v8, %v730_v9  ;;  %v10903_v13 = vadd.f32 %v694_v29, %v12191_v20  ;;  %v10588_v0 = vpack.c.bf16 %v12274_v62, %v12269_v61  ;;  %v846_v9 = vld [vmem:[%s15278_s3 + $0x50] sm:$0xff] }
 0x167   :  { %816 = vst [vmem:[#allocation2] sm:$0xfe] %v792_v26  ;;  %v765_v33 = vmax.f32 %v12167_v59, %v753_v27  ;;  %v12218_v59 = vld [vmem:[%s15278_s3 + $0x10] sm:$0xff]  ;;  %v733_v30 = vmax.f32 %v10902_v40, 0.0  ;;  %v856_v40 = vld [vmem:[%s15278_s3 + $0xa0] sm:$0xff]  ;;  %v10652_v16 = vpack.c.bf16 %v850_v14, %v846_v9 }
 0x168   :  { %817 = vst [vmem:[#allocation2 + $0x8] sm:$0xfe] %v793_v31  ;;  %v766_v34 = vmax.f32 %v12169_v3, %v754_v32  ;;  %v698_v35 = vpop.f32.mrb[26].mxu1  ;;  %v12223_v3 = vld [vmem:[%s15278_s3 + $0x30] sm:$0xff]  ;;  %v734_v48 = vmax.f32 %v10903_v13, 0.0  ;;  %v853_v32 = vld [vmem:[%s15278_s3 + $0x88] sm:$0xff] }
 0x169   :  { %v794_v36 = vrot.slane %v765_v33, 7  ;;  %v700_v10 = vpop.f32.mrb[27].mxu1  ;;  %v10648_v51 = vpack.c.bf16 %v12223_v3, %v12218_v59  ;;  %v10904_v52 = vadd.f32 %v698_v35, %v12186_v19  ;;  %v857_v33 = vld [vmem:[%s15278_s3 + $0xa8] sm:$0xff]  ;;  %v854_v13 = vld [vmem:[%s15278_s3 + $0x90] sm:$0xff] }
 0x16a   :  { %v796_v37 = vrot.slane %v766_v34, 7  ;;  %v10905_v15 = vadd.f32 %v700_v10, %v12191_v20  ;;  %v859_v10 = vld [vmem:[%s15278_s3 + $0xb8] sm:$0xff]  ;;  %v12377_v14 = vld [vmem:[%s15278_s3 + $0x110] sm:$0xff] }
 0x16b   :  { %v12231_v11 = vsel %vm791_vm1, %v792_v26, %v794_v36  ;;  %820 = vst [vmem:[#allocation2 + $0x20] sm:$0x1] %v794_v36  ;;  %v737_v26 = vmax.f32 %v10904_v52, 0.0  ;;  %v855_v36 = vld [vmem:[%s15278_s3 + $0x98] sm:$0xff] }
 0x16c   :  { %818 = vst [vmem:[#allocation2 + $0x10] sm:$0xff] %v12231_v11  ;;  %v12252_v17 = vsel %vm791_vm1, %v793_v31, %v796_v37  ;;  %821 = vst [vmem:[#allocation2 + $0x28] sm:$0x1] %v796_v37  ;;  %v704_v46 = vpop.f32.mrb[28].mxu1  ;;  %v986_v8 = vrot.slane %v12231_v11, 1  ;;  %v738_v37 = vmax.f32 %v10905_v15, 0.0  ;;  %v10654_v61 = vpack.c.bf16 %v859_v10, %v855_v36 }
 0x16d   :  { %819 = vst [vmem:[#allocation2 + $0x18] sm:$0xff] %v12252_v17  ;;  %v10906_v47 = vadd.f32 %v704_v46, %v12186_v19  ;;  %v706_v49 = vpop.f32.mrb[29].mxu1  ;;  %v989_v4 = vrot.slane %v12252_v17, 1  ;;  %v10590_v46 = vpack.c.bf16 %v857_v33, %v853_v32  ;;  %v869_v15 = vld [vmem:[%s15278_s3 + $0x108] sm:$0xff]  ;;  %v12397_v32 = vld [vmem:[%s15278_s3 + $0x158] sm:$0xff]  ;;  %v12417_v36 = vld [vmem:[%s15278_s3 + $0x150] sm:$0xff] }
 0x16e   :  { %v10907_v53 = vadd.f32 %v706_v49, %v12191_v20  ;;  %v964_v54 = vld [vmem:[#allocation2] sm:$0xfe]  ;;  %v865_v49 = vld [vmem:[%s15278_s3 + $0xe8] sm:$0xff]  ;;  %v12402_v33 = vld [vmem:[%s15278_s3 + $0x178] sm:$0xff] }
 0x16f   :  { %v741_v22 = vmax.f32 %v10906_v47, 0.0  ;;  %v965_v57 = vld [vmem:[#allocation2 + $0x8] sm:$0xfe]  ;;  %v985_v2 = vrot.slane %v964_v54, 1 }
 0x170   :  { %v742_v28 = vmax.f32 %v10907_v53, 0.0  ;;  %v710_v43 = vpop.f32.mrb[30].mxu1  ;;  %v988_v1 = vrot.slane %v965_v57, 1  ;;  %v861_v47 = vld [vmem:[%s15278_s3 + $0xc8] sm:$0xff] }
 0x171   :  { %v757_v5 = vmax.f32 %v733_v30, %v741_v22  ;;  %v10908_v6 = vadd.f32 %v710_v43, %v12186_v19  ;;  %v712_v7 = vpop.f32.mrb[31].mxu1  ;;  %v987_v56 = vsel %vm984_vm2, %v985_v2, %v986_v8  ;;  %v867_v30 = vld [vmem:[%s15278_s3 + $0xf8] sm:$0xff]  ;;  %v866_v22 = vld [vmem:[%s15278_s3 + $0xf0] sm:$0xff] }
 0x172   :  { %v758_v27 = vmax.f32 %v734_v48, %v742_v28  ;;  %v10909_v29 = vadd.f32 %v712_v7, %v12191_v20  ;;  %v990_v19 = vsel %vm984_vm2, %v988_v1, %v989_v4  ;;  %v966_v31 = vld [vmem:[#allocation2 + $0x20] sm:$0x1]  ;;  %v862_v48 = vld [vmem:[%s15278_s3 + $0xd0] sm:$0xff]  ;;  %v873_v28 = vld [vmem:[%s15278_s3 + $0x128] sm:$0xff] }
 0x173   :  { %v767_v34 = vmax.f32 %v12171_v39, %v757_v5  ;;  %v745_v35 = vmax.f32 %v10908_v6, 0.0  ;;  %1206 = vmatprep.mubr.f32.mxu0 %v990_v19  ;;  %1295 = vmatprep.mubr.f32.mxu1 %v990_v19  ;;  %v967_v60 = vld [vmem:[#allocation2 + $0x28] sm:$0x1]  ;;  %v991_v20 = vrot.slane %v966_v31, 1  ;;  %v871_v43 = vld [vmem:[%s15278_s3 + $0x118] sm:$0xff]  ;;  %v10660_v31 = vpack.c.bf16 %v866_v22, %v862_v48 }
 0x174   :  { %v768_v59 = vmax.f32 %v12174_v12, %v758_v27  ;;  %v746_v3 = vmax.f32 %v10909_v29, 0.0  ;;  %1207 = vmatmul.mubr.f32.vlgmr.msra.gmra.mrb[16].mxu0 %v987_v56  ;;  %1296 = vmatmul.mubr.f32.vlgmr.msra.gmra.mrb[32].mxu1 %v987_v56  ;;  %v993_v39 = vrot.slane %v967_v60, 1  ;;  %v858_v12 = vld [vmem:[%s15278_s3 + $0xb0] sm:$0xff]  ;;  %v875_v6 = vld [vmem:[%s15278_s3 + $0x138] sm:$0xff]  ;;  %v12387_v27 = vld [vmem:[%s15278_s3 + $0x148] sm:$0xff] }
 0x175   :  { %v798_v41 = vrot.slane %v767_v34, 7  ;;  %v761_v42 = vmax.f32 %v737_v26, %v745_v35  ;;  %10585 = vmatpush1.bf16.msra.mxu0 %v10584_v50  ;;  %10649 = vmatpush1.bf16.msra.mxu1 %v10648_v51  ;;  %v863_v50 = vld [vmem:[%s15278_s3 + $0xd8] sm:$0xff]  ;;  %v992_v62 = vsel %vm984_vm2, %v986_v8, %v991_v20  ;;  %v10656_v2 = vpack.c.bf16 %v858_v12, %v854_v13  ;;  %v12363_v8 = vld [vmem:[%s15278_s3 + $0x100] sm:$0xff]  ;;  %v12382_v26 = vld [vmem:[%s15278_s3 + $0x130] sm:$0xff] }
 0x176   :  { %v799_v52 = vrot.slane %v768_v59, 7  ;;  %v762_v53 = vmax.f32 %v738_v37, %v746_v3  ;;  %v994_v54 = vsel %vm984_vm2, %v989_v4, %v993_v39  ;;  %10587 = vmatprep.subr.bf16.mxu0 %v10586_v55  ;;  %10651 = vmatprep.subr.bf16.mxu1 %v10650_v58  ;;  %v860_v58 = vld [vmem:[%s15278_s3 + $0xc0] sm:$0xff]  ;;  %v10594_v4 = vpack.c.bf16 %v865_v49, %v861_v47  ;;  %v12392_v29 = vld [vmem:[%s15278_s3 + $0x168] sm:$0xff]  ;;  %v12422_v59 = vld [vmem:[%s15278_s3 + $0x170] sm:$0xff] }
 0x177   :  { %822 = vst [vmem:[#allocation2 + $0x30] sm:$0xfe] %v798_v41  ;;  %v769_v51 = vmax.f32 %v12177_v44, %v761_v42  ;;  %1212 = vmatprep.mubr.f32.mxu0 %v994_v54  ;;  %1301 = vmatprep.mubr.f32.mxu1 %v994_v54  ;;  %v864_v44 = vld [vmem:[%s15278_s3 + $0xe0] sm:$0xff]  ;;  %v10658_v5 = vpack.c.bf16 %v867_v30, %v863_v50  ;;  %v12424_v3 = vld [vmem:[#allocation2 + $0x8] sm:$0xfc]  ;;  %v891_v30 = vld [vmem:[%s15278_s3 + $0x1b8] sm:$0xff] }
 0x178   :  { %823 = vst [vmem:[#allocation2 + $0x38] sm:$0xfe] %v799_v52  ;;  %v770_v55 = vmax.f32 %v12179_v45, %v762_v53  ;;  %1213 = vmatmul.mubr.f32.gmra.mrb[18].mxu0 %v992_v62  ;;  %1302 = vmatmul.mubr.f32.gmra.mrb[34].mxu1 %v992_v62  ;;  %v10592_v45 = vpack.c.bf16 %v856_v40, %v852_v38  ;;  %v12407_v34 = vld [vmem:[%s15278_s3 + $0x140] sm:$0xff]  ;;  %v12431_v12 = vld [vmem:[#allocation2 + $0x28] sm:$0x3]  ;;  %v12461_v62 = vld [vmem:[%s15278_s3 + $0x198] sm:$0xff] }
 0x179   :  { %v800_v57 = vrot.slane %v769_v51, 7  ;;  %10589 = vmatpush1.bf16.msra.mxu0 %v10588_v0  ;;  %10653 = vmatpush1.bf16.msra.mxu1 %v10652_v16  ;;  %v12368_v0 = vld [vmem:[%s15278_s3 + $0x120] sm:$0xff]  ;;  %v10596_v19 = vpack.c.bf16 %v864_v44, %v860_v58  ;;  %v10598_v35 = vpack.c.bf16 %v873_v28, %v869_v15  ;;  %v10662_v56 = vpack.c.bf16 %v875_v6, %v871_v43  ;;  %v12451_v50 = vld [vmem:[%s15278_s3 + $0x188] sm:$0xff] }
 0x17a   :  { %v802_v1 = vrot.slane %v770_v55, 7  ;;  %10591 = vmatprep.subr.bf16.mxu0 %v10590_v46  ;;  %10655 = vmatprep.subr.bf16.mxu1 %v10654_v61  ;;  %v12412_v20 = vld [vmem:[%s15278_s3 + $0x160] sm:$0xff]  ;;  %v10600_v13 = vpack.c.bf16 %v12368_v0, %v12363_v8  ;;  %v10664_v42 = vpack.c.bf16 %v12382_v26, %v12377_v14  ;;  %v10602_v16 = vpack.c.bf16 %v12392_v29, %v12387_v27  ;;  %v12456_v51 = vld [vmem:[%s15278_s3 + $0x1a8] sm:$0xff]  ;;  %v895_v26 = vld [vmem:[%s15278_s3 + $0x1d8] sm:$0xff] }
 0x17b   :  { %v12358_v7 = vsel %vm791_vm1, %v798_v41, %v800_v57  ;;  %826 = vst [vmem:[#allocation2 + $0x50] sm:$0x1] %v800_v57  ;;  %v12426_v39 = vld [vmem:[#allocation2] sm:$0xfc]  ;;  %v1519_v46 = vrot.slane %v12252_v17, 2  ;;  %v10666_v53 = vpack.c.bf16 %v12402_v33, %v12397_v32  ;;  %v10604_v61 = vpack.c.bf16 %v12412_v20, %v12407_v34  ;;  %v893_v0 = vld [vmem:[%s15278_s3 + $0x1c8] sm:$0xff] }
 0x17c   :  { %824 = vst [vmem:[#allocation2 + $0x40] sm:$0xff] %v12358_v7  ;;  %v12372_v9 = vsel %vm791_vm1, %v799_v52, %v802_v1  ;;  %827 = vst [vmem:[#allocation2 + $0x58] sm:$0x1] %v802_v1  ;;  %v996_v41 = vrot.slane %v12358_v7, 1  ;;  %v12439_v47 = vld [vmem:[#allocation2 + $0x20] sm:$0x3]  ;;  %v10668_v57 = vpack.c.bf16 %v12422_v59, %v12417_v36  ;;  %v10606_v36 = vpack.c.bf16 %v12456_v51, %v12451_v50 }
 0x17d   :  { %10593 = vmatpush1.bf16.msra.mxu0 %v10592_v45  ;;  %10657 = vmatpush1.bf16.msra.mxu1 %v10656_v2  ;;  %v999_v40 = vrot.slane %v12372_v9, 1  ;;  %v1516_v45 = vrot.slane %v12231_v11, 2  ;;  %v884_v28 = vld [vmem:[%s15278_s3 + $0x180] sm:$0xff]  ;;  %v886_v1 = vld [vmem:[%s15278_s3 + $0x190] sm:$0xff]  ;;  %v1515_v6 = vrot.slane %v12426_v39, 2  ;;  %v1523_v8 = vrot.slane %v12431_v12, 2 }
 0x17e   :  { %10595 = vmatprep.subr.bf16.mxu0 %v10594_v4  ;;  %10659 = vmatprep.subr.bf16.mxu1 %v10658_v5  ;;  %v968_v60 = vld [vmem:[#allocation2 + $0x30] sm:$0xfe]  ;;  %v888_v43 = vld [vmem:[%s15278_s3 + $0x1a0] sm:$0xff]  ;;  %v1518_v5 = vrot.slane %v12424_v3, 2  ;;  %v897_v14 = vld [vmem:[%s15278_s3 + $0x1e8] sm:$0xff]  ;;  %v1521_v27 = vrot.slane %v12439_v47, 2 }
 0x17f   :  { %v969_v10 = vld [vmem:[#allocation2 + $0x38] sm:$0xfe]  ;;  %v995_v37 = vrot.slane %v968_v60, 1  ;;  %v12441_v49 = vld [vmem:[#allocation2 + $0x30] sm:$0xfc]  ;;  %v829_v20 = vld [vmem:[#allocation2 + $0x8] sm:$0xff] }
 0x180   :  { %v998_v38 = vrot.slane %v969_v10, 1  ;;  %v12466_v55 = vld [vmem:[#allocation2 + $0x38] sm:$0xfc]  ;;  %v890_v4 = vld [vmem:[%s15278_s3 + $0x1b0] sm:$0xff]  ;;  %v1525_v34 = vrot.slane %v12441_v49, 2  ;;  %v10670_v10 = vpack.c.bf16 %v891_v30, %v12461_v62  ;;  %v896_v59 = vld [vmem:[%s15278_s3 + $0x1e0] sm:$0xff]  ;;  %v1522_v12 = vsel %vm1514_vm3, %v1516_v45, %v1521_v27 }
 0x181   :  { %10597 = vmatpush1.bf16.msra.mxu0 %v10596_v19  ;;  %10661 = vmatpush1.bf16.msra.mxu1 %v10660_v31  ;;  %v997_v44 = vsel %vm984_vm2, %v995_v37, %v996_v41  ;;  %v1528_v29 = vrot.slane %v12466_v55, 2  ;;  %v1529_v19 = vrot.slane %v12372_v9, 2  ;;  %v1526_v31 = vrot.slane %v12358_v7, 2  ;;  %v899_v33 = vld [vmem:[%s15278_s3 + $0x1f8] sm:$0xff]  ;;  %v892_v37 = vld [vmem:[%s15278_s3 + $0x1c0] sm:$0xff]  ;;  %v902_v62 = vld [vmem:[%s15278_s3 + $0x210] sm:$0xff] }
 0x182   :  { %v1000_v52 = vsel %vm984_vm2, %v998_v38, %v999_v40  ;;  %10599 = vmatprep.subr.bf16.mxu0 %v10598_v35  ;;  %10663 = vmatprep.subr.bf16.mxu1 %v10662_v56  ;;  %v970_v54 = vld [vmem:[#allocation2 + $0x50] sm:$0x1]  ;;  %v900_v50 = vld [vmem:[%s15278_s3 + $0x200] sm:$0xff]  ;;  %v10980_v7 = vld [vmem:[%s15280_s5 + $0x198] sm:$0xff]  }
 0x183   :  { %v12468_v58 = vld [vmem:[#allocation2 + $0x50] sm:$0x3]  ;;  %1218 = vmatprep.mubr.f32.mxu0 %v1000_v52  ;;  %1307 = vmatprep.mubr.f32.mxu1 %v1000_v52  ;;  %v971_v48 = vld [vmem:[#allocation2 + $0x58] sm:$0x1]  ;;  %v1001_v22 = vrot.slane %v970_v54, 1  ;;  %v10610_v54 = vpack.c.bf16 %v897_v14, %v893_v0  ;;  %v904_v51 = vld [vmem:[%s15278_s3 + $0x220] sm:$0xff]  ;;  %v1527_v47 = vsel %vm1514_vm3, %v1525_v34, %v1526_v31 }
 0x184   :  { %v12474_v2 = vld [vmem:[#allocation2 + $0x58] sm:$0x3]  ;;  %1219 = vmatmul.mubr.f32.gmra.mrb[20].mxu0 %v997_v44  ;;  %1308 = vmatmul.mubr.f32.gmra.mrb[36].mxu1 %v997_v44  ;;  %v1003_v15 = vrot.slane %v971_v48, 1  ;;  %v1531_v56 = vrot.slane %v12468_v58, 2  ;;  %v894_v38 = vld [vmem:[%s15278_s3 + $0x1d0] sm:$0xff]  ;;  %v10612_v44 = vpack.c.bf16 %v896_v59, %v892_v37  ;;  %v912_v0 = vld [vmem:[%s15278_s3 + $0x260] sm:$0xff] }
 0x185   :  { %10601 = vmatpush1.bf16.msra.mxu0 %v10600_v13  ;;  %10665 = vmatpush1.bf16.msra.mxu1 %v10664_v42  ;;  %v1533_v35 = vrot.slane %v12474_v2, 2  ;;  %v1002_v60 = vsel %vm984_vm2, %v996_v41, %v1001_v22  ;;  %v10608_v13 = vpack.c.bf16 %v888_v43, %v884_v28  ;;  %v10672_v41 = vpack.c.bf16 %v890_v4, %v886_v1  ;;  %v901_v42 = vld [vmem:[%s15278_s3 + $0x208] sm:$0xff]  ;;  %v903_v52 = vld [vmem:[%s15278_s3 + $0x218] sm:$0xff]  ;;  %v906_v30 = vld [vmem:[%s15278_s3 + $0x230] sm:$0xff] }
 0x186   :  { %v1004_v32 = vsel %vm984_vm2, %v999_v40, %v1003_v15  ;;  %10603 = vmatprep.subr.bf16.mxu0 %v10602_v16  ;;  %10667 = vmatprep.subr.bf16.mxu1 %v10666_v53  ;;  %v898_v40 = vld [vmem:[%s15278_s3 + $0x1f0] sm:$0xff]  ;;  %v905_v16 = vld [vmem:[%s15278_s3 + $0x228] sm:$0xff]  ;;  %v907_v53 = vld [vmem:[%s15278_s3 + $0x238] sm:$0xff]  ;;  %v1532_v49 = vsel %vm1514_vm3, %v1526_v31, %v1531_v56 }
 0x187   :  { %1224 = vmatprep.mubr.f32.mxu0 %v1004_v32  ;;  %1313 = vmatprep.mubr.f32.mxu1 %v1004_v32  ;;  %v10676_v48 = vpack.c.bf16 %v898_v40, %v894_v38  ;;  %v909_v22 = vld [vmem:[%s15278_s3 + $0x248] sm:$0xff]  ;;  %v911_v15 = vld [vmem:[%s15278_s3 + $0x258] sm:$0xff]  ;;  %v10614_v43 = vpack.c.bf16 %v905_v16, %v901_v42  ;;  %v10678_v1 = vpack.c.bf16 %v907_v53, %v903_v52  ;;  %v908_v4 = vld [vmem:[%s15278_s3 + $0x240] sm:$0xff] }
 0x188   :  { %1225 = vmatmul.mubr.f32.gmra.mrb[22].mxu0 %v1002_v60  ;;  %1314 = vmatmul.mubr.f32.gmra.mrb[38].mxu1 %v1002_v60  ;;  %v915_v28 = vld [vmem:[%s15278_s3 + $0x278] sm:$0xff]  ;;  %v910_v14 = vld [vmem:[%s15278_s3 + $0x250] sm:$0xff]  ;;  %v10616_v32 = vpack.c.bf16 %v904_v51, %v900_v50  ;;  %v917_v60 = vld [vmem:[%s15278_s3 + $0x288] sm:$0xff]  ;;  %v10620_v42 = vpack.c.bf16 %v912_v0, %v908_v4  ;;  %v1534_v55 = vsel %vm1514_vm3, %v1529_v19, %v1533_v35 }
 0x189   :  { %10605 = vmatpush1.bf16.msra.mxu0 %v10604_v61  ;;  %10669 = vmatpush1.bf16.msra.mxu1 %v10668_v57  ;;  %v10674_v61 = vpack.c.bf16 %v899_v33, %v895_v26  ;;  %v913_v57 = vld [vmem:[%s15278_s3 + $0x268] sm:$0xff]  ;;  %v914_v26 = vld [vmem:[%s15278_s3 + $0x270] sm:$0xff]  ;;  %v10680_v33 = vpack.c.bf16 %v906_v30, %v902_v62  ;;  %v10682_v59 = vpack.c.bf16 %v915_v28, %v911_v15  ;;  %v916_v38 = vld [vmem:[%s15278_s3 + $0x280] sm:$0xff] }
 0x18a   :  { %1384 = vmatprep.mubr.f32.mxu0 %v829_v20  ;;  %1473 = vmatprep.mubr.f32.mxu1 %v829_v20  ;;  %v921_v20 = vld [vmem:[%s15278_s3 + $0x2a8] sm:$0xff]  ;;  %v10618_v37 = vpack.c.bf16 %v913_v57, %v909_v22  ;;  %v920_v40 = vld [vmem:[%s15278_s3 + $0x2a0] sm:$0xff]  ;;  %v10684_v16 = vpack.c.bf16 %v914_v26, %v910_v14  ;;  %v7998_v3 = vld [vmem:[%s15278_s3 + $0x970] sm:$0xff] }
 0x18b   :  { %10607 = vmatprep.subr.bf16.mxu0 %v10606_v36  ;;  %10671 = vmatprep.subr.bf16.mxu1 %v10670_v10  ;;  %v919_v36 = vld [vmem:[%s15278_s3 + $0x298] sm:$0xff]  ;;  %v925_v52 = vld [vmem:[%s15278_s3 + $0x2c8] sm:$0xff]  ;;  %v10622_v50 = vpack.c.bf16 %v921_v20, %v917_v60  ;;  %v924_v62 = vld [vmem:[%s15278_s3 + $0x2c0] sm:$0xff]  ;;  %v10624_v22 = vpack.c.bf16 %v920_v40, %v916_v38 }
 0x18c   :  { %v923_v10 = vld [vmem:[%s15278_s3 + $0x2b8] sm:$0xff]  ;;  %v929_v53 = vld [vmem:[%s15278_s3 + $0x2e8] sm:$0xff]  ;;  %v928_v30 = vld [vmem:[%s15278_s3 + $0x2e0] sm:$0xff] }
 0x18d   :  { %10609 = vmatpush1.bf16.msra.mxu0 %v10608_v13  ;;  %10673 = vmatpush1.bf16.msra.mxu1 %v10672_v41  ;;  %v918_v13 = vld [vmem:[%s15278_s3 + $0x290] sm:$0xff]  ;;  %v10686_v51 = vpack.c.bf16 %v923_v10, %v919_v36  ;;  %v933_v15 = vld [vmem:[%s15278_s3 + $0x308] sm:$0xff]  ;;  %v10626_v4 = vpack.c.bf16 %v929_v53, %v925_v52  ;;  %v932_v14 = vld [vmem:[%s15278_s3 + $0x300] sm:$0xff]  ;;  %v10628_v60 = vpack.c.bf16 %v928_v30, %v924_v62 }
 0x18e   :  { %10611 = vmatprep.subr.bf16.mxu0 %v10610_v54  ;;  %10675 = vmatprep.subr.bf16.mxu1 %v10674_v61  ;;  %v922_v41 = vld [vmem:[%s15278_s3 + $0x2b0] sm:$0xff]  ;;  %v927_v54 = vld [vmem:[%s15278_s3 + $0x2d8] sm:$0xff]  ;;  %v937_v28 = vld [vmem:[%s15278_s3 + $0x328] sm:$0xff] }
 0x18f   :  { %v931_v61 = vld [vmem:[%s15278_s3 + $0x2f8] sm:$0xff]  ;;  %v10688_v57 = vpack.c.bf16 %v922_v41, %v918_v13  ;;  %v936_v26 = vld [vmem:[%s15278_s3 + $0x320] sm:$0xff]  ;;  %v941_v36 = vld [vmem:[%s15278_s3 + $0x348] sm:$0xff]  ;;  %v10630_v38 = vpack.c.bf16 %v937_v28, %v933_v15 }
 0x190   :  { %v10690_v0 = vpack.c.bf16 %v931_v61, %v927_v54  ;;  %v945_v10 = vld [vmem:[%s15278_s3 + $0x368] sm:$0xff]  ;;  %v940_v13 = vld [vmem:[%s15278_s3 + $0x340] sm:$0xff]  ;;  %v10632_v52 = vpack.c.bf16 %v936_v26, %v932_v14  ;;  %v10973_v39 = vld [vmem:[%s15280_s5 + $0x150] sm:$0xff]  }
 0x191   :  { %10613 = vmatpush1.bf16.msra.mxu0 %v10612_v44  ;;  %10677 = vmatpush1.bf16.msra.mxu1 %v10676_v48  ;;  %v926_v44 = vld [vmem:[%s15278_s3 + $0x2d0] sm:$0xff]  ;;  %v944_v41 = vld [vmem:[%s15278_s3 + $0x360] sm:$0xff]  ;;  %v949_v54 = vld [vmem:[%s15278_s3 + $0x388] sm:$0xff]  ;;  %v10634_v62 = vpack.c.bf16 %v945_v10, %v941_v36 }
 0x192   :  { %10615 = vmatprep.subr.bf16.mxu0 %v10614_v43  ;;  %10679 = vmatprep.subr.bf16.mxu1 %v10678_v1  ;;  %v930_v48 = vld [vmem:[%s15278_s3 + $0x2f0] sm:$0xff]  ;;  %v935_v43 = vld [vmem:[%s15278_s3 + $0x318] sm:$0xff]  ;;  %v953_v61 = vld [vmem:[%s15278_s3 + $0x3a8] sm:$0xff]  ;;  %v10636_v15 = vpack.c.bf16 %v944_v41, %v940_v13 }
 0x193   :  { %v939_v1 = vld [vmem:[%s15278_s3 + $0x338] sm:$0xff]  ;;  %v10692_v20 = vpack.c.bf16 %v930_v48, %v926_v44  ;;  %v948_v44 = vld [vmem:[%s15278_s3 + $0x380] sm:$0xff]  ;;  %v10638_v14 = vpack.c.bf16 %v953_v61, %v949_v54  ;;  %v7954_v54 = vld [vmem:[%s15278_s3 + $0x810] sm:$0xff] }
 0x194   :  { %v10694_v40 = vpack.c.bf16 %v939_v1, %v935_v43  ;;  %v952_v48 = vld [vmem:[%s15278_s3 + $0x3a0] sm:$0xff]  ;;  %v957_v43 = vld [vmem:[%s15278_s3 + $0x3c8] sm:$0xff]  ;;  %v7958_v61 = vld [vmem:[%s15278_s3 + $0x830] sm:$0xff] }
 0x195   :  { %10617 = vmatpush1.bf16.msra.mxu0 %v10616_v32  ;;  %10681 = vmatpush1.bf16.msra.mxu1 %v10680_v33  ;;  %v934_v32 = vld [vmem:[%s15278_s3 + $0x310] sm:$0xff]  ;;  %v961_v1 = vld [vmem:[%s15278_s3 + $0x3e8] sm:$0xff]  ;;  %v10640_v36 = vpack.c.bf16 %v952_v48, %v948_v44  ;;  %v7963_v44 = vld [vmem:[%s15278_s3 + $0x858] sm:$0xff] }
 0x196   :  { %10619 = vmatprep.subr.bf16.mxu0 %v10618_v37  ;;  %10683 = vmatprep.subr.bf16.mxu1 %v10682_v59  ;;  %v938_v33 = vld [vmem:[%s15278_s3 + $0x330] sm:$0xff]  ;;  %v943_v37 = vld [vmem:[%s15278_s3 + $0x358] sm:$0xff]  ;;  %v10642_v13 = vpack.c.bf16 %v961_v1, %v957_v43  ;;  %v10981_v58 = vld [vmem:[%s15280_s5 + $0x160] sm:$0xff]  }
 0x197   :  { %v947_v59 = vld [vmem:[%s15278_s3 + $0x378] sm:$0xff]  ;;  %v10696_v53 = vpack.c.bf16 %v938_v33, %v934_v32  ;;  %v956_v32 = vld [vmem:[%s15278_s3 + $0x3c0] sm:$0xff]  ;;  %v7966_v43 = vld [vmem:[%s15278_s3 + $0x870] sm:$0xff] }
 0x198   :  { %v10698_v30 = vpack.c.bf16 %v947_v59, %v943_v37  ;;  %v960_v33 = vld [vmem:[%s15278_s3 + $0x3e0] sm:$0xff]  ;;  %v7953_v37 = vld [vmem:[%s15278_s3 + $0x808] sm:$0xff]  ;;  %v7967_v48 = vld [vmem:[%s15278_s3 + $0x878] sm:$0xff] }
 0x199   :  { %10621 = vmatpush1.bf16.msra.mxu0 %v10620_v42  ;;  %10685 = vmatpush1.bf16.msra.mxu1 %v10684_v16  ;;  %v942_v42 = vld [vmem:[%s15278_s3 + $0x350] sm:$0xff]  ;;  %v7957_v59 = vld [vmem:[%s15278_s3 + $0x828] sm:$0xff]  ;;  %v10979_v2 = vld [vmem:[%s15280_s5 + $0x118] sm:$0xff]  }
 0x19a   :  { %10623 = vmatprep.subr.bf16.mxu0 %v10622_v50  ;;  %10687 = vmatprep.subr.bf16.mxu1 %v10686_v51  ;;  %v946_v16 = vld [vmem:[%s15278_s3 + $0x370] sm:$0xff]  ;;  %v951_v50 = vld [vmem:[%s15278_s3 + $0x398] sm:$0xff]  ;;  %v10983_v27 = vld [vmem:[%s15280_s5 + $0x120] sm:$0xff]  }
 0x19b   :  { %v955_v51 = vld [vmem:[%s15278_s3 + $0x3b8] sm:$0xff]  ;;  %v10700_v28 = vpack.c.bf16 %v946_v16, %v942_v42  ;;  %v10644_v42 = vpack.c.bf16 %v960_v33, %v956_v32  ;;  %v10974_v17 = vld [vmem:[%s15280_s5 + $0x1d0] sm:$0xff]   ;;  %v10986_v31 = vld [vmem:[%s15280_s5 + $0x1e8] sm:$0xff]  }
 0x19c   :  { %v10702_v26 = vpack.c.bf16 %v955_v51, %v951_v50  ;;  %v10710_v50 = vpack.c.bf16 %v7957_v59, %v7953_v37  ;;  %v7975_v32 = vld [vmem:[%s15278_s3 + $0x8b8] sm:$0xff]  ;;  %v7970_v37 = vld [vmem:[%s15278_s3 + $0x890] sm:$0xff]  ;;  %v10987_v34 = vld [vmem:[%s15280_s5 + $0x128] sm:$0xff]  }
 0x19d   :  { %10625 = vmatpush1.bf16.msra.mxu0 %v10624_v22  ;;  %10689 = vmatpush1.bf16.msra.mxu1 %v10688_v57  ;;  %v950_v22 = vld [vmem:[%s15278_s3 + $0x390] sm:$0xff]  ;;  %v10988_v35 = vld [vmem:[%s15280_s5 + $0x1a8] sm:$0xff]  }
 0x19e   :  { %10627 = vmatprep.subr.bf16.mxu0 %v10626_v4  ;;  %10691 = vmatprep.subr.bf16.mxu1 %v10690_v0  ;;  %v954_v57 = vld [vmem:[%s15278_s3 + $0x3b0] sm:$0xff]  ;;  %v959_v4 = vld [vmem:[%s15278_s3 + $0x3d8] sm:$0xff] }
 0x19f   :  { %v963_v0 = vld [vmem:[%s15278_s3 + $0x3f8] sm:$0xff]  ;;  %v10704_v10 = vpack.c.bf16 %v954_v57, %v950_v22  ;;  %v828_v22 = vld [vmem:[#allocation2] sm:$0xff]  ;;  %v7974_v59 = vld [vmem:[%s15278_s3 + $0x8b0] sm:$0xff] }
 0x1a0   :  { %v10706_v41 = vpack.c.bf16 %v963_v0, %v959_v4  ;;  %v7960_v57 = vld [vmem:[%s15278_s3 + $0x840] sm:$0xff]  ;;  %v10776_v4 = vpack.c.bf16 %v7958_v61, %v7954_v54  ;;  %v7969_v0 = vld [vmem:[%s15278_s3 + $0x888] sm:$0xff]  ;;  %v11483_v61 = vld [vmem:[#allocation2 + $0x10] sm:$0xff] }
 0x1a1   :  { %10629 = vmatpush1.bf16.msra.mxu0 %v10628_v60  ;;  %10693 = vmatpush1.bf16.msra.mxu1 %v10692_v20  ;;  %v958_v60 = vld [vmem:[%s15278_s3 + $0x3d0] sm:$0xff] }
 0x1a2   :  { %10631 = vmatprep.subr.bf16.mxu0 %v10630_v38  ;;  %10695 = vmatprep.subr.bf16.mxu1 %v10694_v40  ;;  %v962_v20 = vld [vmem:[%s15278_s3 + $0x3f0] sm:$0xff]  ;;  %v7955_v38 = vld [vmem:[%s15278_s3 + $0x818] sm:$0xff] }
 0x1a3   :  { %v7959_v40 = vld [vmem:[%s15278_s3 + $0x838] sm:$0xff]  ;;  %v10708_v16 = vpack.c.bf16 %v962_v20, %v958_v60  ;;  %v10778_v60 = vpack.c.bf16 %v7967_v48, %v7963_v44  ;;  %v7982_v44 = vld [vmem:[%s15278_s3 + $0x8f0] sm:$0xff] }
 0x1a4   :  { %v10774_v51 = vpack.c.bf16 %v7959_v40, %v7955_v38  ;;  %v11482_v20 = vld [vmem:[#allocation2 + $0x18] sm:$0xff]  ;;  %v10976_v11 = vld [vmem:[%s15280_s5 + $0x190] sm:$0xff]  }
 0x1a5   :  { %10633 = vmatpush1.bf16.msra.mxu0 %v10632_v52  ;;  %10697 = vmatpush1.bf16.msra.mxu1 %v10696_v53  ;;  %v7952_v52 = vld [vmem:[%s15278_s3 + $0x800] sm:$0xff]  ;;  %v833_v38 = vld [vmem:[#allocation2 + $0x38] sm:$0xff]  ;;  %v10989_v56 = vld [vmem:[%s15280_s5 + $0x170] sm:$0xff]  }
 0x1a6   :  { %10635 = vmatprep.subr.bf16.mxu0 %v10634_v62  ;;  %10699 = vmatprep.subr.bf16.mxu1 %v10698_v30  ;;  %v7956_v53 = vld [vmem:[%s15278_s3 + $0x820] sm:$0xff]  ;;  %v7961_v62 = vld [vmem:[%s15278_s3 + $0x848] sm:$0xff] }
 0x1a7   :  { %v7965_v30 = vld [vmem:[%s15278_s3 + $0x868] sm:$0xff]  ;;  %v10712_v1 = vpack.c.bf16 %v7956_v53, %v7952_v52  ;;  %v7983_v52 = vld [vmem:[%s15278_s3 + $0x8f8] sm:$0xff] }
 0x1a8   :  { %v10714_v33 = vpack.c.bf16 %v7965_v30, %v7961_v62  ;;  %v7980_v62 = vld [vmem:[%s15278_s3 + $0x8e0] sm:$0xff]  ;;  %v7978_v30 = vld [vmem:[%s15278_s3 + $0x8d0] sm:$0xff] }
 0x1a9   :  { %10637 = vmatpush1.bf16.msra.mxu0 %v10636_v15  ;;  %10701 = vmatpush1.bf16.msra.mxu1 %v10700_v28  ;;  %v7964_v15 = vld [vmem:[%s15278_s3 + $0x860] sm:$0xff]  ;;  %v7962_v28 = vld [vmem:[%s15278_s3 + $0x850] sm:$0xff] }
 0x1aa   :  { %10639 = vmatprep.subr.bf16.mxu0 %v10638_v14  ;;  %10703 = vmatprep.subr.bf16.mxu1 %v10702_v26  ;;  %v7973_v14 = vld [vmem:[%s15278_s3 + $0x8a8] sm:$0xff]  ;;  %v7971_v26 = vld [vmem:[%s15278_s3 + $0x898] sm:$0xff]  ;;  %v10716_v40 = vpack.c.bf16 %v7964_v15, %v7960_v57 }
 0x1ab   :  { %v10718_v53 = vpack.c.bf16 %v7973_v14, %v7969_v0  ;;  %v10782_v54 = vpack.c.bf16 %v7975_v32, %v7971_v26  ;;  %v7985_v57 = vld [vmem:[%s15278_s3 + $0x908] sm:$0xff]  ;;  %v7984_v0 = vld [vmem:[%s15278_s3 + $0x900] sm:$0xff]  ;;  %v7986_v26 = vld [vmem:[%s15278_s3 + $0x910] sm:$0xff] }
 0x1ac   :  { %v7989_v15 = vld [vmem:[%s15278_s3 + $0x928] sm:$0xff]  ;;  %v7988_v14 = vld [vmem:[%s15278_s3 + $0x920] sm:$0xff]  ;;  %v7990_v32 = vld [vmem:[%s15278_s3 + $0x930] sm:$0xff] }
 0x1ad   :  { %10641 = vmatpush1.bf16.msra.mxu0 %v10640_v36  ;;  %10705 = vmatpush1.bf16.msra.mxu1 %v10704_v10  ;;  %v7968_v36 = vld [vmem:[%s15278_s3 + $0x880] sm:$0xff] }
 0x1ae   :  { %10643 = vmatprep.subr.bf16.mxu0 %v10642_v13  ;;  %10707 = vmatprep.subr.bf16.mxu1 %v10706_v41  ;;  %v7972_v10 = vld [vmem:[%s15278_s3 + $0x8a0] sm:$0xff]  ;;  %v10780_v13 = vpack.c.bf16 %v7966_v43, %v7962_v28  ;;  %v7977_v41 = vld [vmem:[%s15278_s3 + $0x8c8] sm:$0xff]  ;;  %v7987_v28 = vld [vmem:[%s15278_s3 + $0x918] sm:$0xff] }
 0x1af   :  { %v10720_v48 = vpack.c.bf16 %v7972_v10, %v7968_v36  ;;  %v7991_v43 = vld [vmem:[%s15278_s3 + $0x938] sm:$0xff]  ;;  %v7997_v36 = vld [vmem:[%s15278_s3 + $0x968] sm:$0xff] }
 0x1b0   :  { %v7995_v10 = vld [vmem:[%s15278_s3 + $0x958] sm:$0xff] }
 0x1b1   :  { %10645 = vmatpush1.bf16.msra.mxu0 %v10644_v42  ;;  %10709 = vmatpush1.bf16.msra.mxu1 %v10708_v16  ;;  %v7981_v42 = vld [vmem:[%s15278_s3 + $0x8e8] sm:$0xff]  ;;  %v7979_v16 = vld [vmem:[%s15278_s3 + $0x8d8] sm:$0xff] }
 0x1b2   :  { %10711 = vmatprep.subr.bf16.mxu0 %v10710_v50  ;;  %10775 = vmatprep.subr.bf16.mxu1 %v10774_v51  ;;  %v832_v50 = vld [vmem:[#allocation2 + $0x30] sm:$0xff]  ;;  %v7976_v51 = vld [vmem:[%s15278_s3 + $0x8c0] sm:$0xff] }
 0x1b4   :  { %1385 = vmatmul.mubr.f32.vlgmr.msra.gmra.mrb[16].mxu0 %v828_v22  ;;  %1474 = vmatmul.mubr.f32.vlgmr.msra.gmra.mrb[32].mxu1 %v828_v22  ;;  %v10784_v22 = vpack.c.bf16 %v7974_v59, %v7970_v37  ;;  %v7999_v37 = vld [vmem:[%s15278_s3 + $0x978] sm:$0xff]  ;;  %v10726_v59 = vpack.c.bf16 %v7989_v15, %v7985_v57 }
 0x1b5   :  { %1390 = vmatprep.mubr.f32.mxu0 %v11482_v20  ;;  %1479 = vmatprep.mubr.f32.mxu1 %v11482_v20  ;;  %v7993_v20 = vld [vmem:[%s15278_s3 + $0x948] sm:$0xff] }
 0x1b6   :  { %10713 = vmatpush1.bf16.msra.mxu0 %v10712_v1  ;;  %10777 = vmatpush1.bf16.msra.mxu1 %v10776_v4  ;;  %v10722_v1 = vpack.c.bf16 %v7981_v42, %v7977_v41  ;;  %v10786_v4 = vpack.c.bf16 %v7983_v52, %v7979_v16  ;;  %v7992_v41 = vld [vmem:[%s15278_s3 + $0x940] sm:$0xff]  ;;  %v7994_v16 = vld [vmem:[%s15278_s3 + $0x950] sm:$0xff]  ;;  %v10792_v52 = vpack.c.bf16 %v7990_v32, %v7986_v26 }
 0x1b7   :  { %10715 = vmatprep.subr.bf16.mxu0 %v10714_v33  ;;  %10779 = vmatprep.subr.bf16.mxu1 %v10778_v60  ;;  %v10724_v33 = vpack.c.bf16 %v7980_v62, %v7976_v51  ;;  %v10788_v60 = vpack.c.bf16 %v7982_v44, %v7978_v30  ;;  %v7996_v42 = vld [vmem:[%s15278_s3 + $0x960] sm:$0xff]  ;;  %v10730_v51 = vpack.c.bf16 %v7997_v36, %v7993_v20 }
 0x1b8   :  { %1391 = vmatmul.mubr.f32.gmra.mrb[18].mxu0 %v11483_v61  ;;  %1480 = vmatmul.mubr.f32.gmra.mrb[34].mxu1 %v11483_v61  ;;  %v8003_v61 = vld [vmem:[%s15278_s3 + $0x998] sm:$0xff]  ;;  %v10794_v62 = vpack.c.bf16 %v7999_v37, %v7995_v10  ;;  %v8000_v30 = vld [vmem:[%s15278_s3 + $0x980] sm:$0xff]  ;;  %v10732_v57 = vpack.c.bf16 %v7996_v42, %v7992_v41  ;;  %v10796_v15 = vpack.c.bf16 %v7998_v3, %v7994_v16  ;;  %v8017_v10 = vld [vmem:[%s15278_s3 + $0xa08] sm:$0xff] }
 0x1b9   :  { %1396 = vmatprep.mubr.f32.mxu0 %v833_v38  ;;  %1485 = vmatprep.mubr.f32.mxu1 %v833_v38  ;;  %v10790_v38 = vpack.c.bf16 %v7991_v43, %v7987_v28  ;;  %v8004_v44 = vld [vmem:[%s15278_s3 + $0x9a0] sm:$0xff]  ;;  %v8009_v28 = vld [vmem:[%s15278_s3 + $0x9c8] sm:$0xff]  ;;  %v8018_v16 = vld [vmem:[%s15278_s3 + $0xa10] sm:$0xff] }
 0x1ba   :  { %10717 = vmatpush1.bf16.msra.mxu0 %v10716_v40  ;;  %10781 = vmatpush1.bf16.msra.mxu1 %v10780_v13  ;;  %v11484_v40 = vld [vmem:[#allocation2 + $0x40] sm:$0xff]  ;;  %v1520_v13 = vsel %vm1514_vm3, %v1518_v5, %v1519_v46  ;;  %v10728_v5 = vpack.c.bf16 %v7988_v14, %v7984_v0  ;;  %v8013_v43 = vld [vmem:[%s15278_s3 + $0x9e8] sm:$0xff]  ;;  %v10736_v20 = vpack.c.bf16 %v8004_v44, %v8000_v30  ;;  %v8022_v3 = vld [vmem:[%s15278_s3 + $0xa30] sm:$0xff] }
 0x1bb   :  { %10719 = vmatprep.subr.bf16.mxu0 %v10718_v53  ;;  %10783 = vmatprep.subr.bf16.mxu1 %v10782_v54  ;;  %v8001_v53 = vld [vmem:[%s15278_s3 + $0x988] sm:$0xff]  ;;  %v8008_v26 = vld [vmem:[%s15278_s3 + $0x9c0] sm:$0xff] }
 0x1bc   :  { %1397 = vmatmul.mubr.f32.gmra.mrb[20].mxu0 %v832_v50  ;;  %1486 = vmatmul.mubr.f32.gmra.mrb[36].mxu1 %v832_v50  ;;  %v8005_v54 = vld [vmem:[%s15278_s3 + $0x9a8] sm:$0xff]  ;;  %v8007_v50 = vld [vmem:[%s15278_s3 + $0x9b8] sm:$0xff]  ;;  %v8012_v32 = vld [vmem:[%s15278_s3 + $0x9e0] sm:$0xff] }
 0x1bd   :  { %1402 = vmatprep.mubr.f32.mxu0 %v12372_v9  ;;  %1491 = vmatprep.mubr.f32.mxu1 %v12372_v9  ;;  %v10734_v0 = vpack.c.bf16 %v8005_v54, %v8001_v53  ;;  %v10798_v14 = vpack.c.bf16 %v8007_v50, %v8003_v61  ;;  %v8021_v37 = vld [vmem:[%s15278_s3 + $0xa28] sm:$0xff]  ;;  %v8016_v41 = vld [vmem:[%s15278_s3 + $0xa00] sm:$0xff]  ;;  %v8027_v61 = vld [vmem:[%s15278_s3 + $0xa58] sm:$0xff] }
 0x1be   :  { %10721 = vmatpush1.bf16.msra.mxu0 %v10720_v48  ;;  %10785 = vmatpush1.bf16.msra.mxu1 %v10784_v22  ;;  %v8002_v48 = vld [vmem:[%s15278_s3 + $0x990] sm:$0xff]  ;;  %v8020_v42 = vld [vmem:[%s15278_s3 + $0xa20] sm:$0xff]  ;;  %v8025_v53 = vld [vmem:[%s15278_s3 + $0xa48] sm:$0xff] }
 0x1bf   :  { %10723 = vmatprep.subr.bf16.mxu0 %v10722_v1  ;;  %10787 = vmatprep.subr.bf16.mxu1 %v10786_v4  ;;  %v8006_v22 = vld [vmem:[%s15278_s3 + $0x9b0] sm:$0xff]  ;;  %v8011_v1 = vld [vmem:[%s15278_s3 + $0x9d8] sm:$0xff]  ;;  %v8029_v54 = vld [vmem:[%s15278_s3 + $0xa68] sm:$0xff] }
 0x1c0   :  { %1403 = vmatmul.mubr.f32.gmra.mrb[22].mxu0 %v11484_v40  ;;  %1492 = vmatmul.mubr.f32.gmra.mrb[38].mxu1 %v11484_v40  ;;  %v8015_v4 = vld [vmem:[%s15278_s3 + $0x9f8] sm:$0xff]  ;;  %v10800_v36 = vpack.c.bf16 %v8006_v22, %v8002_v48  ;;  %v10738_v40 = vpack.c.bf16 %v8013_v43, %v8009_v28  ;;  %v8024_v30 = vld [vmem:[%s15278_s3 + $0xa40] sm:$0xff]  ;;  %v8026_v48 = vld [vmem:[%s15278_s3 + $0xa50] sm:$0xff] }
 0x1c1   :  { %1736 = vmatprep.mubr.f32.mxu0 %v1520_v13  ;;  %1825 = vmatprep.mubr.f32.mxu1 %v1520_v13  ;;  %v10802_v13 = vpack.c.bf16 %v8015_v4, %v8011_v1  ;;  %v8031_v50 = vld [vmem:[%s15278_s3 + $0xa78] sm:$0xff]  ;;  %v8028_v44 = vld [vmem:[%s15278_s3 + $0xa60] sm:$0xff]  ;;  %v8030_v22 = vld [vmem:[%s15278_s3 + $0xa70] sm:$0xff] }
 0x1c2   :  { %10725 = vmatpush1.bf16.msra.mxu0 %v10724_v33  ;;  %10789 = vmatpush1.bf16.msra.mxu1 %v10788_v60  ;;  %v8010_v33 = vld [vmem:[%s15278_s3 + $0x9d0] sm:$0xff]  ;;  %v8033_v28 = vld [vmem:[%s15278_s3 + $0xa88] sm:$0xff]  ;;  %v8035_v1 = vld [vmem:[%s15278_s3 + $0xa98] sm:$0xff] }
 0x1c3   :  { %10727 = vmatprep.subr.bf16.mxu0 %v10726_v59  ;;  %10791 = vmatprep.subr.bf16.mxu1 %v10790_v38  ;;  %v8014_v60 = vld [vmem:[%s15278_s3 + $0x9f0] sm:$0xff]  ;;  %v8019_v59 = vld [vmem:[%s15278_s3 + $0xa18] sm:$0xff]  ;;  %v8037_v43 = vld [vmem:[%s15278_s3 + $0xaa8] sm:$0xff] }
 0x1c4   :  { %v8023_v38 = vld [vmem:[%s15278_s3 + $0xa38] sm:$0xff] }
 0x1c5   :  { %v8039_v4 = vld [vmem:[%s15278_s3 + $0xab8] sm:$0xff] }
 0x1c6   :  { %10729 = vmatpush1.bf16.msra.mxu0 %v10728_v5  ;;  %10793 = vmatpush1.bf16.msra.mxu1 %v10792_v52  ;;  %v10740_v5 = vpack.c.bf16 %v8012_v32, %v8008_v26  ;;  %v10804_v52 = vpack.c.bf16 %v8014_v60, %v8010_v33  ;;  %v8032_v26 = vld [vmem:[%s15278_s3 + $0xa80] sm:$0xff]  ;;  %v8034_v33 = vld [vmem:[%s15278_s3 + $0xa90] sm:$0xff]  ;;  %v10978_v9 = vld [vmem:[%s15280_s5 + $0x1d8] sm:$0xff]  }
 0x1c7   :  { %10731 = vmatprep.subr.bf16.mxu0 %v10730_v51  ;;  %10795 = vmatprep.subr.bf16.mxu1 %v10794_v62  ;;  %v10742_v51 = vpack.c.bf16 %v8021_v37, %v8017_v10  ;;  %v10806_v62 = vpack.c.bf16 %v8023_v38, %v8019_v59  ;;  %v8036_v32 = vld [vmem:[%s15278_s3 + $0xaa0] sm:$0xff]  ;;  %v8038_v60 = vld [vmem:[%s15278_s3 + $0xab0] sm:$0xff]  ;;  %v8041_v10 = vld [vmem:[%s15278_s3 + $0xac8] sm:$0xff] }
 0x1c8   :  { %v8045_v37 = vld [vmem:[%s15278_s3 + $0xae8] sm:$0xff]  ;;  %v8043_v59 = vld [vmem:[%s15278_s3 + $0xad8] sm:$0xff] }
 0x1c9   :  { %v8047_v38 = vld [vmem:[%s15278_s3 + $0xaf8] sm:$0xff] }
 0x1ca   :  { %10733 = vmatpush1.bf16.msra.mxu0 %v10732_v57  ;;  %10797 = vmatpush1.bf16.msra.mxu1 %v10796_v15  ;;  %v10744_v57 = vpack.c.bf16 %v8020_v42, %v8016_v41  ;;  %v10808_v15 = vpack.c.bf16 %v8022_v3, %v8018_v16  ;;  %v8040_v41 = vld [vmem:[%s15278_s3 + $0xac0] sm:$0xff]  ;;  %v8042_v16 = vld [vmem:[%s15278_s3 + $0xad0] sm:$0xff] }
 0x1cb   :  { %10735 = vmatprep.subr.bf16.mxu0 %v10734_v0  ;;  %10799 = vmatprep.subr.bf16.mxu1 %v10798_v14  ;;  %v10746_v0 = vpack.c.bf16 %v8029_v54, %v8025_v53  ;;  %v10810_v14 = vpack.c.bf16 %v8031_v50, %v8027_v61  ;;  %v8044_v42 = vld [vmem:[%s15278_s3 + $0xae0] sm:$0xff]  ;;  %v8046_v3 = vld [vmem:[%s15278_s3 + $0xaf0] sm:$0xff]  ;;  %v8049_v53 = vld [vmem:[%s15278_s3 + $0xb08] sm:$0xff] }
 0x1cc   :  { %v8053_v54 = vld [vmem:[%s15278_s3 + $0xb28] sm:$0xff]  ;;  %v8051_v61 = vld [vmem:[%s15278_s3 + $0xb18] sm:$0xff] }
 0x1cd   :  { %v8055_v50 = vld [vmem:[%s15278_s3 + $0xb38] sm:$0xff] }
 0x1ce   :  { %10737 = vmatpush1.bf16.msra.mxu0 %v10736_v20  ;;  %10801 = vmatpush1.bf16.msra.mxu1 %v10800_v36  ;;  %v10748_v20 = vpack.c.bf16 %v8028_v44, %v8024_v30  ;;  %v10812_v36 = vpack.c.bf16 %v8030_v22, %v8026_v48  ;;  %v8048_v30 = vld [vmem:[%s15278_s3 + $0xb00] sm:$0xff]  ;;  %v8050_v48 = vld [vmem:[%s15278_s3 + $0xb10] sm:$0xff] }
 0x1cf   :  { %10739 = vmatprep.subr.bf16.mxu0 %v10738_v40  ;;  %10803 = vmatprep.subr.bf16.mxu1 %v10802_v13  ;;  %v10750_v40 = vpack.c.bf16 %v8037_v43, %v8033_v28  ;;  %v10814_v13 = vpack.c.bf16 %v8039_v4, %v8035_v1  ;;  %v8052_v44 = vld [vmem:[%s15278_s3 + $0xb20] sm:$0xff]  ;;  %v8054_v22 = vld [vmem:[%s15278_s3 + $0xb30] sm:$0xff]  ;;  %v8057_v28 = vld [vmem:[%s15278_s3 + $0xb48] sm:$0xff] }
 0x1d0   :  { %v8061_v43 = vld [vmem:[%s15278_s3 + $0xb68] sm:$0xff]  ;;  %v8059_v1 = vld [vmem:[%s15278_s3 + $0xb58] sm:$0xff] }
 0x1d1   :  { %v8063_v4 = vld [vmem:[%s15278_s3 + $0xb78] sm:$0xff] }
 0x1d2   :  { %10741 = vmatpush1.bf16.msra.mxu0 %v10740_v5  ;;  %10805 = vmatpush1.bf16.msra.mxu1 %v10804_v52  ;;  %v10752_v5 = vpack.c.bf16 %v8036_v32, %v8032_v26  ;;  %v10816_v52 = vpack.c.bf16 %v8038_v60, %v8034_v33  ;;  %v8056_v26 = vld [vmem:[%s15278_s3 + $0xb40] sm:$0xff]  ;;  %v8058_v33 = vld [vmem:[%s15278_s3 + $0xb50] sm:$0xff] }
 0x1d3   :  { %10743 = vmatprep.subr.bf16.mxu0 %v10742_v51  ;;  %10807 = vmatprep.subr.bf16.mxu1 %v10806_v62  ;;  %v10754_v51 = vpack.c.bf16 %v8045_v37, %v8041_v10  ;;  %v10818_v62 = vpack.c.bf16 %v8047_v38, %v8043_v59  ;;  %v8060_v32 = vld [vmem:[%s15278_s3 + $0xb60] sm:$0xff]  ;;  %v8062_v60 = vld [vmem:[%s15278_s3 + $0xb70] sm:$0xff]  ;;  %v8065_v10 = vld [vmem:[%s15278_s3 + $0xb88] sm:$0xff] }
 0x1d4   :  { %v8069_v37 = vld [vmem:[%s15278_s3 + $0xba8] sm:$0xff]  ;;  %v8067_v59 = vld [vmem:[%s15278_s3 + $0xb98] sm:$0xff] }
 0x1d5   :  { %v8071_v38 = vld [vmem:[%s15278_s3 + $0xbb8] sm:$0xff] }
 0x1d6   :  { %10745 = vmatpush1.bf16.msra.mxu0 %v10744_v57  ;;  %10809 = vmatpush1.bf16.msra.mxu1 %v10808_v15  ;;  %v10756_v57 = vpack.c.bf16 %v8044_v42, %v8040_v41  ;;  %v10820_v15 = vpack.c.bf16 %v8046_v3, %v8042_v16  ;;  %v8064_v41 = vld [vmem:[%s15278_s3 + $0xb80] sm:$0xff]  ;;  %v8066_v16 = vld [vmem:[%s15278_s3 + $0xb90] sm:$0xff] }
 0x1d7   :  { %10747 = vmatprep.subr.bf16.mxu0 %v10746_v0  ;;  %10811 = vmatprep.subr.bf16.mxu1 %v10810_v14  ;;  %v10758_v0 = vpack.c.bf16 %v8053_v54, %v8049_v53  ;;  %v10822_v14 = vpack.c.bf16 %v8055_v50, %v8051_v61  ;;  %v8068_v42 = vld [vmem:[%s15278_s3 + $0xba0] sm:$0xff]  ;;  %v8070_v3 = vld [vmem:[%s15278_s3 + $0xbb0] sm:$0xff]  ;;  %v8073_v53 = vld [vmem:[%s15278_s3 + $0xbc8] sm:$0xff] }
 0x1d8   :  { %v8077_v54 = vld [vmem:[%s15278_s3 + $0xbe8] sm:$0xff]  ;;  %v8075_v61 = vld [vmem:[%s15278_s3 + $0xbd8] sm:$0xff] }
 0x1d9   :  { %v8079_v50 = vld [vmem:[%s15278_s3 + $0xbf8] sm:$0xff] }
 0x1da   :  { %10749 = vmatpush1.bf16.msra.mxu0 %v10748_v20  ;;  %10813 = vmatpush1.bf16.msra.mxu1 %v10812_v36  ;;  %v10760_v20 = vpack.c.bf16 %v8052_v44, %v8048_v30  ;;  %v10824_v36 = vpack.c.bf16 %v8054_v22, %v8050_v48  ;;  %v8072_v30 = vld [vmem:[%s15278_s3 + $0xbc0] sm:$0xff]  ;;  %v8074_v48 = vld [vmem:[%s15278_s3 + $0xbd0] sm:$0xff] }
 0x1db   :  { %10751 = vmatprep.subr.bf16.mxu0 %v10750_v40  ;;  %10815 = vmatprep.subr.bf16.mxu1 %v10814_v13  ;;  %v10762_v40 = vpack.c.bf16 %v8061_v43, %v8057_v28  ;;  %v10826_v13 = vpack.c.bf16 %v8063_v4, %v8059_v1  ;;  %v8076_v44 = vld [vmem:[%s15278_s3 + $0xbe0] sm:$0xff]  ;;  %v8078_v22 = vld [vmem:[%s15278_s3 + $0xbf0] sm:$0xff]  ;;  %v10770_v28 = vpack.c.bf16 %v8077_v54, %v8073_v53 }
 0x1dc   :  { %v10834_v43 = vpack.c.bf16 %v8079_v50, %v8075_v61  ;;  %v10965_v1 = vld [vmem:[%s15280_s5 + $0x140] sm:$0xff]  }
 0x1dd   :  { %v10966_v4 = vld [vmem:[%s15280_s5 + $0x1c0] sm:$0xff]  }
 0x1de   :  { %10753 = vmatpush1.bf16.msra.mxu0 %v10752_v5  ;;  %10817 = vmatpush1.bf16.msra.mxu1 %v10816_v52  ;;  %v10764_v5 = vpack.c.bf16 %v8060_v32, %v8056_v26  ;;  %v10828_v52 = vpack.c.bf16 %v8062_v60, %v8058_v33  ;;  %v10967_v26 = vld [vmem:[%s15280_s5 + $0x100] sm:$0xff]   ;;  %v10969_v33 = vld [vmem:[%s15280_s5 + $0x148] sm:$0xff]  }
 0x1df   :  { %10755 = vmatprep.subr.bf16.mxu0 %v10754_v51  ;;  %10819 = vmatprep.subr.bf16.mxu1 %v10818_v62  ;;  %v10766_v51 = vpack.c.bf16 %v8069_v37, %v8065_v10  ;;  %v10830_v62 = vpack.c.bf16 %v8071_v38, %v8067_v59  ;;  %v10968_v32 = vld [vmem:[%s15280_s5 + $0x180] sm:$0xff]   ;;  %v10970_v60 = vld [vmem:[%s15280_s5 + $0x1c8] sm:$0xff]   ;;  %v10990_v59 = vld [vmem:[%s15280_s5 + $0x1f0] sm:$0xff]  }
 0x1e0   :  { %v10971_v10 = vld [vmem:[%s15280_s5 + $0x108] sm:$0xff]   ;;  %v10991_v38 = vld [vmem:[%s15280_s5 + $0x130] sm:$0xff]  }
 0x1e1   :  { %v10972_v37 = vld [vmem:[%s15280_s5 + $0x188] sm:$0xff]  }
 0x1e2   :  { %10757 = vmatpush1.bf16.msra.mxu0 %v10756_v57  ;;  %10821 = vmatpush1.bf16.msra.mxu1 %v10820_v15  ;;  %v10768_v57 = vpack.c.bf16 %v8068_v42, %v8064_v41  ;;  %v10832_v15 = vpack.c.bf16 %v8070_v3, %v8066_v16  ;;  %v10994_v41 = vld [vmem:[%s15280_s5 + $0x1f8] sm:$0xff]   ;;  %v10997_v3 = vld [vmem:[%s15280_s5 + $0x40] sm:$0xff]  }
 0x1e3   :  { %10759 = vmatprep.subr.bf16.mxu0 %v10758_v0  ;;  %10823 = vmatprep.subr.bf16.mxu1 %v10822_v14  ;;  %v10772_v0 = vpack.c.bf16 %v8076_v44, %v8072_v30  ;;  %v10836_v14 = vpack.c.bf16 %v8078_v22, %v8074_v48  ;;  %v10995_v42 = vld [vmem:[%s15280_s5 + $0x138] sm:$0xff]  }
 0x1e4   :  { %v10996_v16 = vld [vmem:[%s15280_s5 + $0x1b8] sm:$0xff]  }
 0x1e6   :  { %10761 = vmatpush1.bf16.msra.mxu0 %v10760_v20  ;;  %10825 = vmatpush1.bf16.msra.mxu1 %v10824_v36  ;;  %v1517_v20 = vsel %vm1514_vm3, %v1515_v6, %v1516_v45  ;;  %v1524_v36 = vsel %vm1514_vm3, %v1519_v46, %v1523_v8  ;;  %v1530_v46 = vsel %vm1514_vm3, %v1528_v29, %v1529_v19  ;;  %v10975_v6 = vld [vmem:[%s15280_s5 + $0x110] sm:$0xff]   ;;  %v10977_v45 = vld [vmem:[%s15280_s5 + $0x158] sm:$0xff]   ;;  %v10982_v8 = vld [vmem:[%s15280_s5 + $0x1e0] sm:$0xff]  }
 0x1e7   :  { %10763 = vmatprep.subr.bf16.mxu0 %v10762_v40  ;;  %10827 = vmatprep.subr.bf16.mxu1 %v10826_v13  ;;  %v10984_v29 = vld [vmem:[%s15280_s5 + $0x1a0] sm:$0xff]   ;;  %v10985_v19 = vld [vmem:[%s15280_s5 + $0x168] sm:$0xff]   ;;  %v10992_v40 = vld [vmem:[%s15280_s5 + $0x1b0] sm:$0xff]  }
 0x1e8   :  { %v10993_v13 = vld [vmem:[%s15280_s5 + $0x178] sm:$0xff]  }
 0x1ea   :  { %10765 = vmatpush1.bf16.msra.mxu0 %v10764_v5  ;;  %10829 = vmatpush1.bf16.msra.mxu1 %v10828_v52  ;;  %v10998_v5 = vld [vmem:[%s15280_s5 + $0xc0] sm:$0xff]  }
 0x1eb   :  { %10767 = vmatprep.subr.bf16.mxu0 %v10766_v51  ;;  %10831 = vmatprep.subr.bf16.mxu1 %v10830_v62  ;;  %v1866_v52 = vld [vmem:[%s15279_s4] sm:$0xf] }
 0x1ec   :  { %v1875_v53 = vrot.slane %v1866_v52, %v224_v23  ;;  %v1883_v54 = vrot.slane %v1866_v52, %v232_v25  ;;  %v1871_v61 = vrot.slane %v1866_v52, %v220_v21  ;;  %v1879_v50 = vrot.slane %v1866_v52, %v228_v24 }
 0x1ee   :  { %10769 = vmatpush1.bf16.msra.mxu0 %v10768_v57  ;;  %10833 = vmatpush1.bf16.msra.mxu1 %v10832_v15 }
 0x1ef   :  { %10771 = vmatprep.subr.bf16.mxu0 %v10770_v28  ;;  %10835 = vmatprep.subr.bf16.mxu1 %v10834_v43 }
 0x1f2   :  { %10773 = vmatpush1.bf16.msra.mxu0 %v10772_v0  ;;  %10837 = vmatpush1.bf16.msra.mxu1 %v10836_v14 }
 0x1f3   :  { %9554 = vmatprep.subr.bf16.mxu0 %v10965_v1  ;;  %9576 = vmatprep.subr.bf16.mxu1 %v10966_v4 }
 0x1f5   :  { %1737 = vmatmul.mubr.f32.vlgmr.msra.gmra.mrb[16].mxu0 %v1517_v20  ;;  %1826 = vmatmul.mubr.f32.vlgmr.msra.gmra.mrb[32].mxu1 %v1517_v20 }
 0x1f6   :  { %1742 = vmatprep.mubr.f32.mxu0 %v1524_v36  ;;  %1831 = vmatprep.mubr.f32.mxu1 %v1524_v36 }
 0x1f7   :  { %9555 = vmatpush3.bf16.msra.mxu0 %v10967_v26  ;;  %9577 = vmatpush3.bf16.msra.mxu1 %v10968_v32 }
 0x1f8   :  { %9556 = vmatprep.subr.bf16.mxu0 %v10969_v33  ;;  %9578 = vmatprep.subr.bf16.mxu1 %v10970_v60 }
 0x1f9   :  { %1743 = vmatmul.mubr.f32.gmra.mrb[18].mxu0 %v1522_v12  ;;  %1832 = vmatmul.mubr.f32.gmra.mrb[34].mxu1 %v1522_v12 }
 0x1fa   :  { %1748 = vmatprep.mubr.f32.mxu0 %v1530_v46  ;;  %1837 = vmatprep.mubr.f32.mxu1 %v1530_v46 }
 0x1fb   :  { %9557 = vmatpush3.bf16.msra.mxu0 %v10971_v10  ;;  %9579 = vmatpush3.bf16.msra.mxu1 %v10972_v37 }
 0x1fc   :  { %9558 = vmatprep.subr.bf16.mxu0 %v10973_v39  ;;  %9580 = vmatprep.subr.bf16.mxu1 %v10974_v17 }
 0x1fd   :  { %1749 = vmatmul.mubr.f32.gmra.mrb[20].mxu0 %v1527_v47  ;;  %1838 = vmatmul.mubr.f32.gmra.mrb[36].mxu1 %v1527_v47 }
 0x1fe   :  { %1754 = vmatprep.mubr.f32.mxu0 %v1534_v55  ;;  %1843 = vmatprep.mubr.f32.mxu1 %v1534_v55 }
 0x1ff   :  { %9559 = vmatpush3.bf16.msra.mxu0 %v10975_v6  ;;  %9581 = vmatpush3.bf16.msra.mxu1 %v10976_v11 }
 0x200   :  { %9560 = vmatprep.subr.bf16.mxu0 %v10977_v45  ;;  %9582 = vmatprep.subr.bf16.mxu1 %v10978_v9 }
 0x201   :  { %1755 = vmatmul.mubr.f32.gmra.mrb[22].mxu0 %v1532_v49  ;;  %1844 = vmatmul.mubr.f32.gmra.mrb[38].mxu1 %v1532_v49 }
 0x203   :  { %9561 = vmatpush3.bf16.msra.mxu0 %v10979_v2  ;;  %9583 = vmatpush3.bf16.msra.mxu1 %v10980_v7 }
 0x204   :  { %9562 = vmatprep.subr.bf16.mxu0 %v10981_v58  ;;  %9584 = vmatprep.subr.bf16.mxu1 %v10982_v8 }
 0x207   :  { %9563 = vmatpush3.bf16.msra.mxu0 %v10983_v27  ;;  %9585 = vmatpush3.bf16.msra.mxu1 %v10984_v29 }
 0x208   :  { %9564 = vmatprep.subr.bf16.mxu0 %v10985_v19  ;;  %9586 = vmatprep.subr.bf16.mxu1 %v10986_v31 }
 0x20b   :  { %9565 = vmatpush3.bf16.msra.mxu0 %v10987_v34  ;;  %9587 = vmatpush3.bf16.msra.mxu1 %v10988_v35 }
 0x20c   :  { %9566 = vmatprep.subr.bf16.mxu0 %v10989_v56  ;;  %9588 = vmatprep.subr.bf16.mxu1 %v10990_v59 }
 0x20f   :  { %9567 = vmatpush3.bf16.msra.mxu0 %v10991_v38  ;;  %9589 = vmatpush3.bf16.msra.mxu1 %v10992_v40 }
 0x210   :  { %9568 = vmatprep.subr.bf16.mxu0 %v10993_v13  ;;  %9590 = vmatprep.subr.bf16.mxu1 %v10994_v41 }
 0x213   :  { %9569 = vmatpush3.bf16.msra.mxu0 %v10995_v42  ;;  %9591 = vmatpush3.bf16.msra.mxu1 %v10996_v16 }
 0x214   :  { %9598 = vmatprep.subr.bf16.mxu0 %v10997_v3  ;;  %9620 = vmatprep.subr.bf16.mxu1 %v10998_v5 }
 0x2c8   :  { %v1738_v51 = vpop.f32.mrb[16].mxu0  ;;  %v1827_v62 = vpop.f32.mrb[32].mxu1 }
 0x2c9   :  { %v1740_v30 = vpop.f32.mrb[17].mxu0  ;;  %v1829_v44 = vpop.f32.mrb[33].mxu1  ;;  %v1888_v57 = vadd.f32 %v1871_v61, %v1738_v51  ;;  %v1890_v15 = vadd.f32 %v1879_v50, %v1827_v62 }
 0x2ca   :  { %v1889_v48 = vadd.f32 %v1875_v53, %v1740_v30  ;;  %v1891_v22 = vadd.f32 %v1883_v54, %v1829_v44  ;;  %v10999_v44 = vld [vmem:[%s15280_s5] sm:$0xff]  }
 0x2cb   :  { %v1904_v14 = vmax.f32 %v1888_v57, 0.0  ;;  %v1906_v26 = vmax.f32 %v1890_v15, 0.0 }
 0x2cc   :  { %v1905_v28 = vmax.f32 %v1889_v48, 0.0  ;;  %v1907_v43 = vmax.f32 %v1891_v22, 0.0  ;;  %v1744_v23 = vpop.f32.mrb[18].mxu0  ;;  %v1833_v1 = vpop.f32.mrb[34].mxu1  ;;  %v11000_v48 = vld [vmem:[%s15280_s5 + $0x80] sm:$0xff]  }
 0x2cd   :  { %v13258_v4 = vadd.f32 %v1871_v61, %v1744_v23  ;;  %v13260_v25 = vadd.f32 %v1879_v50, %v1833_v1  ;;  %v1746_v21 = vpop.f32.mrb[19].mxu0  ;;  %v1835_v0 = vpop.f32.mrb[35].mxu1  ;;  %v1920_v46 = vpack.c.bf16 %v1904_v14, %v1904_v14  ;;  %v1922_v6 = vpack.c.bf16 %v1906_v26, %v1906_v26  ;;  %v11002_v14 = vld [vmem:[%s15280_s5 + $0xc8] sm:$0xff]  }
 0x2ce   :  { %v13262_v18 = vadd.f32 %v1875_v53, %v1746_v21  ;;  %v13264_v24 = vadd.f32 %v1883_v54, %v1835_v0  ;;  %v1921_v32 = vpack.c.bf16 %v1905_v28, %v1905_v28  ;;  %v1923_v33 = vpack.c.bf16 %v1907_v43, %v1907_v43  ;;  %v11001_v0 = vld [vmem:[%s15280_s5 + $0x48] sm:$0xff]  }
 0x2cf   :  { %v13278_v38 = vunpack.c.l.b16 %v1920_v46  ;;  %v13280_v40 = vunpack.c.l.b16 %v1922_v6  ;;  %v1908_v46 = vmax.f32 %v13258_v4, 0.0  ;;  %v11005_v6 = vld [vmem:[%s15280_s5 + $0x50] sm:$0xff]  }
 0x2d0   :  { %v1750_v60 = vpop.f32.mrb[20].mxu0  ;;  %v1839_v20 = vpop.f32.mrb[36].mxu1  ;;  %v13266_v55 = vunpack.c.l.b16 %v1921_v32  ;;  %v13268_v49 = vunpack.c.l.b16 %v1923_v33  ;;  %v1909_v33 = vmax.f32 %v13262_v18, 0.0 }
 0x2d1   :  { %v1896_v36 = vadd.f32 %v1871_v61, %v1750_v60  ;;  %v1898_v10 = vadd.f32 %v1879_v50, %v1839_v20  ;;  %v1752_v37 = vpop.f32.mrb[21].mxu0  ;;  %v1841_v39 = vpop.f32.mrb[37].mxu1 }
 0x2d2   :  { %v1897_v17 = vadd.f32 %v1875_v53, %v1752_v37  ;;  %v1899_v12 = vadd.f32 %v1883_v54, %v1841_v39  ;;  %v2076_v3 = vrot.slane %v13266_v55, 1  ;;  %v2080_v5 = vrot.slane %v13268_v49, 1  ;;  %v11004_v37 = vld [vmem:[%s15280_s5 + $0x88] sm:$0xff]  }
 0x2d3   :  { %v1912_v11 = vmax.f32 %v1896_v36, 0.0  ;;  %v1914_v47 = vmax.f32 %v1898_v10, 0.0  ;;  %v2718_v26 = vrot.slane %v13266_v55, 2  ;;  %v11003_v10 = vld [vmem:[%s15280_s5 + $0x8] sm:$0xff]  }
 0x2d4   :  { %v1913_v45 = vmax.f32 %v1897_v17, 0.0  ;;  %v1915_v9 = vmax.f32 %v1899_v12, 0.0  ;;  %v1756_v2 = vpop.f32.mrb[22].mxu0  ;;  %v1845_v7 = vpop.f32.mrb[38].mxu1  ;;  %v2724_v17 = vrot.slane %v13268_v49, 2 }
 0x2d5   :  { %v1924_v58 = vpack.c.bf16 %v1912_v11, %v1912_v11  ;;  %v1926_v8 = vpack.c.bf16 %v1914_v47, %v1914_v47  ;;  %v13270_v27 = vadd.f32 %v1871_v61, %v1756_v2  ;;  %v13272_v29 = vadd.f32 %v1879_v50, %v1845_v7  ;;  %v1758_v19 = vpop.f32.mrb[23].mxu0  ;;  %v1847_v31 = vpop.f32.mrb[39].mxu1  ;;  %v11006_v11 = vld [vmem:[%s15280_s5 + $0xd0] sm:$0xff]  }
 0x2d6   :  { %v1925_v34 = vpack.c.bf16 %v1913_v45, %v1913_v45  ;;  %v1927_v35 = vpack.c.bf16 %v1915_v9, %v1915_v9  ;;  %v13274_v56 = vadd.f32 %v1875_v53, %v1758_v19  ;;  %v13276_v59 = vadd.f32 %v1883_v54, %v1847_v31 }
 0x2d7   :  { %v13286_v42 = vunpack.c.l.b16 %v1924_v58  ;;  %v13288_v16 = vunpack.c.l.b16 %v1926_v8  ;;  %v2073_v54 = vrot.slane %v13278_v38, 1  ;;  %v2078_v61 = vrot.slane %v13280_v40, 1 }
 0x2d8   :  { %v13282_v13 = vunpack.c.l.b16 %v1925_v34  ;;  %v13284_v41 = vunpack.c.l.b16 %v1927_v35  ;;  %v2715_v47 = vrot.slane %v13278_v38, 2  ;;  %v1910_v9 = vmax.f32 %v13260_v25, 0.0  ;;  %v11007_v25 = vld [vmem:[%s15280_s5 + $0x10] sm:$0xff]  }
 0x2d9   :  { %v2075_v62 = vsel %vm2074_vm4, %v13286_v42, %v2073_v54  ;;  %v2079_v30 = vsel %vm2074_vm4, %v13288_v16, %v2078_v61  ;;  %v2362_v43 = vrot.slane %v13286_v42, 7  ;;  %v2366_v23 = vrot.slane %v13288_v16, 7  ;;  %v11008_v35 = vld [vmem:[%s15280_s5 + $0x90] sm:$0xff]   ;;  %v11010_v54 = vld [vmem:[%s15280_s5 + $0xd8] sm:$0xff]  }
 0x2da   :  { %v2077_v52 = vsel %vm2074_vm4, %v13282_v13, %v2076_v3  ;;  %v2081_v53 = vsel %vm2074_vm4, %v13284_v41, %v2080_v5  ;;  %v2364_v22 = vrot.slane %v13282_v13, 7  ;;  %v2368_v57 = vrot.slane %v13284_v41, 7 }
 0x2db   :  { %v2083_v50 = vpack.c.b16 %v2077_v52, %v2077_v52  ;;  %v2085_v51 = vpack.c.b16 %v2081_v53, %v2081_v53  ;;  %v2082_v15 = vpack.c.b16 %v2075_v62, %v2075_v62  ;;  %v2084_v28 = vpack.c.b16 %v2079_v30, %v2079_v30  ;;  %v11009_v53 = vld [vmem:[%s15280_s5 + $0x58] sm:$0xff]  }
 0x2dc   :  { %v2365_v1 = vsel %vm2074_vm4, %v2364_v22, %v13266_v55  ;;  %v2369_v21 = vsel %vm2074_vm4, %v2368_v57, %v13268_v49  ;;  %v2719_v32 = vrot.slane %v13282_v13, 1  ;;  %v13327_v36 = vsel %vm2074_vm4, %v2362_v43, %v13278_v38 }
 0x2dd   :  { %2314 = vmatprep.mubr.bf16.mxu0 %v2083_v50  ;;  %2354 = vmatprep.mubr.bf16.mxu1 %v2085_v51  ;;  %v2371_v60 = vpack.c.b16 %v2365_v1, %v2365_v1  ;;  %v2373_v20 = vpack.c.b16 %v2369_v21, %v2369_v21  ;;  %v13337_v18 = vsel %vm2074_vm4, %v2366_v23, %v13280_v40  ;;  %v2725_v12 = vrot.slane %v13284_v41, 1  ;;  %v11011_v23 = vld [vmem:[%s15280_s5 + $0x18] sm:$0xff]  }
 0x2de   :  { %2315 = vmatmul.mubr.bf16.vlgmr.msra.gmra.mrb[24].mxu0 %v2082_v15  ;;  %2355 = vmatmul.mubr.bf16.vlgmr.msra.gmra.mrb[40].mxu1 %v2084_v28  ;;  %v13340_v39 = vsel %vm2074_vm4, %v2719_v32, %v2718_v26  ;;  %v2716_v45 = vrot.slane %v13286_v42, 1  ;;  %v2721_v2 = vrot.slane %v13280_v40, 2  ;;  %v2722_v7 = vrot.slane %v13288_v16, 1  ;;  %v11012_v1 = vld [vmem:[%s15280_s5 + $0x98] sm:$0xff]   ;;  %v11013_v32 = vld [vmem:[%s15280_s5 + $0x60] sm:$0xff]  }
 0x2df   :  { %9599 = vmatpush3.bf16.msra.mxu0 %v10999_v44  ;;  %9621 = vmatpush3.bf16.msra.mxu1 %v11000_v48  ;;  %v13355_v4 = vsel %vm2074_vm4, %v2725_v12, %v2724_v17  ;;  %v1911_v58 = vmax.f32 %v13264_v24, 0.0  ;;  %v3076_v19 = vrot.slane %v13266_v55, 3  ;;  %v3077_v31 = vrot.slane %v13282_v13, 2 }
 0x2e0   :  { %2602 = vmatprep.mubr.bf16.mxu0 %v2371_v60  ;;  %2642 = vmatprep.mubr.bf16.mxu1 %v2373_v20  ;;  %v13361_v8 = vsel %vm2074_vm4, %v2716_v45, %v2715_v47  ;;  %v4799_v34 = vpack.c.bf16 %v1909_v33, %v1909_v33  ;;  %v13372_v24 = vsel %vm2074_vm4, %v2722_v7, %v2721_v2  ;;  %v3082_v3 = vrot.slane %v13268_v49, 3  ;;  %v11014_v33 = vld [vmem:[%s15280_s5 + $0xe0] sm:$0xff]  }
 0x2e1   :  { %9600 = vmatprep.subr.bf16.mxu0 %v11001_v0  ;;  %9622 = vmatprep.subr.bf16.mxu1 %v11002_v14  ;;  %v3083_v5 = vrot.slane %v13284_v41, 2  ;;  %v13376_v52 = vpack.c.bf16 %v1908_v46, %v1908_v46  ;;  %v13385_v61 = vsel %vm2074_vm4, %v3077_v31, %v3076_v19  ;;  %v3073_v50 = vrot.slane %v13278_v38, 3  ;;  %v11018_v19 = vld [vmem:[%s15280_s5 + $0xe8] sm:$0xff]  }
 0x2e2   :  { %v3074_v51 = vrot.slane %v13286_v42, 2  ;;  %v13389_v62 = vpack.c.bf16 %v1910_v9, %v1910_v9  ;;  %v3079_v44 = vrot.slane %v13280_v40, 3  ;;  %v3080_v48 = vrot.slane %v13288_v16, 2  ;;  %v11016_v9 = vld [vmem:[%s15280_s5 + $0xa0] sm:$0xff]  }
 0x2e3   :  { %9601 = vmatpush3.bf16.msra.mxu0 %v11003_v10  ;;  %9623 = vmatpush3.bf16.msra.mxu1 %v11004_v37  ;;  %v13392_v30 = vsel %vm2074_vm4, %v3083_v5, %v3082_v3  ;;  %v13396_v22 = vpack.c.bf16 %v1911_v58, %v1911_v58  ;;  %v3434_v15 = vrot.slane %v13266_v55, 4  ;;  %v3435_v28 = vrot.slane %v13282_v13, 3 }
 0x2e4   :  { %9602 = vmatprep.subr.bf16.mxu0 %v11005_v6  ;;  %9624 = vmatprep.subr.bf16.mxu1 %v11006_v11  ;;  %v13399_v57 = vsel %vm2074_vm4, %v3074_v51, %v3073_v50  ;;  %v13403_v43 = vunpack.c.l.b16 %v4799_v34  ;;  %v13412_v21 = vsel %vm2074_vm4, %v3080_v48, %v3079_v44  ;;  %v3440_v0 = vrot.slane %v13268_v49, 4 }
 0x2e5   :  { %v3441_v14 = vrot.slane %v13284_v41, 3  ;;  %v1916_v26 = vmax.f32 %v13270_v27, 0.0  ;;  %v13424_v60 = vsel %vm2074_vm4, %v3435_v28, %v3434_v15  ;;  %v3431_v20 = vrot.slane %v13278_v38, 4  ;;  %v11019_v15 = vld [vmem:[%s15280_s5 + $0x28] sm:$0xff]  }
 0x2e6   :  { %v3432_v10 = vrot.slane %v13286_v42, 3  ;;  %v1917_v37 = vmax.f32 %v13274_v56, 0.0  ;;  %v3437_v17 = vrot.slane %v13280_v40, 4  ;;  %v3438_v12 = vrot.slane %v13288_v16, 3  ;;  %v11015_v56 = vld [vmem:[%s15280_s5 + $0x20] sm:$0xff]   ;;  %v11020_v28 = vld [vmem:[%s15280_s5 + $0xa8] sm:$0xff]  }
 0x2e7   :  { %9603 = vmatpush3.bf16.msra.mxu0 %v11007_v25  ;;  %9625 = vmatpush3.bf16.msra.mxu1 %v11008_v35  ;;  %v13430_v27 = vsel %vm2074_vm4, %v3441_v14, %v3440_v0  ;;  %v1919_v46 = vmax.f32 %v13276_v59, 0.0  ;;  %v3792_v11 = vrot.slane %v13266_v55, 5  ;;  %v3793_v47 = vrot.slane %v13282_v13, 4 }
 0x2e8   :  { %9604 = vmatprep.subr.bf16.mxu0 %v11009_v53  ;;  %9626 = vmatprep.subr.bf16.mxu1 %v11010_v54  ;;  %v13436_v6 = vsel %vm2074_vm4, %v3432_v10, %v3431_v20  ;;  %v1918_v45 = vmax.f32 %v13272_v29, 0.0  ;;  %v13448_v59 = vsel %vm2074_vm4, %v3438_v12, %v3437_v17  ;;  %v3798_v2 = vrot.slane %v13268_v49, 5  ;;  %v11017_v29 = vld [vmem:[%s15280_s5 + $0x68] sm:$0xff]  }
 0x2e9   :  { %v3799_v7 = vrot.slane %v13284_v41, 4  ;;  %v4802_v58 = vpack.c.bf16 %v1916_v26, %v1916_v26  ;;  %v13459_v31 = vsel %vm2074_vm4, %v3793_v47, %v3792_v11  ;;  %v3789_v34 = vrot.slane %v13278_v38, 5  ;;  %v11021_v26 = vld [vmem:[%s15280_s5 + $0x70] sm:$0xff]  }
 0x2ea   :  { %v3790_v25 = vrot.slane %v13286_v42, 4  ;;  %v4803_v35 = vpack.c.bf16 %v1917_v37, %v1917_v37  ;;  %v3795_v5 = vrot.slane %v13280_v40, 5  ;;  %v3796_v53 = vrot.slane %v13288_v16, 4 }
 0x2eb   :  { %9605 = vmatpush3.bf16.msra.mxu0 %v11011_v23  ;;  %9627 = vmatpush3.bf16.msra.mxu1 %v11012_v1  ;;  %v13464_v3 = vsel %vm2074_vm4, %v3799_v7, %v3798_v2  ;;  %v4805_v54 = vpack.c.bf16 %v1919_v46, %v1919_v46  ;;  %v4150_v51 = vrot.slane %v13266_v55, 6  ;;  %v4151_v44 = vrot.slane %v13282_v13, 5  ;;  %v11023_v2 = vld [vmem:[%s15280_s5 + $0x30] sm:$0xff]  }
 0x2ec   :  { %9606 = vmatprep.subr.bf16.mxu0 %v11013_v32  ;;  %9628 = vmatprep.subr.bf16.mxu1 %v11014_v33  ;;  %v13469_v50 = vsel %vm2074_vm4, %v3790_v25, %v3789_v34  ;;  %v4804_v48 = vpack.c.bf16 %v1918_v45, %v1918_v45  ;;  %v13480_v23 = vsel %vm2074_vm4, %v3796_v53, %v3795_v5  ;;  %v4156_v1 = vrot.slane %v13268_v49, 6  ;;  %v11022_v32 = vld [vmem:[%s15280_s5 + $0xf0] sm:$0xff]   ;;  %v11026_v34 = vld [vmem:[%s15280_s5 + $0xf8] sm:$0xff]  }
 0x2ed   :  { %v4157_v0 = vrot.slane %v13284_v41, 5  ;;  %v13484_v14 = vunpack.c.l.b16 %v4802_v58  ;;  %v13493_v33 = vsel %vm2074_vm4, %v4151_v44, %v4150_v51  ;;  %v4147_v20 = vrot.slane %v13278_v38, 6  ;;  %v11024_v7 = vld [vmem:[%s15280_s5 + $0xb0] sm:$0xff]  }
 0x2ee   :  { %v4148_v10 = vrot.slane %v13286_v42, 5  ;;  %v13497_v37 = vunpack.c.l.b16 %v4803_v35  ;;  %v4153_v12 = vrot.slane %v13280_v40, 6  ;;  %v4154_v46 = vrot.slane %v13288_v16, 5 }
 0x2ef   :  { %9607 = vmatpush3.bf16.msra.mxu0 %v11015_v56  ;;  %9629 = vmatpush3.bf16.msra.mxu1 %v11016_v9  ;;  %v13500_v17 = vsel %vm2074_vm4, %v4157_v0, %v4156_v1  ;;  %v13504_v11 = vunpack.c.l.b16 %v4805_v54  ;;  %v4508_v45 = vrot.slane %v13266_v55, 7  ;;  %v4509_v56 = vrot.slane %v13282_v13, 6 }
 0x2f0   :  { %9608 = vmatprep.subr.bf16.mxu0 %v11017_v29  ;;  %9630 = vmatprep.subr.bf16.mxu1 %v11018_v19  ;;  %v13507_v47 = vsel %vm2074_vm4, %v4148_v10, %v4147_v20  ;;  %v13511_v9 = vunpack.c.l.b16 %v4804_v48  ;;  %v13520_v58 = vsel %vm2074_vm4, %v4154_v46, %v4153_v12  ;;  %v4514_v29 = vrot.slane %v13268_v49, 7  ;;  %v11025_v19 = vld [vmem:[%s15280_s5 + $0x78] sm:$0xff]  }
 0x2f1   :  { %v4515_v55 = vrot.slane %v13284_v41, 6  ;;  %v13525_v13 = vunpack.c.l.b16 %v13396_v22  ;;  %v13534_v25 = vsel %vm2074_vm4, %v4509_v56, %v4508_v45  ;;  %v4505_v49 = vrot.slane %v13278_v38, 7  ;;  %v11031_v45 = vld [vmem:[%s15280_s5 + $0x200] sm:$0xff]  }
 0x2f2   :  { %v4506_v41 = vrot.slane %v13286_v42, 6  ;;  %v4511_v35 = vrot.slane %v13280_v40, 7  ;;  %v4512_v5 = vrot.slane %v13288_v16, 6  ;;  %v4889_v53 = vrot.slane %v13497_v37, 7  ;;  %v11027_v40 = vld [vmem:[%s15280_s5 + $0x38] sm:$0xff]  }
 0x2f3   :  { %9609 = vmatpush3.bf16.msra.mxu0 %v11019_v15  ;;  %9631 = vmatpush3.bf16.msra.mxu1 %v11020_v28  ;;  %v13539_v22 = vsel %vm2074_vm4, %v4515_v55, %v4514_v29  ;;  %v13545_v54 = vunpack.c.l.b16 %v13376_v52  ;;  %v4893_v44 = vrot.slane %v13504_v11, 7  ;;  %v4887_v38 = vrot.slane %v13484_v14, 7  ;;  %v11028_v16 = vld [vmem:[%s15280_s5 + $0xb8] sm:$0xff]   ;;  %v11029_v15 = vld [vmem:[%s15280_s5 + $0x240] sm:$0xff]  }
 0x2f4   :  { %9610 = vmatprep.subr.bf16.mxu0 %v11021_v26  ;;  %9632 = vmatprep.subr.bf16.mxu1 %v11022_v32  ;;  %v13548_v51 = vsel %vm2074_vm4, %v4506_v41, %v4505_v49  ;;  %v13553_v42 = vunpack.c.l.b16 %v13389_v62  ;;  %v13562_v52 = vsel %vm2074_vm4, %v4512_v5, %v4511_v35  ;;  %v13566_v48 = vsel %vm2074_vm4, %v4889_v53, %v13403_v43  ;;  %v11030_v28 = vld [vmem:[%s15280_s5 + $0x2c0] sm:$0xff]   ;;  %v11034_v49 = vld [vmem:[%s15280_s5 + $0x2c8] sm:$0xff]  }
 0x2f5   :  { %v4891_v62 = vrot.slane %v13511_v9, 7  ;;  %v13577_v1 = vsel %vm2074_vm4, %v4893_v44, %v13525_v13  ;;  %v5243_v0 = vrot.slane %v13403_v43, 1  ;;  %v13582_v26 = vsel %vm2074_vm4, %v4887_v38, %v13545_v54  ;;  %v11032_v29 = vld [vmem:[%s15280_s5 + $0x280] sm:$0xff]  }
 0x2f6   :  { %v5247_v20 = vrot.slane %v13525_v13, 1  ;;  %v5241_v12 = vrot.slane %v13545_v54, 1  ;;  %v2370_v46 = vpack.c.b16 %v13327_v36, %v13327_v36  ;;  %v5598_v55 = vrot.slane %v13403_v43, 2 }
 0x2f7   :  { %9611 = vmatpush3.bf16.msra.mxu0 %v11023_v2  ;;  %9633 = vmatpush3.bf16.msra.mxu1 %v11024_v7  ;;  %v13586_v32 = vsel %vm2074_vm4, %v4891_v62, %v13553_v42  ;;  %v13591_v10 = vsel %vm2074_vm4, %v13497_v37, %v5243_v0  ;;  %v5245_v2 = vrot.slane %v13553_v42, 1  ;;  %v2372_v7 = vpack.c.b16 %v13337_v18, %v13337_v18  ;;  %v11033_v18 = vld [vmem:[%s15280_s5 + $0x248] sm:$0xff]  }
 0x2f8   :  { %9612 = vmatprep.subr.bf16.mxu0 %v11025_v19  ;;  %9634 = vmatprep.subr.bf16.mxu1 %v11026_v34  ;;  %v13601_v56 = vsel %vm2074_vm4, %v13504_v11, %v5247_v20  ;;  %v13611_v36 = vsel %vm2074_vm4, %v13484_v14, %v5241_v12  ;;  %v5599_v19 = vrot.slane %v13497_v37, 1  ;;  %v2728_v34 = vpack.c.b16 %v13340_v39, %v13340_v39 }
 0x2f9   :  { %v13625_v41 = vsel %vm2074_vm4, %v13511_v9, %v5245_v2  ;;  %v5604_v35 = vrot.slane %v13525_v13, 2  ;;  %v5605_v5 = vrot.slane %v13504_v11, 1  ;;  %v2730_v39 = vpack.c.b16 %v13355_v4, %v13355_v4 }
 0x2fa   :  { %v13632_v53 = vsel %vm2074_vm4, %v5599_v19, %v5598_v55  ;;  %v5595_v44 = vrot.slane %v13545_v54, 2  ;;  %v5596_v38 = vrot.slane %v13484_v14, 1  ;;  %v5601_v62 = vrot.slane %v13553_v42, 2 }
 0x2fb   :  { %9613 = vmatpush3.bf16.msra.mxu0 %v11027_v40  ;;  %9635 = vmatpush3.bf16.msra.mxu1 %v11028_v16  ;;  %v11035_v40 = vld [vmem:[%s15280_s5 + $0x208] sm:$0xff]   ;;  %v13640_v16 = vsel %vm2074_vm4, %v5605_v5, %v5604_v35  ;;  %v5602_v4 = vrot.slane %v13511_v9, 1  ;;  %v5956_v20 = vrot.slane %v13403_v43, 3  ;;  %v5957_v12 = vrot.slane %v13497_v37, 2  ;;  %v11040_v5 = vld [vmem:[%s15280_s5 + $0x290] sm:$0xff]  }
 0x2fc   :  { %9642 = vmatprep.subr.bf16.mxu0 %v11029_v15  ;;  %9664 = vmatprep.subr.bf16.mxu1 %v11030_v28  ;;  %v11036_v15 = vld [vmem:[%s15280_s5 + $0x288] sm:$0xff]   ;;  %v11037_v28 = vld [vmem:[%s15280_s5 + $0x250] sm:$0xff]   ;;  %v13651_v0 = vsel %vm2074_vm4, %v5596_v38, %v5595_v44  ;;  %v5962_v2 = vrot.slane %v13525_v13, 3  ;;  %v5953_v55 = vrot.slane %v13545_v54, 3  ;;  %v5954_v19 = vrot.slane %v13484_v14, 2 }
 0x2fd   :  { %v5960_v35 = vrot.slane %v13511_v9, 2  ;;  %v6314_v38 = vrot.slane %v13403_v43, 4 }
 0x2fe   :  { %2603 = vmatmul.mubr.bf16.vlgmr.msra.gmra.mrb[28].mxu0 %v2370_v46  ;;  %2643 = vmatmul.mubr.bf16.vlgmr.msra.gmra.mrb[44].mxu1 %v2372_v7  ;;  %v11038_v46 = vld [vmem:[%s15280_s5 + $0x2d0] sm:$0xff]   ;;  %v5963_v7 = vrot.slane %v13504_v11, 2  ;;  %v13683_v44 = vsel %vm2074_vm4, %v5954_v19, %v5953_v55  ;;  %v6317_v55 = vrot.slane %v13553_v42, 4  ;;  %v6318_v19 = vrot.slane %v13511_v9, 3 }
 0x2ff   :  { %9643 = vmatpush3.bf16.msra.mxu0 %v11031_v45  ;;  %2959 = vmatprep.mubr.bf16.mxu0 %v2728_v34  ;;  %v13659_v45 = vsel %vm2074_vm4, %v5602_v4, %v5601_v62  ;;  %v11039_v34 = vld [vmem:[%s15280_s5 + $0x210] sm:$0xff]   ;;  %v11042_v62 = vld [vmem:[%s15280_s5 + $0x2d8] sm:$0xff]  }
 0x300   :  { %9665 = vmatpush3.bf16.msra.mxu1 %v11032_v29  ;;  %2999 = vmatprep.mubr.bf16.mxu1 %v2730_v39  ;;  %v13664_v29 = vsel %vm2074_vm4, %v5957_v12, %v5956_v20  ;;  %v11041_v39 = vld [vmem:[%s15280_s5 + $0x258] sm:$0xff]   ;;  %v6311_v12 = vrot.slane %v13545_v54, 4 }
 0x301   :  { %9644 = vmatprep.subr.bf16.mxu0 %v11033_v18  ;;  %9666 = vmatprep.subr.bf16.mxu1 %v11034_v49  ;;  %v13672_v18 = vsel %vm2074_vm4, %v5963_v7, %v5962_v2  ;;  %v5959_v49 = vrot.slane %v13553_v42, 3  ;;  %v6312_v2 = vrot.slane %v13484_v14, 3 }
 0x303   :  { %9645 = vmatpush3.bf16.msra.mxu0 %v11035_v40  ;;  %v6315_v40 = vrot.slane %v13497_v37, 3  ;;  %v13691_v4 = vsel %vm2074_vm4, %v5960_v35, %v5959_v49  ;;  %v11044_v49 = vld [vmem:[%s15280_s5 + $0x298] sm:$0xff]   ;;  %v13715_v35 = vsel %vm2074_vm4, %v6312_v2, %v6311_v12  ;;  %v6669_v12 = vrot.slane %v13545_v54, 5 }
 0x304   :  { %9667 = vmatpush3.bf16.msra.mxu1 %v11036_v15  ;;  %9646 = vmatprep.subr.bf16.mxu0 %v11037_v28  ;;  %v6320_v15 = vrot.slane %v13525_v13, 4  ;;  %v6321_v28 = vrot.slane %v13504_v11, 3  ;;  %15287 = vst [vmem:[#allocation10_spill] sm:$0xff] %v13715_v35  ;;  %v6670_v2 = vrot.slane %v13484_v14, 4 }
 0x305   :  { %9668 = vmatprep.subr.bf16.mxu1 %v11038_v46  ;;  %v13696_v20 = vsel %vm2074_vm4, %v6315_v40, %v6314_v38  ;;  %v11043_v46 = vld [vmem:[%s15280_s5 + $0x218] sm:$0xff]   ;;  %v6672_v38 = vrot.slane %v13403_v43, 5  ;;  %v6673_v40 = vrot.slane %v13497_v37, 4 }
 0x306   :  { %v13704_v7 = vsel %vm2074_vm4, %v6321_v28, %v6320_v15  ;;  %v6678_v15 = vrot.slane %v13525_v13, 5  ;;  %v6679_v28 = vrot.slane %v13504_v11, 4 }
 0x307   :  { %9647 = vmatpush3.bf16.msra.mxu0 %v11039_v34  ;;  %v11045_v34 = vld [vmem:[%s15280_s5 + $0x260] sm:$0xff]   ;;  %v13728_v63 = vsel %vm2074_vm4, %v6673_v40, %v6672_v38  ;;  %v13747_v40 = vsel %vm2074_vm4, %v6670_v2, %v6669_v12  ;;  %v7027_v12 = vrot.slane %v13545_v54, 6  ;;  %v7028_v2 = vrot.slane %v13484_v14, 5 }
 0x308   :  { %9669 = vmatpush3.bf16.msra.mxu1 %v11040_v5  ;;  %9648 = vmatprep.subr.bf16.mxu0 %v11041_v39  ;;  %v11046_v5 = vld [vmem:[%s15280_s5 + $0x2e0] sm:$0xff]   ;;  %v13723_v39 = vsel %vm2074_vm4, %v6318_v19, %v6317_v55  ;;  %15289 = vst [vmem:[#allocation12_spill] sm:$0xff] %v13728_v63  ;;  %v13736_v35 = vsel %vm2074_vm4, %v6679_v28, %v6678_v15  ;;  %v6675_v55 = vrot.slane %v13553_v42, 5  ;;  %v6676_v19 = vrot.slane %v13511_v9, 4 }
 0x309   :  { %9670 = vmatprep.subr.bf16.mxu1 %v11042_v62  ;;  %15288 = vst [vmem:[#allocation11_spill] sm:$0xff] %v13723_v39  ;;  %v11047_v62 = vld [vmem:[%s15280_s5 + $0x220] sm:$0xff]   ;;  %15290 = vst [vmem:[#allocation13_spill] sm:$0xff] %v13736_v35  ;;  %v7030_v15 = vrot.slane %v13403_v43, 6  ;;  %v7031_v28 = vrot.slane %v13497_v37, 5  ;;  %v7036_v35 = vrot.slane %v13525_v13, 6 }
 0x30a   :  { %v11048_v38 = vld [vmem:[%s15280_s5 + $0x2a0] sm:$0xff]   ;;  %15291 = vst [vmem:[#allocation14_spill] sm:$0xff] %v13747_v40  ;;  %v7037_v63 = vrot.slane %v13504_v11, 5 }
 0x30b   :  { %9649 = vmatpush3.bf16.msra.mxu0 %v11043_v46  ;;  %v11049_v46 = vld [vmem:[%s15280_s5 + $0x268] sm:$0xff]   ;;  %v13760_v39 = vsel %vm2074_vm4, %v7031_v28, %v7030_v15  ;;  %v13779_v28 = vsel %vm2074_vm4, %v7028_v2, %v7027_v12  ;;  %v7385_v12 = vrot.slane %v13545_v54, 7  ;;  %v7391_v2 = vrot.slane %v13553_v42, 7 }
 0x30c   :  { %9671 = vmatpush3.bf16.msra.mxu1 %v11044_v49  ;;  %9650 = vmatprep.subr.bf16.mxu0 %v11045_v34  ;;  %v11050_v49 = vld [vmem:[%s15280_s5 + $0x2e8] sm:$0xff]   ;;  %v13755_v34 = vsel %vm2074_vm4, %v6676_v19, %v6675_v55  ;;  %15293 = vst [vmem:[#allocation16_spill] sm:$0xff] %v13760_v39  ;;  %v13768_v40 = vsel %vm2074_vm4, %v7037_v63, %v7036_v35  ;;  %v7033_v55 = vrot.slane %v13553_v42, 6  ;;  %v7034_v19 = vrot.slane %v13511_v9, 5  ;;  %v11058_v42 = vld [vmem:[%s15280_s5 + $0x2f8] sm:$0xff]  }
 0x30d   :  { %9672 = vmatprep.subr.bf16.mxu1 %v11046_v5  ;;  %15292 = vst [vmem:[#allocation15_spill] sm:$0xff] %v13755_v34  ;;  %v11051_v5 = vld [vmem:[%s15280_s5 + $0x228] sm:$0xff]   ;;  %15294 = vst [vmem:[#allocation17_spill] sm:$0xff] %v13768_v40  ;;  %v7388_v63 = vrot.slane %v13403_v43, 7  ;;  %v7389_v35 = vrot.slane %v13497_v37, 6  ;;  %v7394_v40 = vrot.slane %v13525_v13, 7 }
 0x30e   :  { %v11052_v15 = vld [vmem:[%s15280_s5 + $0x2a8] sm:$0xff]   ;;  %v7395_v39 = vrot.slane %v13504_v11, 6  ;;  %v7386_v43 = vrot.slane %v13484_v14, 6  ;;  %v11055_v37 = vld [vmem:[%s15280_s5 + $0x230] sm:$0xff]   ;;  %v7392_v13 = vrot.slane %v13511_v9, 6  ;;  %v11057_v14 = vld [vmem:[%s15280_s5 + $0x278] sm:$0xff]  }
 0x30f   :  { %9651 = vmatpush3.bf16.msra.mxu0 %v11047_v62  ;;  %v11053_v62 = vld [vmem:[%s15280_s5 + $0x270] sm:$0xff]   ;;  %v13792_v34 = vsel %vm2074_vm4, %v7389_v35, %v7388_v63  ;;  %v2729_v63 = vpack.c.b16 %v13372_v24, %v13372_v24  ;;  %v11065_v35 = vld [vmem:[%s15280_s5 + $0x348] sm:$0xff]  }
 0x310   :  { %9673 = vmatpush3.bf16.msra.mxu1 %v11048_v38  ;;  %9652 = vmatprep.subr.bf16.mxu0 %v11049_v46  ;;  %v11054_v38 = vld [vmem:[%s15280_s5 + $0x2f0] sm:$0xff]   ;;  %v13787_v46 = vsel %vm2074_vm4, %v7034_v19, %v7033_v55  ;;  %v13811_v54 = vsel %vm2074_vm4, %v7386_v43, %v7385_v12  ;;  %v13817_v9 = vsel %vm2074_vm4, %v7392_v13, %v7391_v2  ;;  %v11062_v55 = vld [vmem:[%s15280_s5 + $0x3c0] sm:$0xff]   ;;  %v11067_v24 = vld [vmem:[%s15280_s5 + $0x308] sm:$0xff]  }
 0x311   :  { %9674 = vmatprep.subr.bf16.mxu1 %v11050_v49  ;;  %v13800_v49 = vsel %vm2074_vm4, %v7395_v39, %v7394_v40  ;;  %v11056_v11 = vld [vmem:[%s15280_s5 + $0x2b0] sm:$0xff]   ;;  %v11059_v39 = vld [vmem:[%s15280_s5 + $0x238] sm:$0xff]   ;;  %v11063_v19 = vld [vmem:[%s15280_s5 + $0x300] sm:$0xff]   ;;  %v3088_v12 = vpack.c.b16 %v13392_v30, %v13392_v30 }
 0x312   :  { %v11060_v40 = vld [vmem:[%s15280_s5 + $0x2b8] sm:$0xff]   ;;  %v11068_v43 = vld [vmem:[%s15280_s5 + $0x388] sm:$0xff]   ;;  %v11070_v30 = vld [vmem:[%s15280_s5 + $0x3d0] sm:$0xff]  }
 0x313   :  { %9653 = vmatpush3.bf16.msra.mxu0 %v11051_v5  ;;  %v11061_v5 = vld [vmem:[%s15280_s5 + $0x340] sm:$0xff]   ;;  %v11072_v2 = vld [vmem:[%s15280_s5 + $0x390] sm:$0xff]   ;;  %v11073_v13 = vld [vmem:[%s15280_s5 + $0x358] sm:$0xff]  }
 0x314   :  { %9675 = vmatpush3.bf16.msra.mxu1 %v11052_v15  ;;  %9654 = vmatprep.subr.bf16.mxu0 %v11053_v62  ;;  %v2727_v15 = vpack.c.b16 %v13361_v8, %v13361_v8  ;;  %v11064_v62 = vld [vmem:[%s15280_s5 + $0x380] sm:$0xff]   ;;  %v11066_v8 = vld [vmem:[%s15280_s5 + $0x3c8] sm:$0xff]  }
 0x315   :  { %9676 = vmatprep.subr.bf16.mxu1 %v11054_v38  ;;  %v3086_v38 = vpack.c.b16 %v13385_v61, %v13385_v61  ;;  %v11069_v61 = vld [vmem:[%s15280_s5 + $0x350] sm:$0xff]  }
 0x317   :  { %9655 = vmatpush3.bf16.msra.mxu0 %v11055_v37  ;;  %v11071_v37 = vld [vmem:[%s15280_s5 + $0x310] sm:$0xff]  }
 0x318   :  { %9677 = vmatpush3.bf16.msra.mxu1 %v11056_v11  ;;  %9656 = vmatprep.subr.bf16.mxu0 %v11057_v14  ;;  %v11074_v11 = vld [vmem:[%s15280_s5 + $0x3d8] sm:$0xff]  }
 0x319   :  { %9678 = vmatprep.subr.bf16.mxu1 %v11058_v42  ;;  %v11075_v14 = vld [vmem:[%s15280_s5 + $0x318] sm:$0xff]  }
 0x31a   :  { %v11076_v42 = vld [vmem:[%s15280_s5 + $0x398] sm:$0xff]  }
 0x31b   :  { %9657 = vmatpush3.bf16.msra.mxu0 %v11059_v39  ;;  %v11077_v39 = vld [vmem:[%s15280_s5 + $0x360] sm:$0xff]  }
 0x31c   :  { %9679 = vmatpush3.bf16.msra.mxu1 %v11060_v40  ;;  %9686 = vmatprep.subr.bf16.mxu0 %v11061_v5  ;;  %v11078_v40 = vld [vmem:[%s15280_s5 + $0x3e0] sm:$0xff]  }
 0x31d   :  { %9708 = vmatprep.subr.bf16.mxu1 %v11062_v55  ;;  %v11079_v5 = vld [vmem:[%s15280_s5 + $0x320] sm:$0xff]  }
 0x31e   :  { %2960 = vmatmul.mubr.bf16.vlgmr.msra.gmra.mrb[32].mxu0 %v2727_v15  ;;  %v11080_v55 = vld [vmem:[%s15280_s5 + $0x3a0] sm:$0xff]   ;;  %v11082_v15 = vld [vmem:[%s15280_s5 + $0x3e8] sm:$0xff]  }
 0x31f   :  { %3000 = vmatmul.mubr.bf16.vlgmr.msra.gmra.mrb[48].mxu1 %v2729_v63  ;;  %9687 = vmatpush3.bf16.msra.mxu0 %v11063_v19  ;;  %v11081_v19 = vld [vmem:[%s15280_s5 + $0x368] sm:$0xff]  }
 0x320   :  { %3317 = vmatprep.mubr.bf16.mxu0 %v3086_v38  ;;  %9709 = vmatpush3.bf16.msra.mxu1 %v11064_v62  ;;  %v11083_v62 = vld [vmem:[%s15280_s5 + $0x328] sm:$0xff]   ;;  %v11086_v38 = vld [vmem:[%s15280_s5 + $0x3f0] sm:$0xff]  }
 0x321   :  { %3357 = vmatprep.mubr.bf16.mxu1 %v3088_v12  ;;  %9688 = vmatprep.subr.bf16.mxu0 %v11065_v35  ;;  %v11084_v63 = vld [vmem:[%s15280_s5 + $0x3a8] sm:$0xff]   ;;  %v11085_v35 = vld [vmem:[%s15280_s5 + $0x370] sm:$0xff]  }
 0x322   :  { %9710 = vmatprep.subr.bf16.mxu1 %v11066_v8  ;;  %v11087_v8 = vld [vmem:[%s15280_s5 + $0x330] sm:$0xff]  }
 0x323   :  { %9689 = vmatpush3.bf16.msra.mxu0 %v11067_v24  ;;  %v11088_v12 = vld [vmem:[%s15280_s5 + $0x3b0] sm:$0xff]   ;;  %v11089_v24 = vld [vmem:[%s15280_s5 + $0x378] sm:$0xff]  }
 0x324   :  { %9711 = vmatpush3.bf16.msra.mxu1 %v11068_v43  ;;  %9690 = vmatprep.subr.bf16.mxu0 %v11069_v61  ;;  %v11090_v43 = vld [vmem:[%s15280_s5 + $0x3f8] sm:$0xff]  }
 0x325   :  { %9712 = vmatprep.subr.bf16.mxu1 %v11070_v30  ;;  %v11091_v61 = vld [vmem:[%s15280_s5 + $0x338] sm:$0xff]  }
 0x326   :  { %v11092_v30 = vld [vmem:[%s15280_s5 + $0x3b8] sm:$0xff]  }
 0x327   :  { %9691 = vmatpush3.bf16.msra.mxu0 %v11071_v37  ;;  %v11093_v37 = vld [vmem:[%s15280_s5 + $0x440] sm:$0xff]  }
 0x328   :  { %9713 = vmatpush3.bf16.msra.mxu1 %v11072_v2  ;;  %9692 = vmatprep.subr.bf16.mxu0 %v11073_v13  ;;  %v11094_v2 = vld [vmem:[%s15280_s5 + $0x4c0] sm:$0xff]  }
 0x329   :  { %9714 = vmatprep.subr.bf16.mxu1 %v11074_v11  ;;  %v11095_v13 = vld [vmem:[%s15280_s5 + $0x400] sm:$0xff]   ;;  %v3085_v11 = vpack.c.b16 %v13399_v57, %v13399_v57  ;;  %v11098_v57 = vld [vmem:[%s15280_s5 + $0x4c8] sm:$0xff]  }
 0x32b   :  { %9693 = vmatpush3.bf16.msra.mxu0 %v11075_v14  ;;  %v11096_v14 = vld [vmem:[%s15280_s5 + $0x480] sm:$0xff]  }
 0x32c   :  { %9715 = vmatpush3.bf16.msra.mxu1 %v11076_v42  ;;  %9694 = vmatprep.subr.bf16.mxu0 %v11077_v39  ;;  %v3087_v42 = vpack.c.b16 %v13412_v21, %v13412_v21  ;;  %v11097_v39 = vld [vmem:[%s15280_s5 + $0x448] sm:$0xff]  }
 0x32d   :  { %9716 = vmatprep.subr.bf16.mxu1 %v11078_v40  ;;  %v3444_v40 = vpack.c.b16 %v13424_v60, %v13424_v60  ;;  %v11099_v21 = vld [vmem:[%s15280_s5 + $0x408] sm:$0xff]   ;;  %v11101_v60 = vld [vmem:[%s15280_s5 + $0x450] sm:$0xff]  }
 0x32f   :  { %9695 = vmatpush3.bf16.msra.mxu0 %v11079_v5  ;;  %v3446_v5 = vpack.c.b16 %v13430_v27, %v13430_v27  ;;  %v11102_v27 = vld [vmem:[%s15280_s5 + $0x4d0] sm:$0xff]  }
 0x330   :  { %9717 = vmatpush3.bf16.msra.mxu1 %v11080_v55  ;;  %9696 = vmatprep.subr.bf16.mxu0 %v11081_v19  ;;  %v11100_v55 = vld [vmem:[%s15280_s5 + $0x488] sm:$0xff]   ;;  %v11103_v19 = vld [vmem:[%s15280_s5 + $0x410] sm:$0xff]  }
 0x331   :  { %9718 = vmatprep.subr.bf16.mxu1 %v11082_v15  ;;  %v11104_v15 = vld [vmem:[%s15280_s5 + $0x490] sm:$0xff]  }
 0x333   :  { %9697 = vmatpush3.bf16.msra.mxu0 %v11083_v62  ;;  %v11105_v62 = vld [vmem:[%s15280_s5 + $0x458] sm:$0xff]  }
 0x334   :  { %9719 = vmatpush3.bf16.msra.mxu1 %v11084_v63  ;;  %9698 = vmatprep.subr.bf16.mxu0 %v11085_v35  ;;  %v11106_v63 = vld [vmem:[%s15280_s5 + $0x4d8] sm:$0xff]  }
 0x335   :  { %9720 = vmatprep.subr.bf16.mxu1 %v11086_v38  ;;  %v11107_v35 = vld [vmem:[%s15280_s5 + $0x418] sm:$0xff]  }
 0x336   :  { %v11108_v38 = vld [vmem:[%s15280_s5 + $0x498] sm:$0xff]  }
 0x337   :  { %9699 = vmatpush3.bf16.msra.mxu0 %v11087_v8  ;;  %v11109_v8 = vld [vmem:[%s15280_s5 + $0x460] sm:$0xff]  }
 0x338   :  { %9721 = vmatpush3.bf16.msra.mxu1 %v11088_v12  ;;  %9700 = vmatprep.subr.bf16.mxu0 %v11089_v24  ;;  %v11110_v12 = vld [vmem:[%s15280_s5 + $0x4e0] sm:$0xff]  }
 0x339   :  { %9722 = vmatprep.subr.bf16.mxu1 %v11090_v43  ;;  %v11111_v24 = vld [vmem:[%s15280_s5 + $0x420] sm:$0xff]  }
 0x33a   :  { %v11112_v43 = vld [vmem:[%s15280_s5 + $0x4a0] sm:$0xff]  }
 0x33b   :  { %9701 = vmatpush3.bf16.msra.mxu0 %v11091_v61  ;;  %v11113_v61 = vld [vmem:[%s15280_s5 + $0x468] sm:$0xff]  }
 0x33c   :  { %9723 = vmatpush3.bf16.msra.mxu1 %v11092_v30  ;;  %9730 = vmatprep.subr.bf16.mxu0 %v11093_v37  ;;  %v11114_v30 = vld [vmem:[%s15280_s5 + $0x4e8] sm:$0xff]  }
 0x33d   :  { %9752 = vmatprep.subr.bf16.mxu1 %v11094_v2  ;;  %v11115_v37 = vld [vmem:[%s15280_s5 + $0x428] sm:$0xff]  }
 0x33e   :  { %3318 = vmatmul.mubr.bf16.vlgmr.msra.gmra.mrb[36].mxu0 %v3085_v11  ;;  %v11116_v2 = vld [vmem:[%s15280_s5 + $0x4a8] sm:$0xff]   ;;  %v11118_v11 = vld [vmem:[%s15280_s5 + $0x4f0] sm:$0xff]  }
 0x33f   :  { %3358 = vmatmul.mubr.bf16.vlgmr.msra.gmra.mrb[52].mxu1 %v3087_v42  ;;  %9731 = vmatpush3.bf16.msra.mxu0 %v11095_v13  ;;  %v11117_v13 = vld [vmem:[%s15280_s5 + $0x470] sm:$0xff]  }
 0x340   :  { %3675 = vmatprep.mubr.bf16.mxu0 %v3444_v40  ;;  %9753 = vmatpush3.bf16.msra.mxu1 %v11096_v14  ;;  %v11119_v14 = vld [vmem:[%s15280_s5 + $0x430] sm:$0xff]   ;;  %v11122_v40 = vld [vmem:[%s15280_s5 + $0x4f8] sm:$0xff]  }
 0x341   :  { %3715 = vmatprep.mubr.bf16.mxu1 %v3446_v5  ;;  %9732 = vmatprep.subr.bf16.mxu0 %v11097_v39  ;;  %v11120_v42 = vld [vmem:[%s15280_s5 + $0x4b0] sm:$0xff]   ;;  %v11121_v39 = vld [vmem:[%s15280_s5 + $0x478] sm:$0xff]  }
 0x342   :  { %9754 = vmatprep.subr.bf16.mxu1 %v11098_v57  ;;  %v11123_v57 = vld [vmem:[%s15280_s5 + $0x438] sm:$0xff]  }
 0x343   :  { %9733 = vmatpush3.bf16.msra.mxu0 %v11099_v21  ;;  %v11124_v5 = vld [vmem:[%s15280_s5 + $0x4b8] sm:$0xff]   ;;  %v11125_v21 = vld [vmem:[%s15280_s5 + $0x540] sm:$0xff]  }
 0x344   :  { %9755 = vmatpush3.bf16.msra.mxu1 %v11100_v55  ;;  %9734 = vmatprep.subr.bf16.mxu0 %v11101_v60  ;;  %v11126_v55 = vld [vmem:[%s15280_s5 + $0x5c0] sm:$0xff]  }
 0x345   :  { %9756 = vmatprep.subr.bf16.mxu1 %v11102_v27  ;;  %v11127_v60 = vld [vmem:[%s15280_s5 + $0x500] sm:$0xff]   ;;  %v3443_v27 = vpack.c.b16 %v13436_v6, %v13436_v6  ;;  %v11130_v6 = vld [vmem:[%s15280_s5 + $0x5c8] sm:$0xff]  }
 0x347   :  { %9735 = vmatpush3.bf16.msra.mxu0 %v11103_v19  ;;  %v11128_v19 = vld [vmem:[%s15280_s5 + $0x580] sm:$0xff]  }
 0x348   :  { %9757 = vmatpush3.bf16.msra.mxu1 %v11104_v15  ;;  %9736 = vmatprep.subr.bf16.mxu0 %v11105_v62  ;;  %v3445_v15 = vpack.c.b16 %v13448_v59, %v13448_v59  ;;  %v11129_v62 = vld [vmem:[%s15280_s5 + $0x548] sm:$0xff]  }
 0x349   :  { %9758 = vmatprep.subr.bf16.mxu1 %v11106_v63  ;;  %v3802_v63 = vpack.c.b16 %v13459_v31, %v13459_v31  ;;  %v11131_v59 = vld [vmem:[%s15280_s5 + $0x508] sm:$0xff]   ;;  %v11133_v31 = vld [vmem:[%s15280_s5 + $0x550] sm:$0xff]  }
 0x34b   :  { %9737 = vmatpush3.bf16.msra.mxu0 %v11107_v35  ;;  %v3804_v35 = vpack.c.b16 %v13464_v3, %v13464_v3  ;;  %v11134_v3 = vld [vmem:[%s15280_s5 + $0x5d0] sm:$0xff]  }
 0x34c   :  { %9759 = vmatpush3.bf16.msra.mxu1 %v11108_v38  ;;  %9738 = vmatprep.subr.bf16.mxu0 %v11109_v8  ;;  %v11132_v38 = vld [vmem:[%s15280_s5 + $0x588] sm:$0xff]   ;;  %v11135_v8 = vld [vmem:[%s15280_s5 + $0x510] sm:$0xff]  }
 0x34d   :  { %9760 = vmatprep.subr.bf16.mxu1 %v11110_v12  ;;  %v11136_v12 = vld [vmem:[%s15280_s5 + $0x590] sm:$0xff]  }
 0x34f   :  { %9739 = vmatpush3.bf16.msra.mxu0 %v11111_v24  ;;  %v11137_v24 = vld [vmem:[%s15280_s5 + $0x558] sm:$0xff]  }
 0x350   :  { %9761 = vmatpush3.bf16.msra.mxu1 %v11112_v43  ;;  %9740 = vmatprep.subr.bf16.mxu0 %v11113_v61  ;;  %v11138_v43 = vld [vmem:[%s15280_s5 + $0x5d8] sm:$0xff]  }
 0x351   :  { %9762 = vmatprep.subr.bf16.mxu1 %v11114_v30  ;;  %v11139_v61 = vld [vmem:[%s15280_s5 + $0x518] sm:$0xff]  }
 0x352   :  { %v11140_v30 = vld [vmem:[%s15280_s5 + $0x598] sm:$0xff]  }
 0x353   :  { %9741 = vmatpush3.bf16.msra.mxu0 %v11115_v37  ;;  %v11141_v37 = vld [vmem:[%s15280_s5 + $0x560] sm:$0xff]  }
 0x354   :  { %9763 = vmatpush3.bf16.msra.mxu1 %v11116_v2  ;;  %9742 = vmatprep.subr.bf16.mxu0 %v11117_v13  ;;  %v11142_v2 = vld [vmem:[%s15280_s5 + $0x5e0] sm:$0xff]  }
 0x355   :  { %9764 = vmatprep.subr.bf16.mxu1 %v11118_v11  ;;  %v11143_v13 = vld [vmem:[%s15280_s5 + $0x520] sm:$0xff]  }
 0x356   :  { %v11144_v11 = vld [vmem:[%s15280_s5 + $0x5a0] sm:$0xff]  }
 0x357   :  { %9743 = vmatpush3.bf16.msra.mxu0 %v11119_v14  ;;  %v11145_v14 = vld [vmem:[%s15280_s5 + $0x568] sm:$0xff]  }
 0x358   :  { %9765 = vmatpush3.bf16.msra.mxu1 %v11120_v42  ;;  %9744 = vmatprep.subr.bf16.mxu0 %v11121_v39  ;;  %v11146_v42 = vld [vmem:[%s15280_s5 + $0x5e8] sm:$0xff]  }
 0x359   :  { %9766 = vmatprep.subr.bf16.mxu1 %v11122_v40  ;;  %v11147_v39 = vld [vmem:[%s15280_s5 + $0x528] sm:$0xff]  }
 0x35a   :  { %v11148_v40 = vld [vmem:[%s15280_s5 + $0x5a8] sm:$0xff]  }
 0x35b   :  { %9745 = vmatpush3.bf16.msra.mxu0 %v11123_v57  ;;  %v11149_v57 = vld [vmem:[%s15280_s5 + $0x570] sm:$0xff]  }
 0x35c   :  { %9767 = vmatpush3.bf16.msra.mxu1 %v11124_v5  ;;  %9774 = vmatprep.subr.bf16.mxu0 %v11125_v21  ;;  %v11150_v5 = vld [vmem:[%s15280_s5 + $0x5f0] sm:$0xff]  }
 0x35d   :  { %9796 = vmatprep.subr.bf16.mxu1 %v11126_v55  ;;  %v11151_v21 = vld [vmem:[%s15280_s5 + $0x530] sm:$0xff]  }
 0x35e   :  { %3676 = vmatmul.mubr.bf16.vlgmr.msra.gmra.mrb[40].mxu0 %v3443_v27  ;;  %v11152_v55 = vld [vmem:[%s15280_s5 + $0x5b0] sm:$0xff]   ;;  %v11154_v27 = vld [vmem:[%s15280_s5 + $0x5f8] sm:$0xff]  }
 0x35f   :  { %3716 = vmatmul.mubr.bf16.vlgmr.msra.gmra.mrb[56].mxu1 %v3445_v15  ;;  %9775 = vmatpush3.bf16.msra.mxu0 %v11127_v60  ;;  %v11153_v60 = vld [vmem:[%s15280_s5 + $0x578] sm:$0xff]  }
 0x360   :  { %4033 = vmatprep.mubr.bf16.mxu0 %v3802_v63  ;;  %9797 = vmatpush3.bf16.msra.mxu1 %v11128_v19  ;;  %v11155_v19 = vld [vmem:[%s15280_s5 + $0x538] sm:$0xff]   ;;  %v11158_v63 = vld [vmem:[%s15280_s5 + $0x6c0] sm:$0xff]  }
 0x361   :  { %4073 = vmatprep.mubr.bf16.mxu1 %v3804_v35  ;;  %9776 = vmatprep.subr.bf16.mxu0 %v11129_v62  ;;  %v11156_v15 = vld [vmem:[%s15280_s5 + $0x5b8] sm:$0xff]   ;;  %v11157_v62 = vld [vmem:[%s15280_s5 + $0x640] sm:$0xff]   ;;  %v3801_v35 = vpack.c.b16 %v13469_v50, %v13469_v50  ;;  %v11162_v50 = vld [vmem:[%s15280_s5 + $0x6c8] sm:$0xff]  }
 0x362   :  { %9798 = vmatprep.subr.bf16.mxu1 %v11130_v6  ;;  %v11159_v6 = vld [vmem:[%s15280_s5 + $0x600] sm:$0xff]  }
 0x363   :  { %9777 = vmatpush3.bf16.msra.mxu0 %v11131_v59  ;;  %v11160_v59 = vld [vmem:[%s15280_s5 + $0x680] sm:$0xff]  }
 0x364   :  { %9799 = vmatpush3.bf16.msra.mxu1 %v11132_v38  ;;  %9778 = vmatprep.subr.bf16.mxu0 %v11133_v31  ;;  %v3803_v38 = vpack.c.b16 %v13480_v23, %v13480_v23  ;;  %v11161_v31 = vld [vmem:[%s15280_s5 + $0x648] sm:$0xff]  }
 0x365   :  { %9800 = vmatprep.subr.bf16.mxu1 %v11134_v3  ;;  %v4160_v3 = vpack.c.b16 %v13493_v33, %v13493_v33  ;;  %v11163_v23 = vld [vmem:[%s15280_s5 + $0x608] sm:$0xff]   ;;  %v11165_v33 = vld [vmem:[%s15280_s5 + $0x650] sm:$0xff]  }
 0x367   :  { %9779 = vmatpush3.bf16.msra.mxu0 %v11135_v8  ;;  %v4162_v8 = vpack.c.b16 %v13500_v17, %v13500_v17  ;;  %v11166_v17 = vld [vmem:[%s15280_s5 + $0x6d0] sm:$0xff]  }
 0x368   :  { %9801 = vmatpush3.bf16.msra.mxu1 %v11136_v12  ;;  %9780 = vmatprep.subr.bf16.mxu0 %v11137_v24  ;;  %v11164_v12 = vld [vmem:[%s15280_s5 + $0x688] sm:$0xff]   ;;  %v11167_v24 = vld [vmem:[%s15280_s5 + $0x610] sm:$0xff]  }
 0x369   :  { %9802 = vmatprep.subr.bf16.mxu1 %v11138_v43  ;;  %v11168_v43 = vld [vmem:[%s15280_s5 + $0x690] sm:$0xff]  }
 0x36b   :  { %9781 = vmatpush3.bf16.msra.mxu0 %v11139_v61  ;;  %v11169_v61 = vld [vmem:[%s15280_s5 + $0x658] sm:$0xff]  }
 0x36c   :  { %9803 = vmatpush3.bf16.msra.mxu1 %v11140_v30  ;;  %9782 = vmatprep.subr.bf16.mxu0 %v11141_v37  ;;  %v11170_v30 = vld [vmem:[%s15280_s5 + $0x6d8] sm:$0xff]  }
 0x36d   :  { %9804 = vmatprep.subr.bf16.mxu1 %v11142_v2  ;;  %v11171_v37 = vld [vmem:[%s15280_s5 + $0x618] sm:$0xff]  }
 0x36e   :  { %v11172_v2 = vld [vmem:[%s15280_s5 + $0x698] sm:$0xff]  }
 0x36f   :  { %9783 = vmatpush3.bf16.msra.mxu0 %v11143_v13  ;;  %v11173_v13 = vld [vmem:[%s15280_s5 + $0x660] sm:$0xff]  }
 0x370   :  { %9805 = vmatpush3.bf16.msra.mxu1 %v11144_v11  ;;  %9784 = vmatprep.subr.bf16.mxu0 %v11145_v14  ;;  %v11174_v11 = vld [vmem:[%s15280_s5 + $0x6e0] sm:$0xff]  }
 0x371   :  { %9806 = vmatprep.subr.bf16.mxu1 %v11146_v42  ;;  %v11175_v14 = vld [vmem:[%s15280_s5 + $0x620] sm:$0xff]  }
 0x372   :  { %v11176_v42 = vld [vmem:[%s15280_s5 + $0x6a0] sm:$0xff]  }
 0x373   :  { %9785 = vmatpush3.bf16.msra.mxu0 %v11147_v39  ;;  %v11177_v39 = vld [vmem:[%s15280_s5 + $0x668] sm:$0xff]  }
 0x374   :  { %9807 = vmatpush3.bf16.msra.mxu1 %v11148_v40  ;;  %9786 = vmatprep.subr.bf16.mxu0 %v11149_v57  ;;  %v11178_v40 = vld [vmem:[%s15280_s5 + $0x6e8] sm:$0xff]  }
 0x375   :  { %9808 = vmatprep.subr.bf16.mxu1 %v11150_v5  ;;  %v11179_v57 = vld [vmem:[%s15280_s5 + $0x628] sm:$0xff]  }
 0x376   :  { %v11180_v5 = vld [vmem:[%s15280_s5 + $0x6a8] sm:$0xff]  }
 0x377   :  { %9787 = vmatpush3.bf16.msra.mxu0 %v11151_v21  ;;  %v11181_v21 = vld [vmem:[%s15280_s5 + $0x670] sm:$0xff]  }
 0x378   :  { %9809 = vmatpush3.bf16.msra.mxu1 %v11152_v55  ;;  %9788 = vmatprep.subr.bf16.mxu0 %v11153_v60  ;;  %v11182_v55 = vld [vmem:[%s15280_s5 + $0x6f0] sm:$0xff]  }
 0x379   :  { %9810 = vmatprep.subr.bf16.mxu1 %v11154_v27  ;;  %v11183_v60 = vld [vmem:[%s15280_s5 + $0x630] sm:$0xff]  }
 0x37a   :  { %v11184_v27 = vld [vmem:[%s15280_s5 + $0x6b0] sm:$0xff]  }
 0x37b   :  { %9789 = vmatpush3.bf16.msra.mxu0 %v11155_v19  ;;  %v11185_v19 = vld [vmem:[%s15280_s5 + $0x678] sm:$0xff]  }
 0x37c   :  { %9811 = vmatpush3.bf16.msra.mxu1 %v11156_v15  ;;  %9818 = vmatprep.subr.bf16.mxu0 %v11157_v62  ;;  %v11186_v15 = vld [vmem:[%s15280_s5 + $0x6f8] sm:$0xff]  }
 0x37d   :  { %9840 = vmatprep.subr.bf16.mxu1 %v11158_v63  ;;  %v11187_v62 = vld [vmem:[%s15280_s5 + $0x638] sm:$0xff]  }
 0x37e   :  { %4034 = vmatmul.mubr.bf16.vlgmr.msra.gmra.mrb[44].mxu0 %v3801_v35  ;;  %v11188_v63 = vld [vmem:[%s15280_s5 + $0x6b8] sm:$0xff]   ;;  %v11190_v35 = vld [vmem:[%s15280_s5 + $0x7c0] sm:$0xff]  }
 0x37f   :  { %4074 = vmatmul.mubr.bf16.vlgmr.msra.gmra.mrb[60].mxu1 %v3803_v38  ;;  %9819 = vmatpush3.bf16.msra.mxu0 %v11159_v6  ;;  %v11189_v6 = vld [vmem:[%s15280_s5 + $0x740] sm:$0xff]   ;;  %v4159_v38 = vpack.c.b16 %v13507_v47, %v13507_v47  ;;  %v11194_v47 = vld [vmem:[%s15280_s5 + $0x7c8] sm:$0xff]  }
 0x380   :  { %4391 = vmatprep.mubr.bf16.mxu0 %v4160_v3  ;;  %9841 = vmatpush3.bf16.msra.mxu1 %v11160_v59  ;;  %v11191_v59 = vld [vmem:[%s15280_s5 + $0x700] sm:$0xff]   ;;  %v4161_v3 = vpack.c.b16 %v13520_v58, %v13520_v58  ;;  %v11195_v58 = vld [vmem:[%s15280_s5 + $0x708] sm:$0xff]  }
 0x381   :  { %4431 = vmatprep.mubr.bf16.mxu1 %v4162_v8  ;;  %9820 = vmatprep.subr.bf16.mxu0 %v11161_v31  ;;  %v11192_v31 = vld [vmem:[%s15280_s5 + $0x780] sm:$0xff]   ;;  %v4518_v8 = vpack.c.b16 %v13534_v25, %v13534_v25  ;;  %v11197_v25 = vld [vmem:[%s15280_s5 + $0x750] sm:$0xff]  }
 0x382   :  { %9842 = vmatprep.subr.bf16.mxu1 %v11162_v50  ;;  %v11193_v50 = vld [vmem:[%s15280_s5 + $0x748] sm:$0xff]  }
 0x383   :  { %9821 = vmatpush3.bf16.msra.mxu0 %v11163_v23  ;;  %v4520_v23 = vpack.c.b16 %v13539_v22, %v13539_v22  ;;  %v11198_v22 = vld [vmem:[%s15280_s5 + $0x7d0] sm:$0xff]  }
 0x384   :  { %9843 = vmatpush3.bf16.msra.mxu1 %v11164_v12  ;;  %9822 = vmatprep.subr.bf16.mxu0 %v11165_v33  ;;  %v11196_v12 = vld [vmem:[%s15280_s5 + $0x788] sm:$0xff]   ;;  %v11199_v33 = vld [vmem:[%s15280_s5 + $0x710] sm:$0xff]  }
 0x385   :  { %9844 = vmatprep.subr.bf16.mxu1 %v11166_v17  ;;  %v11200_v17 = vld [vmem:[%s15280_s5 + $0x790] sm:$0xff]  }
 0x387   :  { %9823 = vmatpush3.bf16.msra.mxu0 %v11167_v24  ;;  %v11201_v24 = vld [vmem:[%s15280_s5 + $0x758] sm:$0xff]  }
 0x388   :  { %9845 = vmatpush3.bf16.msra.mxu1 %v11168_v43  ;;  %9824 = vmatprep.subr.bf16.mxu0 %v11169_v61  ;;  %v11202_v43 = vld [vmem:[%s15280_s5 + $0x7d8] sm:$0xff]  }
 0x389   :  { %9846 = vmatprep.subr.bf16.mxu1 %v11170_v30  ;;  %v11203_v61 = vld [vmem:[%s15280_s5 + $0x718] sm:$0xff]  }
 0x38a   :  { %v11204_v30 = vld [vmem:[%s15280_s5 + $0x798] sm:$0xff]  }
 0x38b   :  { %9825 = vmatpush3.bf16.msra.mxu0 %v11171_v37  ;;  %v11205_v37 = vld [vmem:[%s15280_s5 + $0x760] sm:$0xff]  }
 0x38c   :  { %9847 = vmatpush3.bf16.msra.mxu1 %v11172_v2  ;;  %9826 = vmatprep.subr.bf16.mxu0 %v11173_v13  ;;  %v11206_v2 = vld [vmem:[%s15280_s5 + $0x7e0] sm:$0xff]  }
 0x38d   :  { %9848 = vmatprep.subr.bf16.mxu1 %v11174_v11  ;;  %v11207_v13 = vld [vmem:[%s15280_s5 + $0x720] sm:$0xff]  }
 0x38e   :  { %v11208_v11 = vld [vmem:[%s15280_s5 + $0x7a0] sm:$0xff]  }
 0x38f   :  { %9827 = vmatpush3.bf16.msra.mxu0 %v11175_v14  ;;  %v11209_v14 = vld [vmem:[%s15280_s5 + $0x768] sm:$0xff]  }
 0x390   :  { %9849 = vmatpush3.bf16.msra.mxu1 %v11176_v42  ;;  %9828 = vmatprep.subr.bf16.mxu0 %v11177_v39  ;;  %v11210_v42 = vld [vmem:[%s15280_s5 + $0x7e8] sm:$0xff]  }
 0x391   :  { %9850 = vmatprep.subr.bf16.mxu1 %v11178_v40  ;;  %v11211_v39 = vld [vmem:[%s15280_s5 + $0x728] sm:$0xff]  }
 0x392   :  { %v11212_v40 = vld [vmem:[%s15280_s5 + $0x7a8] sm:$0xff]  }
 0x393   :  { %9829 = vmatpush3.bf16.msra.mxu0 %v11179_v57  ;;  %v11213_v57 = vld [vmem:[%s15280_s5 + $0x770] sm:$0xff]  }
 0x394   :  { %9851 = vmatpush3.bf16.msra.mxu1 %v11180_v5  ;;  %9830 = vmatprep.subr.bf16.mxu0 %v11181_v21 }
 0x395   :  { %9852 = vmatprep.subr.bf16.mxu1 %v11182_v55  ;;  %v11214_v55 = vld [vmem:[%s15280_s5 + $0x7f0] sm:$0xff]  }
 0x397   :  { %9831 = vmatpush3.bf16.msra.mxu0 %v11183_v60 }
 0x398   :  { %9853 = vmatpush3.bf16.msra.mxu1 %v11184_v27  ;;  %9832 = vmatprep.subr.bf16.mxu0 %v11185_v19 }
 0x399   :  { %9854 = vmatprep.subr.bf16.mxu1 %v11186_v15 }
 0x39b   :  { %9833 = vmatpush3.bf16.msra.mxu0 %v11187_v62 }
 0x39c   :  { %9855 = vmatpush3.bf16.msra.mxu1 %v11188_v63  ;;  %9862 = vmatprep.subr.bf16.mxu0 %v11189_v6  ;;  %v11215_v6 = vld [vmem:[%s15280_s5 + $0x730] sm:$0xff]  }
 0x39d   :  { %9884 = vmatprep.subr.bf16.mxu1 %v11190_v35 }
 0x39e   :  { %4392 = vmatmul.mubr.bf16.vlgmr.msra.gmra.mrb[48].mxu0 %v4159_v38  ;;  %v11216_v38 = vld [vmem:[%s15280_s5 + $0x7b0] sm:$0xff]  }
 0x39f   :  { %4432 = vmatmul.mubr.bf16.vlgmr.msra.gmra.mrb[64].mxu1 %v4161_v3  ;;  %9863 = vmatpush3.bf16.msra.mxu0 %v11191_v59 }
 0x3a0   :  { %4749 = vmatprep.mubr.bf16.mxu0 %v4518_v8  ;;  %9885 = vmatpush3.bf16.msra.mxu1 %v11192_v31  ;;  %v11217_v31 = vld [vmem:[%s15280_s5 + $0x778] sm:$0xff]  }
 0x3a1   :  { %4789 = vmatprep.mubr.bf16.mxu1 %v4520_v23  ;;  %9864 = vmatprep.subr.bf16.mxu0 %v11193_v50  ;;  %v11218_v50 = vld [vmem:[%s15280_s5 + $0x7f8] sm:$0xff]   ;;  %v11221_v23 = vld [vmem:[%s15280_s5 + $0x840] sm:$0xff]  }
 0x3a2   :  { %9886 = vmatprep.subr.bf16.mxu1 %v11194_v47  ;;  %v11219_v8 = vld [vmem:[%s15280_s5 + $0x738] sm:$0xff]  }
 0x3a3   :  { %9865 = vmatpush3.bf16.msra.mxu0 %v11195_v58  ;;  %v11220_v47 = vld [vmem:[%s15280_s5 + $0x7b8] sm:$0xff]   ;;  %v11222_v58 = vld [vmem:[%s15280_s5 + $0x8c0] sm:$0xff]  }
 0x3a4   :  { %9887 = vmatpush3.bf16.msra.mxu1 %v11196_v12  ;;  %9866 = vmatprep.subr.bf16.mxu0 %v11197_v25  ;;  %v11223_v12 = vld [vmem:[%s15280_s5 + $0x800] sm:$0xff]   ;;  %v4517_v25 = vpack.c.b16 %v13548_v51, %v13548_v51  ;;  %v11226_v51 = vld [vmem:[%s15280_s5 + $0x8c8] sm:$0xff]  }
 0x3a5   :  { %9888 = vmatprep.subr.bf16.mxu1 %v11198_v22  ;;  %v11224_v22 = vld [vmem:[%s15280_s5 + $0x880] sm:$0xff]  }
 0x3a7   :  { %9867 = vmatpush3.bf16.msra.mxu0 %v11199_v33  ;;  %v4519_v33 = vpack.c.b16 %v13562_v52, %v13562_v52  ;;  %v11227_v52 = vld [vmem:[%s15280_s5 + $0x808] sm:$0xff]  }
 0x3a8   :  { %9889 = vmatpush3.bf16.msra.mxu1 %v11200_v17  ;;  %9868 = vmatprep.subr.bf16.mxu0 %v11201_v24  ;;  %v11225_v17 = vld [vmem:[%s15280_s5 + $0x848] sm:$0xff]   ;;  %v4896_v24 = vpack.c.b16 %v13566_v48, %v13566_v48  ;;  %v11229_v48 = vld [vmem:[%s15280_s5 + $0x850] sm:$0xff]  }
 0x3a9   :  { %9890 = vmatprep.subr.bf16.mxu1 %v11202_v43  ;;  %v4898_v43 = vpack.c.b16 %v13577_v1, %v13577_v1  ;;  %v11230_v1 = vld [vmem:[%s15280_s5 + $0x8d0] sm:$0xff]  }
 0x3ab   :  { %9869 = vmatpush3.bf16.msra.mxu0 %v11203_v61  ;;  %v11228_v61 = vld [vmem:[%s15280_s5 + $0x888] sm:$0xff]  }
 0x3ac   :  { %9891 = vmatpush3.bf16.msra.mxu1 %v11204_v30  ;;  %9870 = vmatprep.subr.bf16.mxu0 %v11205_v37  ;;  %v11231_v30 = vld [vmem:[%s15280_s5 + $0x810] sm:$0xff]  }
 0x3ad   :  { %9892 = vmatprep.subr.bf16.mxu1 %v11206_v2  ;;  %v11232_v37 = vld [vmem:[%s15280_s5 + $0x890] sm:$0xff]   ;;  %v11233_v2 = vld [vmem:[%s15280_s5 + $0x858] sm:$0xff]  }
 0x3af   :  { %9871 = vmatpush3.bf16.msra.mxu0 %v11207_v13  ;;  %v11234_v13 = vld [vmem:[%s15280_s5 + $0x8d8] sm:$0xff]  }
 0x3b0   :  { %9893 = vmatpush3.bf16.msra.mxu1 %v11208_v11  ;;  %9872 = vmatprep.subr.bf16.mxu0 %v11209_v14  ;;  %v11235_v11 = vld [vmem:[%s15280_s5 + $0x818] sm:$0xff]  }
 0x3b1   :  { %v9570_v5 = vpop.f32.mrb[24].mxu0  ;;  %v9592_v21 = vpop.f32.mrb[40].mxu1  ;;  %9894 = vmatprep.subr.bf16.mxu1 %v11210_v42  ;;  %v11236_v14 = vld [vmem:[%s15280_s5 + $0x898] sm:$0xff]   ;;  %v11237_v42 = vld [vmem:[%s15280_s5 + $0x860] sm:$0xff]  }
 0x3b2   :  { %v9571_v60 = vpop.f32.mrb[25].mxu0  ;;  %v9593_v27 = vpop.f32.mrb[41].mxu1 }
 0x3b3   :  { %v9572_v19 = vadd.f32 %v9571_v60, %v9570_v5  ;;  %v9594_v15 = vadd.f32 %v9593_v27, %v9592_v21  ;;  %9873 = vmatpush3.bf16.msra.mxu0 %v11211_v39  ;;  %v9573_v62 = vpop.f32.mrb[26].mxu0  ;;  %v9595_v63 = vpop.f32.mrb[42].mxu1  ;;  %v11238_v39 = vld [vmem:[%s15280_s5 + $0x8e0] sm:$0xff]   ;;  %v11241_v5 = vld [vmem:[%s15280_s5 + $0x868] sm:$0xff]   ;;  %v11245_v27 = vld [vmem:[%s15280_s5 + $0x870] sm:$0xff]  }
 0x3b4   :  { %9895 = vmatpush3.bf16.msra.mxu1 %v11212_v40  ;;  %v9574_v35 = vpop.f32.mrb[27].mxu0  ;;  %v9596_v59 = vpop.f32.mrb[43].mxu1  ;;  %9874 = vmatprep.subr.bf16.mxu0 %v11213_v57  ;;  %v11239_v40 = vld [vmem:[%s15280_s5 + $0x820] sm:$0xff]   ;;  %v11242_v21 = vld [vmem:[%s15280_s5 + $0x8e8] sm:$0xff]   ;;  %v11246_v62 = vld [vmem:[%s15280_s5 + $0x8f0] sm:$0xff]  }
 0x3b5   :  { %v14336_v3 = vadd.f32 %v9594_v15, %v9572_v19  ;;  %9896 = vmatprep.subr.bf16.mxu1 %v11214_v55  ;;  %v11240_v57 = vld [vmem:[%s15280_s5 + $0x8a0] sm:$0xff]   ;;  %v11243_v55 = vld [vmem:[%s15280_s5 + $0x828] sm:$0xff]  }
 0x3b6   :  { %v11244_v60 = vld [vmem:[%s15280_s5 + $0x8a8] sm:$0xff]  }
 0x3b7   :  { %9875 = vmatpush3.bf16.msra.mxu0 %v11215_v6 }
 0x3b8   :  { %9897 = vmatpush3.bf16.msra.mxu1 %v11216_v38  ;;  %9876 = vmatprep.subr.bf16.mxu0 %v11217_v31 }
 0x3b9   :  { %9898 = vmatprep.subr.bf16.mxu1 %v11218_v50  ;;  %v11247_v50 = vld [vmem:[%s15280_s5 + $0x830] sm:$0xff]  }
 0x3bb   :  { %9877 = vmatpush3.bf16.msra.mxu0 %v11219_v8 }
 0x3bc   :  { %9899 = vmatpush3.bf16.msra.mxu1 %v11220_v47  ;;  %9906 = vmatprep.subr.bf16.mxu0 %v11221_v23  ;;  %v11248_v23 = vld [vmem:[%s15280_s5 + $0x8b0] sm:$0xff]  }
 0x3bd   :  { %9928 = vmatprep.subr.bf16.mxu1 %v11222_v58  ;;  %v11249_v58 = vld [vmem:[%s15280_s5 + $0x878] sm:$0xff]  }
 0x3be   :  { %4750 = vmatmul.mubr.bf16.vlgmr.msra.gmra.mrb[52].mxu0 %v4517_v25  ;;  %v11250_v25 = vld [vmem:[%s15280_s5 + $0x8f8] sm:$0xff]  }
 0x3bf   :  { %4790 = vmatmul.mubr.bf16.vlgmr.msra.gmra.mrb[68].mxu1 %v4519_v33  ;;  %9907 = vmatpush3.bf16.msra.mxu0 %v11223_v12  ;;  %v11251_v33 = vld [vmem:[%s15280_s5 + $0x838] sm:$0xff]  }
 0x3c0   :  { %5127 = vmatprep.mubr.bf16.mxu0 %v4896_v24  ;;  %9929 = vmatpush3.bf16.msra.mxu1 %v11224_v22  ;;  %v11254_v24 = vld [vmem:[%s15280_s5 + $0x9c0] sm:$0xff]  }
 0x3c1   :  { %5167 = vmatprep.mubr.bf16.mxu1 %v4898_v43  ;;  %9908 = vmatprep.subr.bf16.mxu0 %v11225_v17  ;;  %v11252_v17 = vld [vmem:[%s15280_s5 + $0x8b8] sm:$0xff]   ;;  %v4895_v43 = vpack.c.b16 %v13582_v26, %v13582_v26  ;;  %v11258_v26 = vld [vmem:[%s15280_s5 + $0x9c8] sm:$0xff]  }
 0x3c2   :  { %9930 = vmatprep.subr.bf16.mxu1 %v11226_v51  ;;  %v11255_v51 = vld [vmem:[%s15280_s5 + $0x900] sm:$0xff]  }
 0x3c3   :  { %9909 = vmatpush3.bf16.msra.mxu0 %v11227_v52  ;;  %v11256_v52 = vld [vmem:[%s15280_s5 + $0x980] sm:$0xff]  }
 0x3c4   :  { %9931 = vmatpush3.bf16.msra.mxu1 %v11228_v61  ;;  %9910 = vmatprep.subr.bf16.mxu0 %v11229_v48  ;;  %v4897_v61 = vpack.c.b16 %v13586_v32, %v13586_v32  ;;  %v11257_v48 = vld [vmem:[%s15280_s5 + $0x948] sm:$0xff]  }
 0x3c5   :  { %9932 = vmatprep.subr.bf16.mxu1 %v11230_v1  ;;  %v5250_v1 = vpack.c.b16 %v13591_v10, %v13591_v10  ;;  %v11259_v32 = vld [vmem:[%s15280_s5 + $0x908] sm:$0xff]   ;;  %v11261_v10 = vld [vmem:[%s15280_s5 + $0x950] sm:$0xff]  }
 0x3c7   :  { %9911 = vmatpush3.bf16.msra.mxu0 %v11231_v30  ;;  %v5252_v30 = vpack.c.b16 %v13601_v56, %v13601_v56  ;;  %v11262_v56 = vld [vmem:[%s15280_s5 + $0x9d0] sm:$0xff]  }
 0x3c8   :  { %9933 = vmatpush3.bf16.msra.mxu1 %v11232_v37  ;;  %9912 = vmatprep.subr.bf16.mxu0 %v11233_v2  ;;  %v11260_v37 = vld [vmem:[%s15280_s5 + $0x988] sm:$0xff]   ;;  %v11263_v2 = vld [vmem:[%s15280_s5 + $0x910] sm:$0xff]  }
 0x3c9   :  { %9934 = vmatprep.subr.bf16.mxu1 %v11234_v13  ;;  %v11264_v13 = vld [vmem:[%s15280_s5 + $0x990] sm:$0xff]  }
 0x3cb   :  { %9913 = vmatpush3.bf16.msra.mxu0 %v11235_v11  ;;  %v11265_v11 = vld [vmem:[%s15280_s5 + $0x958] sm:$0xff]  }
 0x3cc   :  { %9935 = vmatpush3.bf16.msra.mxu1 %v11236_v14  ;;  %9914 = vmatprep.subr.bf16.mxu0 %v11237_v42  ;;  %v11266_v14 = vld [vmem:[%s15280_s5 + $0x9d8] sm:$0xff]  }
 0x3cd   :  { %9936 = vmatprep.subr.bf16.mxu1 %v11238_v39  ;;  %v11267_v42 = vld [vmem:[%s15280_s5 + $0x918] sm:$0xff]  }
 0x3ce   :  { %v11268_v39 = vld [vmem:[%s15280_s5 + $0x998] sm:$0xff]  }
 0x3cf   :  { %9915 = vmatpush3.bf16.msra.mxu0 %v11239_v40  ;;  %v11269_v40 = vld [vmem:[%s15280_s5 + $0x960] sm:$0xff]  }
 0x3d0   :  { %9937 = vmatpush3.bf16.msra.mxu1 %v11240_v57  ;;  %9916 = vmatprep.subr.bf16.mxu0 %v11241_v5  ;;  %v11270_v57 = vld [vmem:[%s15280_s5 + $0x9e0] sm:$0xff]  }
 0x3d1   :  { %v9614_v19 = vpop.f32.mrb[28].mxu0  ;;  %v9636_v15 = vpop.f32.mrb[44].mxu1  ;;  %9938 = vmatprep.subr.bf16.mxu1 %v11242_v21  ;;  %v11271_v5 = vld [vmem:[%s15280_s5 + $0x920] sm:$0xff]  }
 0x3d2   :  { %v9615_v63 = vpop.f32.mrb[29].mxu0  ;;  %v9637_v6 = vpop.f32.mrb[45].mxu1  ;;  %v11272_v21 = vld [vmem:[%s15280_s5 + $0x9a0] sm:$0xff]  }
 0x3d3   :  { %v9616_v35 = vadd.f32 %v9615_v63, %v9614_v19  ;;  %v9638_v59 = vadd.f32 %v9637_v6, %v9636_v15  ;;  %v9617_v38 = vpop.f32.mrb[30].mxu0  ;;  %v9639_v31 = vpop.f32.mrb[46].mxu1  ;;  %9917 = vmatpush3.bf16.msra.mxu0 %v11243_v55  ;;  %v11273_v55 = vld [vmem:[%s15280_s5 + $0x968] sm:$0xff]   ;;  %v11277_v15 = vld [vmem:[%s15280_s5 + $0x970] sm:$0xff]  }
 0x3d4   :  { %9939 = vmatpush3.bf16.msra.mxu1 %v11244_v60  ;;  %v9618_v8 = vpop.f32.mrb[31].mxu0  ;;  %v9640_v47 = vpop.f32.mrb[47].mxu1  ;;  %9918 = vmatprep.subr.bf16.mxu0 %v11245_v27  ;;  %v11274_v60 = vld [vmem:[%s15280_s5 + $0x9e8] sm:$0xff]   ;;  %v11278_v63 = vld [vmem:[%s15280_s5 + $0x9f0] sm:$0xff]  }
 0x3d5   :  { %v2605_v12 = vadd.f32 %v9616_v35, %v14336_v3  ;;  %9940 = vmatprep.subr.bf16.mxu1 %v11246_v62  ;;  %v11253_v3 = vld [vmem:[%s15280_s5 + $0x940] sm:$0xff]   ;;  %v11275_v27 = vld [vmem:[%s15280_s5 + $0x928] sm:$0xff]  }
 0x3d6   :  { %v11276_v19 = vld [vmem:[%s15280_s5 + $0x9a8] sm:$0xff]  }
 0x3d7   :  { %v14446_v22 = vadd.f32 %v9638_v59, %v2605_v12  ;;  %9919 = vmatpush3.bf16.msra.mxu0 %v11247_v50  ;;  %v11279_v50 = vld [vmem:[%s15280_s5 + $0x930] sm:$0xff]   ;;  %v11281_v12 = vld [vmem:[%s15280_s5 + $0x978] sm:$0xff]  }
 0x3d8   :  { %9941 = vmatpush3.bf16.msra.mxu1 %v11248_v23  ;;  %9920 = vmatprep.subr.bf16.mxu0 %v11249_v58  ;;  %v11280_v58 = vld [vmem:[%s15280_s5 + $0x9b0] sm:$0xff]  }
 0x3d9   :  { %9942 = vmatprep.subr.bf16.mxu1 %v11250_v25 }
 0x3db   :  { %9921 = vmatpush3.bf16.msra.mxu0 %v11251_v33  ;;  %v11282_v33 = vld [vmem:[%s15280_s5 + $0x9f8] sm:$0xff]  }
 0x3dc   :  { %9943 = vmatpush3.bf16.msra.mxu1 %v11252_v17  ;;  %9950 = vmatprep.subr.bf16.mxu0 %v11253_v3  ;;  %v11283_v3 = vld [vmem:[%s15280_s5 + $0x938] sm:$0xff]  }
 0x3dd   :  { %9972 = vmatprep.subr.bf16.mxu1 %v11254_v24 }
 0x3de   :  { %5128 = vmatmul.mubr.bf16.vlgmr.msra.gmra.mrb[56].mxu0 %v4895_v43  ;;  %v11285_v43 = vld [vmem:[%s15280_s5 + $0xa40] sm:$0xff]  }
 0x3df   :  { %5168 = vmatmul.mubr.bf16.vlgmr.msra.gmra.mrb[72].mxu1 %v4897_v61  ;;  %9951 = vmatpush3.bf16.msra.mxu0 %v11255_v51  ;;  %v11284_v51 = vld [vmem:[%s15280_s5 + $0x9b8] sm:$0xff]   ;;  %v5249_v61 = vpack.c.b16 %v13611_v36, %v13611_v36  ;;  %v11290_v36 = vld [vmem:[%s15280_s5 + $0xac8] sm:$0xff]  }
 0x3e0   :  { %5481 = vmatprep.mubr.bf16.mxu0 %v5250_v1  ;;  %9973 = vmatpush3.bf16.msra.mxu1 %v11256_v52  ;;  %v11286_v52 = vld [vmem:[%s15280_s5 + $0xac0] sm:$0xff]   ;;  %v5251_v1 = vpack.c.b16 %v13625_v41, %v13625_v41  ;;  %v11291_v41 = vld [vmem:[%s15280_s5 + $0xa08] sm:$0xff]  }
 0x3e1   :  { %5521 = vmatprep.mubr.bf16.mxu1 %v5252_v30  ;;  %9952 = vmatprep.subr.bf16.mxu0 %v11257_v48  ;;  %v11288_v48 = vld [vmem:[%s15280_s5 + $0xa80] sm:$0xff]   ;;  %v5608_v30 = vpack.c.b16 %v13632_v53, %v13632_v53  ;;  %v11293_v53 = vld [vmem:[%s15280_s5 + $0xa50] sm:$0xff]  }
 0x3e2   :  { %9974 = vmatprep.subr.bf16.mxu1 %v11258_v26  ;;  %v11289_v26 = vld [vmem:[%s15280_s5 + $0xa48] sm:$0xff]  }
 0x3e3   :  { %9953 = vmatpush3.bf16.msra.mxu0 %v11259_v32  ;;  %v5610_v32 = vpack.c.b16 %v13640_v16, %v13640_v16  ;;  %v11294_v16 = vld [vmem:[%s15280_s5 + $0xad0] sm:$0xff]  }
 0x3e4   :  { %9975 = vmatpush3.bf16.msra.mxu1 %v11260_v37  ;;  %9954 = vmatprep.subr.bf16.mxu0 %v11261_v10  ;;  %v11292_v37 = vld [vmem:[%s15280_s5 + $0xa88] sm:$0xff]   ;;  %v11295_v10 = vld [vmem:[%s15280_s5 + $0xa10] sm:$0xff]  }
 0x3e5   :  { %9976 = vmatprep.subr.bf16.mxu1 %v11262_v56  ;;  %v11296_v56 = vld [vmem:[%s15280_s5 + $0xa90] sm:$0xff]  }
 0x3e7   :  { %9955 = vmatpush3.bf16.msra.mxu0 %v11263_v2  ;;  %v11297_v2 = vld [vmem:[%s15280_s5 + $0xa58] sm:$0xff]  }
 0x3e8   :  { %9977 = vmatpush3.bf16.msra.mxu1 %v11264_v13  ;;  %9956 = vmatprep.subr.bf16.mxu0 %v11265_v11  ;;  %v11298_v13 = vld [vmem:[%s15280_s5 + $0xad8] sm:$0xff]  }
 0x3e9   :  { %9978 = vmatprep.subr.bf16.mxu1 %v11266_v14  ;;  %v11299_v11 = vld [vmem:[%s15280_s5 + $0xa18] sm:$0xff]  }
 0x3ea   :  { %v11300_v14 = vld [vmem:[%s15280_s5 + $0xa98] sm:$0xff]  }
 0x3eb   :  { %9957 = vmatpush3.bf16.msra.mxu0 %v11267_v42  ;;  %v11301_v42 = vld [vmem:[%s15280_s5 + $0xa60] sm:$0xff]  }
 0x3ec   :  { %9979 = vmatpush3.bf16.msra.mxu1 %v11268_v39  ;;  %9958 = vmatprep.subr.bf16.mxu0 %v11269_v40  ;;  %v11302_v39 = vld [vmem:[%s15280_s5 + $0xae0] sm:$0xff]  }
 0x3ed   :  { %9980 = vmatprep.subr.bf16.mxu1 %v11270_v57  ;;  %v11303_v40 = vld [vmem:[%s15280_s5 + $0xa20] sm:$0xff]  }
 0x3ee   :  { %v11304_v57 = vld [vmem:[%s15280_s5 + $0xaa0] sm:$0xff]  }
 0x3ef   :  { %9959 = vmatpush3.bf16.msra.mxu0 %v11271_v5  ;;  %v11305_v5 = vld [vmem:[%s15280_s5 + $0xa68] sm:$0xff]  }
 0x3f0   :  { %9981 = vmatpush3.bf16.msra.mxu1 %v11272_v21  ;;  %9960 = vmatprep.subr.bf16.mxu0 %v11273_v55  ;;  %v11306_v21 = vld [vmem:[%s15280_s5 + $0xae8] sm:$0xff]  }
 0x3f1   :  { %v9658_v62 = vpop.f32.mrb[32].mxu0  ;;  %9982 = vmatprep.subr.bf16.mxu1 %v11274_v60  ;;  %v11307_v55 = vld [vmem:[%s15280_s5 + $0xa28] sm:$0xff]  }
 0x3f2   :  { %v9680_v6 = vpop.f32.mrb[48].mxu1  ;;  %v9659_v35 = vpop.f32.mrb[33].mxu0  ;;  %v11308_v60 = vld [vmem:[%s15280_s5 + $0xaa8] sm:$0xff]  }
 0x3f3   :  { %v9660_v59 = vadd.f32 %v9659_v35, %v9658_v62  ;;  %v9681_v38 = vpop.f32.mrb[49].mxu1  ;;  %v9661_v31 = vpop.f32.mrb[34].mxu0  ;;  %9961 = vmatpush3.bf16.msra.mxu0 %v11275_v27  ;;  %v11309_v27 = vld [vmem:[%s15280_s5 + $0xa70] sm:$0xff]  }
 0x3f4   :  { %v9682_v8 = vadd.f32 %v9681_v38, %v9680_v6  ;;  %v9683_v47 = vpop.f32.mrb[50].mxu1  ;;  %9983 = vmatpush3.bf16.msra.mxu1 %v11276_v19  ;;  %v9662_v23 = vpop.f32.mrb[35].mxu0  ;;  %9962 = vmatprep.subr.bf16.mxu0 %v11277_v15  ;;  %v11310_v15 = vld [vmem:[%s15280_s5 + $0xaf0] sm:$0xff]  }
 0x3f5   :  { %v9684_v25 = vpop.f32.mrb[51].mxu1  ;;  %9984 = vmatprep.subr.bf16.mxu1 %v11278_v63  ;;  %v11311_v38 = vld [vmem:[%s15280_s5 + $0xa30] sm:$0xff]   ;;  %v11313_v23 = vld [vmem:[%s15280_s5 + $0xa78] sm:$0xff]  }
 0x3f6   :  { %v3002_v17 = vadd.f32 %v9682_v8, %v9660_v59  ;;  %v11312_v47 = vld [vmem:[%s15280_s5 + $0xab0] sm:$0xff]  }
 0x3f7   :  { %9963 = vmatpush3.bf16.msra.mxu0 %v11279_v50 }
 0x3f8   :  { %v14556_v24 = vadd.f32 %v3002_v17, %v14446_v22  ;;  %9985 = vmatpush3.bf16.msra.mxu1 %v11280_v58  ;;  %9964 = vmatprep.subr.bf16.mxu0 %v11281_v12  ;;  %v11287_v22 = vld [vmem:[%s15280_s5 + $0xa00] sm:$0xff]   ;;  %v11314_v12 = vld [vmem:[%s15280_s5 + $0xaf8] sm:$0xff]  }
 0x3f9   :  { %9986 = vmatprep.subr.bf16.mxu1 %v11282_v33  ;;  %v11315_v33 = vld [vmem:[%s15280_s5 + $0xa38] sm:$0xff]  }
 0x3fb   :  { %9965 = vmatpush3.bf16.msra.mxu0 %v11283_v3  ;;  %v11316_v3 = vld [vmem:[%s15280_s5 + $0xab8] sm:$0xff]  }
 0x3fc   :  { %9987 = vmatpush3.bf16.msra.mxu1 %v11284_v51  ;;  %9994 = vmatprep.subr.bf16.mxu0 %v11285_v43  ;;  %v11317_v51 = vld [vmem:[%s15280_s5 + $0xb40] sm:$0xff]  }
 0x3fd   :  { %10016 = vmatprep.subr.bf16.mxu1 %v11286_v52  ;;  %v11318_v43 = vld [vmem:[%s15280_s5 + $0xbc0] sm:$0xff]   ;;  %v5607_v52 = vpack.c.b16 %v13651_v0, %v13651_v0  ;;  %v11322_v0 = vld [vmem:[%s15280_s5 + $0xbc8] sm:$0xff]  }
 0x3fe   :  { %5482 = vmatmul.mubr.bf16.vlgmr.msra.gmra.mrb[60].mxu0 %v5249_v61  ;;  %v5609_v61 = vpack.c.b16 %v13659_v45, %v13659_v45  ;;  %v11323_v45 = vld [vmem:[%s15280_s5 + $0xb08] sm:$0xff]  }
 0x3ff   :  { %5522 = vmatmul.mubr.bf16.vlgmr.msra.gmra.mrb[76].mxu1 %v5251_v1  ;;  %9995 = vmatpush3.bf16.msra.mxu0 %v11287_v22  ;;  %v11320_v22 = vld [vmem:[%s15280_s5 + $0xb80] sm:$0xff]   ;;  %v5966_v1 = vpack.c.b16 %v13664_v29, %v13664_v29  ;;  %v11325_v29 = vld [vmem:[%s15280_s5 + $0xb50] sm:$0xff]  }
 0x400   :  { %5839 = vmatprep.mubr.bf16.mxu0 %v5608_v30  ;;  %10017 = vmatpush3.bf16.msra.mxu1 %v11288_v48  ;;  %v11321_v48 = vld [vmem:[%s15280_s5 + $0xb48] sm:$0xff]  }
 0x401   :  { %5879 = vmatprep.mubr.bf16.mxu1 %v5610_v32  ;;  %9996 = vmatprep.subr.bf16.mxu0 %v11289_v26  ;;  %v5968_v26 = vpack.c.b16 %v13672_v18, %v13672_v18  ;;  %v11324_v30 = vld [vmem:[%s15280_s5 + $0xb88] sm:$0xff]   ;;  %v11326_v18 = vld [vmem:[%s15280_s5 + $0xbd0] sm:$0xff]  }
 0x402   :  { %10018 = vmatprep.subr.bf16.mxu1 %v11290_v36  ;;  %v11327_v36 = vld [vmem:[%s15280_s5 + $0xb10] sm:$0xff]  }
 0x403   :  { %9997 = vmatpush3.bf16.msra.mxu0 %v11291_v41  ;;  %v11328_v32 = vld [vmem:[%s15280_s5 + $0xb90] sm:$0xff]   ;;  %v11329_v41 = vld [vmem:[%s15280_s5 + $0xb58] sm:$0xff]  }
 0x404   :  { %10019 = vmatpush3.bf16.msra.mxu1 %v11292_v37  ;;  %9998 = vmatprep.subr.bf16.mxu0 %v11293_v53  ;;  %v11330_v37 = vld [vmem:[%s15280_s5 + $0xbd8] sm:$0xff]  }
 0x405   :  { %10020 = vmatprep.subr.bf16.mxu1 %v11294_v16  ;;  %v11331_v53 = vld [vmem:[%s15280_s5 + $0xb18] sm:$0xff]  }
 0x406   :  { %v11332_v16 = vld [vmem:[%s15280_s5 + $0xb98] sm:$0xff]  }
 0x407   :  { %9999 = vmatpush3.bf16.msra.mxu0 %v11295_v10  ;;  %v11333_v10 = vld [vmem:[%s15280_s5 + $0xb60] sm:$0xff]  }
 0x408   :  { %10021 = vmatpush3.bf16.msra.mxu1 %v11296_v56  ;;  %10000 = vmatprep.subr.bf16.mxu0 %v11297_v2  ;;  %v11334_v56 = vld [vmem:[%s15280_s5 + $0xbe0] sm:$0xff]  }
 0x409   :  { %10022 = vmatprep.subr.bf16.mxu1 %v11298_v13  ;;  %v11335_v2 = vld [vmem:[%s15280_s5 + $0xb20] sm:$0xff]  }
 0x40a   :  { %v11336_v13 = vld [vmem:[%s15280_s5 + $0xba0] sm:$0xff]  }
 0x40b   :  { %10001 = vmatpush3.bf16.msra.mxu0 %v11299_v11  ;;  %v11337_v11 = vld [vmem:[%s15280_s5 + $0xb68] sm:$0xff]  }
 0x40c   :  { %10023 = vmatpush3.bf16.msra.mxu1 %v11300_v14  ;;  %10002 = vmatprep.subr.bf16.mxu0 %v11301_v42  ;;  %v11338_v14 = vld [vmem:[%s15280_s5 + $0xbe8] sm:$0xff]  }
 0x40d   :  { %10024 = vmatprep.subr.bf16.mxu1 %v11302_v39  ;;  %v11339_v42 = vld [vmem:[%s15280_s5 + $0xb28] sm:$0xff]  }
 0x40e   :  { %v11340_v39 = vld [vmem:[%s15280_s5 + $0xba8] sm:$0xff]  }
 0x40f   :  { %10003 = vmatpush3.bf16.msra.mxu0 %v11303_v40  ;;  %v11341_v40 = vld [vmem:[%s15280_s5 + $0xb70] sm:$0xff]  }
 0x410   :  { %10025 = vmatpush3.bf16.msra.mxu1 %v11304_v57  ;;  %10004 = vmatprep.subr.bf16.mxu0 %v11305_v5  ;;  %v11342_v5 = vld [vmem:[%s15280_s5 + $0xbf0] sm:$0xff]  }
 0x411   :  { %v9702_v19 = vpop.f32.mrb[36].mxu0  ;;  %10026 = vmatprep.subr.bf16.mxu1 %v11306_v21 }
 0x412   :  { %v9724_v62 = vpop.f32.mrb[52].mxu1  ;;  %v9703_v63 = vpop.f32.mrb[37].mxu0 }
 0x413   :  { %v9704_v6 = vadd.f32 %v9703_v63, %v9702_v19  ;;  %v9725_v35 = vpop.f32.mrb[53].mxu1  ;;  %v9705_v59 = vpop.f32.mrb[38].mxu0  ;;  %10005 = vmatpush3.bf16.msra.mxu0 %v11307_v55 }
 0x414   :  { %v9726_v31 = vadd.f32 %v9725_v35, %v9724_v62  ;;  %v9727_v50 = vpop.f32.mrb[54].mxu1  ;;  %10027 = vmatpush3.bf16.msra.mxu1 %v11308_v60  ;;  %v9706_v8 = vpop.f32.mrb[39].mxu0  ;;  %10006 = vmatprep.subr.bf16.mxu0 %v11309_v27  ;;  %v11344_v35 = vld [vmem:[%s15280_s5 + $0xbb0] sm:$0xff]   ;;  %v11345_v59 = vld [vmem:[%s15280_s5 + $0xb78] sm:$0xff]  }
 0x415   :  { %v9728_v58 = vpop.f32.mrb[55].mxu1  ;;  %10028 = vmatprep.subr.bf16.mxu1 %v11310_v15  ;;  %v11343_v15 = vld [vmem:[%s15280_s5 + $0xb30] sm:$0xff]   ;;  %v11347_v8 = vld [vmem:[%s15280_s5 + $0xb38] sm:$0xff]  }
 0x416   :  { %v3360_v25 = vadd.f32 %v9726_v31, %v9704_v6  ;;  %v11346_v31 = vld [vmem:[%s15280_s5 + $0xbf8] sm:$0xff]   ;;  %v11349_v58 = vld [vmem:[%s15280_s5 + $0xc40] sm:$0xff]  }
 0x417   :  { %10007 = vmatpush3.bf16.msra.mxu0 %v11311_v38 }
 0x418   :  { %v14663_v17 = vadd.f32 %v3360_v25, %v14556_v24  ;;  %10029 = vmatpush3.bf16.msra.mxu1 %v11312_v47  ;;  %10008 = vmatprep.subr.bf16.mxu0 %v11313_v23  ;;  %v11319_v24 = vld [vmem:[%s15280_s5 + $0xb00] sm:$0xff]   ;;  %v11348_v23 = vld [vmem:[%s15280_s5 + $0xbb8] sm:$0xff]  }
 0x419   :  { %10030 = vmatprep.subr.bf16.mxu1 %v11314_v12  ;;  %v11350_v12 = vld [vmem:[%s15280_s5 + $0xcc0] sm:$0xff]  }
 0x41a   :  { %v11351_v25 = vld [vmem:[%s15280_s5 + $0xc00] sm:$0xff]  }
 0x41b   :  { %10009 = vmatpush3.bf16.msra.mxu0 %v11315_v33  ;;  %v5965_v33 = vpack.c.b16 %v13683_v44, %v13683_v44  ;;  %v11354_v44 = vld [vmem:[%s15280_s5 + $0xcc8] sm:$0xff]  }
 0x41c   :  { %10031 = vmatpush3.bf16.msra.mxu1 %v11316_v3  ;;  %10038 = vmatprep.subr.bf16.mxu0 %v11317_v51  ;;  %v5967_v3 = vpack.c.b16 %v13691_v4, %v13691_v4  ;;  %v11353_v51 = vld [vmem:[%s15280_s5 + $0xc48] sm:$0xff]  }
 0x41d   :  { %10060 = vmatprep.subr.bf16.mxu1 %v11318_v43  ;;  %v6324_v43 = vpack.c.b16 %v13696_v20, %v13696_v20  ;;  %v11355_v4 = vld [vmem:[%s15280_s5 + $0xc08] sm:$0xff]   ;;  %v11357_v20 = vld [vmem:[%s15280_s5 + $0xc50] sm:$0xff]  }
 0x41e   :  { %5840 = vmatmul.mubr.bf16.vlgmr.msra.gmra.mrb[64].mxu0 %v5607_v52  ;;  %v11356_v52 = vld [vmem:[%s15280_s5 + $0xc88] sm:$0xff]  }
 0x41f   :  { %5880 = vmatmul.mubr.bf16.vlgmr.msra.gmra.mrb[80].mxu1 %v5609_v61  ;;  %10039 = vmatpush3.bf16.msra.mxu0 %v11319_v24  ;;  %v6326_v24 = vpack.c.b16 %v13704_v7, %v13704_v7  ;;  %v11358_v7 = vld [vmem:[%s15280_s5 + $0xcd0] sm:$0xff]  }
 0x420   :  { %6197 = vmatprep.mubr.bf16.mxu0 %v5966_v1  ;;  %10061 = vmatpush3.bf16.msra.mxu1 %v11320_v22  ;;  %v11359_v22 = vld [vmem:[%s15280_s5 + $0xc10] sm:$0xff]   ;;  %v11362_v1 = vld [vmem:[%s15280_s5 + $0xcd8] sm:$0xff]  }
 0x421   :  { %6237 = vmatprep.mubr.bf16.mxu1 %v5968_v26  ;;  %10040 = vmatprep.subr.bf16.mxu0 %v11321_v48  ;;  %v11360_v61 = vld [vmem:[%s15280_s5 + $0xc90] sm:$0xff]   ;;  %v11361_v48 = vld [vmem:[%s15280_s5 + $0xc58] sm:$0xff]  }
 0x422   :  { %10062 = vmatprep.subr.bf16.mxu1 %v11322_v0  ;;  %v11363_v0 = vld [vmem:[%s15280_s5 + $0xc18] sm:$0xff]  }
 0x423   :  { %10041 = vmatpush3.bf16.msra.mxu0 %v11323_v45  ;;  %v11364_v26 = vld [vmem:[%s15280_s5 + $0xc98] sm:$0xff]   ;;  %v11365_v45 = vld [vmem:[%s15280_s5 + $0xc60] sm:$0xff]  }
 0x424   :  { %10063 = vmatpush3.bf16.msra.mxu1 %v11324_v30  ;;  %10042 = vmatprep.subr.bf16.mxu0 %v11325_v29  ;;  %v11366_v30 = vld [vmem:[%s15280_s5 + $0xce0] sm:$0xff]  }
 0x425   :  { %10064 = vmatprep.subr.bf16.mxu1 %v11326_v18  ;;  %v11367_v29 = vld [vmem:[%s15280_s5 + $0xc20] sm:$0xff]  }
 0x426   :  { %v11368_v18 = vld [vmem:[%s15280_s5 + $0xca0] sm:$0xff]  }
 0x427   :  { %10043 = vmatpush3.bf16.msra.mxu0 %v11327_v36  ;;  %v11369_v36 = vld [vmem:[%s15280_s5 + $0xc68] sm:$0xff]  }
 0x428   :  { %10065 = vmatpush3.bf16.msra.mxu1 %v11328_v32  ;;  %10044 = vmatprep.subr.bf16.mxu0 %v11329_v41  ;;  %v11370_v32 = vld [vmem:[%s15280_s5 + $0xce8] sm:$0xff]  }
 0x429   :  { %10066 = vmatprep.subr.bf16.mxu1 %v11330_v37  ;;  %v11371_v41 = vld [vmem:[%s15280_s5 + $0xc28] sm:$0xff]  }
 0x42a   :  { %v11372_v37 = vld [vmem:[%s15280_s5 + $0xca8] sm:$0xff]  }
 0x42b   :  { %10045 = vmatpush3.bf16.msra.mxu0 %v11331_v53  ;;  %v11373_v53 = vld [vmem:[%s15280_s5 + $0xc70] sm:$0xff]  }
 0x42c   :  { %10067 = vmatpush3.bf16.msra.mxu1 %v11332_v16  ;;  %10046 = vmatprep.subr.bf16.mxu0 %v11333_v10  ;;  %v11374_v10 = vld [vmem:[%s15280_s5 + $0xcf0] sm:$0xff]  }
 0x42d   :  { %10068 = vmatprep.subr.bf16.mxu1 %v11334_v56 }
 0x42f   :  { %10047 = vmatpush3.bf16.msra.mxu0 %v11335_v2 }
 0x430   :  { %10069 = vmatpush3.bf16.msra.mxu1 %v11336_v13  ;;  %10048 = vmatprep.subr.bf16.mxu0 %v11337_v11 }
 0x431   :  { %v9746_v57 = vpop.f32.mrb[40].mxu0  ;;  %10070 = vmatprep.subr.bf16.mxu1 %v11338_v14 }
 0x432   :  { %v9768_v21 = vpop.f32.mrb[56].mxu1  ;;  %v9747_v55 = vpop.f32.mrb[41].mxu0 }
 0x433   :  { %v9748_v60 = vadd.f32 %v9747_v55, %v9746_v57  ;;  %v9769_v27 = vpop.f32.mrb[57].mxu1  ;;  %v9749_v19 = vpop.f32.mrb[42].mxu0  ;;  %10049 = vmatpush3.bf16.msra.mxu0 %v11339_v42  ;;  %v11375_v42 = vld [vmem:[%s15280_s5 + $0xc30] sm:$0xff]  }
 0x434   :  { %v9770_v62 = vadd.f32 %v9769_v27, %v9768_v21  ;;  %v9771_v63 = vpop.f32.mrb[58].mxu1  ;;  %10071 = vmatpush3.bf16.msra.mxu1 %v11340_v39  ;;  %v9750_v6 = vpop.f32.mrb[43].mxu0  ;;  %10050 = vmatprep.subr.bf16.mxu0 %v11341_v40  ;;  %v11377_v21 = vld [vmem:[%s15280_s5 + $0xc78] sm:$0xff]  }
 0x435   :  { %v9772_v38 = vpop.f32.mrb[59].mxu1  ;;  %10072 = vmatprep.subr.bf16.mxu1 %v11342_v5  ;;  %v11376_v5 = vld [vmem:[%s15280_s5 + $0xcb0] sm:$0xff]   ;;  %v11379_v19 = vld [vmem:[%s15280_s5 + $0xc38] sm:$0xff]   ;;  %v11381_v63 = vld [vmem:[%s15280_s5 + $0xd40] sm:$0xff]  }
 0x436   :  { %v3718_v50 = vadd.f32 %v9770_v62, %v9748_v60  ;;  %v11378_v60 = vld [vmem:[%s15280_s5 + $0xcf8] sm:$0xff]   ;;  %v11382_v6 = vld [vmem:[%s15280_s5 + $0xdc0] sm:$0xff]  }
 0x437   :  { %10051 = vmatpush3.bf16.msra.mxu0 %v11343_v15  ;;  %v11380_v62 = vld [vmem:[%s15280_s5 + $0xcb8] sm:$0xff]  }
 0x438   :  { %v14770_v47 = vadd.f32 %v3718_v50, %v14663_v17  ;;  %10073 = vmatpush3.bf16.msra.mxu1 %v11344_v35  ;;  %10052 = vmatprep.subr.bf16.mxu0 %v11345_v59  ;;  %v11352_v17 = vld [vmem:[%s15280_s5 + $0xc80] sm:$0xff]   ;;  %v15295_v59 = vld [vmem:[#allocation10_spill] sm:$0xff]  ;;  %v15296_v50 = vld [vmem:[#allocation11_spill] sm:$0xff] }
 0x439   :  { %10074 = vmatprep.subr.bf16.mxu1 %v11346_v31  ;;  %v11383_v35 = vld [vmem:[%s15280_s5 + $0xd00] sm:$0xff]   ;;  %v6323_v38 = vpack.c.b16 %v15295_v59, %v15295_v59 }
 0x43a   :  { %v11384_v31 = vld [vmem:[%s15280_s5 + $0xd80] sm:$0xff]  }
 0x43b   :  { %10053 = vmatpush3.bf16.msra.mxu0 %v11347_v8  ;;  %v6325_v8 = vpack.c.b16 %v15296_v50, %v15296_v50  ;;  %v15301_v59 = vld [vmem:[#allocation16_spill] sm:$0xff]  ;;  %v15302_v50 = vld [vmem:[#allocation17_spill] sm:$0xff] }
 0x43c   :  { %10075 = vmatpush3.bf16.msra.mxu1 %v11348_v23  ;;  %10082 = vmatprep.subr.bf16.mxu0 %v11349_v58  ;;  %v15297_v23 = vld [vmem:[#allocation12_spill] sm:$0xff] }
 0x43d   :  { %10104 = vmatprep.subr.bf16.mxu1 %v11350_v12  ;;  %v6682_v58 = vpack.c.b16 %v15297_v23, %v15297_v23  ;;  %v11386_v12 = vld [vmem:[%s15280_s5 + $0xdc8] sm:$0xff]  }
 0x43e   :  { %6198 = vmatmul.mubr.bf16.vlgmr.msra.gmra.mrb[68].mxu0 %v5965_v33  ;;  %v11420_v23 = vld [vmem:[%s15280_s5 + $0xe88] sm:$0xff]  }
 0x43f   :  { %6238 = vmatmul.mubr.bf16.vlgmr.msra.gmra.mrb[84].mxu1 %v5967_v3  ;;  %10083 = vmatpush3.bf16.msra.mxu0 %v11351_v25  ;;  %v15298_v25 = vld [vmem:[#allocation13_spill] sm:$0xff] }
 0x440   :  { %6555 = vmatprep.mubr.bf16.mxu0 %v6324_v43  ;;  %10105 = vmatpush3.bf16.msra.mxu1 %v11352_v17  ;;  %v6684_v33 = vpack.c.b16 %v15298_v25, %v15298_v25  ;;  %v11387_v17 = vld [vmem:[%s15280_s5 + $0xd08] sm:$0xff]   ;;  %v11390_v43 = vld [vmem:[%s15280_s5 + $0xdd0] sm:$0xff]  }
 0x441   :  { %6595 = vmatprep.mubr.bf16.mxu1 %v6326_v24  ;;  %10084 = vmatprep.subr.bf16.mxu0 %v11353_v51  ;;  %v11388_v3 = vld [vmem:[%s15280_s5 + $0xd88] sm:$0xff]   ;;  %v11389_v51 = vld [vmem:[%s15280_s5 + $0xd50] sm:$0xff]  }
 0x442   :  { %10106 = vmatprep.subr.bf16.mxu1 %v11354_v44  ;;  %v11391_v44 = vld [vmem:[%s15280_s5 + $0xd10] sm:$0xff]  }
 0x443   :  { %10085 = vmatpush3.bf16.msra.mxu0 %v11355_v4  ;;  %v11392_v24 = vld [vmem:[%s15280_s5 + $0xd90] sm:$0xff]   ;;  %v11393_v4 = vld [vmem:[%s15280_s5 + $0xd58] sm:$0xff]  }
 0x444   :  { %10107 = vmatpush3.bf16.msra.mxu1 %v11356_v52  ;;  %10086 = vmatprep.subr.bf16.mxu0 %v11357_v20  ;;  %v11394_v52 = vld [vmem:[%s15280_s5 + $0xdd8] sm:$0xff]   ;;  %v11423_v25 = vld [vmem:[%s15280_s5 + $0xe10] sm:$0xff]  }
 0x445   :  { %10108 = vmatprep.subr.bf16.mxu1 %v11358_v7  ;;  %v11395_v20 = vld [vmem:[%s15280_s5 + $0xd18] sm:$0xff]  }
 0x446   :  { %v11396_v7 = vld [vmem:[%s15280_s5 + $0xd98] sm:$0xff]  }
 0x447   :  { %10087 = vmatpush3.bf16.msra.mxu0 %v11359_v22  ;;  %v11397_v22 = vld [vmem:[%s15280_s5 + $0xd60] sm:$0xff]  }
 0x448   :  { %10109 = vmatpush3.bf16.msra.mxu1 %v11360_v61  ;;  %10088 = vmatprep.subr.bf16.mxu0 %v11361_v48  ;;  %v11398_v61 = vld [vmem:[%s15280_s5 + $0xde0] sm:$0xff]  }
 0x449   :  { %10110 = vmatprep.subr.bf16.mxu1 %v11362_v1  ;;  %v11399_v48 = vld [vmem:[%s15280_s5 + $0xd20] sm:$0xff]  }
 0x44a   :  { %v11400_v1 = vld [vmem:[%s15280_s5 + $0xda0] sm:$0xff]  }
 0x44b   :  { %10089 = vmatpush3.bf16.msra.mxu0 %v11363_v0  ;;  %v11401_v0 = vld [vmem:[%s15280_s5 + $0xd68] sm:$0xff]  }
 0x44c   :  { %10111 = vmatpush3.bf16.msra.mxu1 %v11364_v26  ;;  %10090 = vmatprep.subr.bf16.mxu0 %v11365_v45  ;;  %v11402_v26 = vld [vmem:[%s15280_s5 + $0xde8] sm:$0xff]  }
 0x44d   :  { %10112 = vmatprep.subr.bf16.mxu1 %v11366_v30  ;;  %v11403_v45 = vld [vmem:[%s15280_s5 + $0xd28] sm:$0xff]  }
 0x44e   :  { %v11404_v30 = vld [vmem:[%s15280_s5 + $0xda8] sm:$0xff]  }
 0x44f   :  { %10091 = vmatpush3.bf16.msra.mxu0 %v11367_v29  ;;  %v11405_v29 = vld [vmem:[%s15280_s5 + $0xd70] sm:$0xff]  }
 0x450   :  { %10113 = vmatpush3.bf16.msra.mxu1 %v11368_v18  ;;  %10092 = vmatprep.subr.bf16.mxu0 %v11369_v36  ;;  %v11406_v36 = vld [vmem:[%s15280_s5 + $0xdf0] sm:$0xff]  }
 0x451   :  { %v9790_v16 = vpop.f32.mrb[44].mxu0  ;;  %10114 = vmatprep.subr.bf16.mxu1 %v11370_v32 }
 0x452   :  { %v9812_v56 = vpop.f32.mrb[60].mxu1  ;;  %v9791_v2 = vpop.f32.mrb[45].mxu0 }
 0x453   :  { %v9792_v13 = vadd.f32 %v9791_v2, %v9790_v16  ;;  %v9813_v11 = vpop.f32.mrb[61].mxu1  ;;  %v9793_v14 = vpop.f32.mrb[46].mxu0  ;;  %10093 = vmatpush3.bf16.msra.mxu0 %v11371_v41 }
 0x454   :  { %v9814_v39 = vadd.f32 %v9813_v11, %v9812_v56  ;;  %v9815_v40 = vpop.f32.mrb[62].mxu1  ;;  %10115 = vmatpush3.bf16.msra.mxu1 %v11372_v37  ;;  %v9794_v57 = vpop.f32.mrb[47].mxu0  ;;  %10094 = vmatprep.subr.bf16.mxu0 %v11373_v53  ;;  %v11408_v11 = vld [vmem:[%s15280_s5 + $0xdb0] sm:$0xff]   ;;  %v11409_v14 = vld [vmem:[%s15280_s5 + $0xd78] sm:$0xff]  }
 0x455   :  { %v9816_v55 = vpop.f32.mrb[63].mxu1  ;;  %10116 = vmatprep.subr.bf16.mxu1 %v11374_v10  ;;  %v11407_v10 = vld [vmem:[%s15280_s5 + $0xd30] sm:$0xff]   ;;  %v11411_v57 = vld [vmem:[%s15280_s5 + $0xd38] sm:$0xff]  }
 0x456   :  { %v4076_v27 = vadd.f32 %v9814_v39, %v9792_v13  ;;  %v11410_v39 = vld [vmem:[%s15280_s5 + $0xdf8] sm:$0xff]   ;;  %v11413_v55 = vld [vmem:[%s15280_s5 + $0xe40] sm:$0xff]  }
 0x457   :  { %10095 = vmatpush3.bf16.msra.mxu0 %v11375_v42 }
 0x458   :  { %v14877_v15 = vadd.f32 %v4076_v27, %v14770_v47  ;;  %10117 = vmatpush3.bf16.msra.mxu1 %v11376_v5  ;;  %10096 = vmatprep.subr.bf16.mxu0 %v11377_v21  ;;  %v11385_v47 = vld [vmem:[%s15280_s5 + $0xd48] sm:$0xff]   ;;  %v11412_v21 = vld [vmem:[%s15280_s5 + $0xdb8] sm:$0xff]   ;;  %v11415_v27 = vld [vmem:[%s15280_s5 + $0xe00] sm:$0xff]  }
 0x459   :  { %10118 = vmatprep.subr.bf16.mxu1 %v11378_v60  ;;  %v11414_v60 = vld [vmem:[%s15280_s5 + $0xec0] sm:$0xff]  }
 0x45b   :  { %10097 = vmatpush3.bf16.msra.mxu0 %v11379_v19  ;;  %v15299_v19 = vld [vmem:[#allocation14_spill] sm:$0xff] }
 0x45c   :  { %10119 = vmatpush3.bf16.msra.mxu1 %v11380_v62  ;;  %10126 = vmatprep.subr.bf16.mxu0 %v11381_v63  ;;  %v11416_v62 = vld [vmem:[%s15280_s5 + $0xe80] sm:$0xff]   ;;  %v15300_v63 = vld [vmem:[#allocation15_spill] sm:$0xff] }
 0x45d   :  { %10148 = vmatprep.subr.bf16.mxu1 %v11382_v6  ;;  %v6683_v6 = vpack.c.b16 %v15300_v63, %v15300_v63  ;;  %v11457_v63 = vld [vmem:[%s15280_s5 + $0xf58] sm:$0xff]  }
 0x45e   :  { %6556 = vmatmul.mubr.bf16.vlgmr.msra.gmra.mrb[72].mxu0 %v6323_v38  ;;  %v7040_v38 = vpack.c.b16 %v15301_v59, %v15301_v59  ;;  %v11460_v59 = vld [vmem:[%s15280_s5 + $0xf98] sm:$0xff]  }
 0x45f   :  { %6596 = vmatmul.mubr.bf16.vlgmr.msra.gmra.mrb[88].mxu1 %v6325_v8  ;;  %10127 = vmatpush3.bf16.msra.mxu0 %v11383_v35  ;;  %v11417_v35 = vld [vmem:[%s15280_s5 + $0xe48] sm:$0xff]   ;;  %v7042_v8 = vpack.c.b16 %v15302_v50, %v15302_v50  ;;  %v11463_v50 = vld [vmem:[%s15280_s5 + $0xf20] sm:$0xff]  }
 0x460   :  { %6913 = vmatprep.mubr.bf16.mxu0 %v6682_v58  ;;  %10149 = vmatpush3.bf16.msra.mxu1 %v11384_v31  ;;  %v11418_v31 = vld [vmem:[%s15280_s5 + $0xec8] sm:$0xff]   ;;  %v11421_v58 = vld [vmem:[%s15280_s5 + $0xe50] sm:$0xff]  }
 0x461   :  { %6953 = vmatprep.mubr.bf16.mxu1 %v6684_v33  ;;  %10128 = vmatprep.subr.bf16.mxu0 %v11385_v47  ;;  %v11419_v47 = vld [vmem:[%s15280_s5 + $0xe08] sm:$0xff]   ;;  %v11424_v33 = vld [vmem:[%s15280_s5 + $0xe90] sm:$0xff]  }
 0x462   :  { %10150 = vmatprep.subr.bf16.mxu1 %v11386_v12  ;;  %v11422_v12 = vld [vmem:[%s15280_s5 + $0xed0] sm:$0xff]  }
 0x463   :  { %10129 = vmatpush3.bf16.msra.mxu0 %v11387_v17  ;;  %v11425_v17 = vld [vmem:[%s15280_s5 + $0xe58] sm:$0xff]  }
 0x464   :  { %10151 = vmatpush3.bf16.msra.mxu1 %v11388_v3  ;;  %10130 = vmatprep.subr.bf16.mxu0 %v11389_v51  ;;  %v11426_v3 = vld [vmem:[%s15280_s5 + $0xed8] sm:$0xff]  }
 0x465   :  { %10152 = vmatprep.subr.bf16.mxu1 %v11390_v43  ;;  %v11427_v51 = vld [vmem:[%s15280_s5 + $0xe18] sm:$0xff]  }
 0x466   :  { %v11428_v43 = vld [vmem:[%s15280_s5 + $0xe98] sm:$0xff]  }
 0x467   :  { %10131 = vmatpush3.bf16.msra.mxu0 %v11391_v44  ;;  %v11429_v44 = vld [vmem:[%s15280_s5 + $0xe60] sm:$0xff]  }
 0x468   :  { %10153 = vmatpush3.bf16.msra.mxu1 %v11392_v24  ;;  %10132 = vmatprep.subr.bf16.mxu0 %v11393_v4  ;;  %v11430_v24 = vld [vmem:[%s15280_s5 + $0xee0] sm:$0xff]  }
 0x469   :  { %10154 = vmatprep.subr.bf16.mxu1 %v11394_v52  ;;  %v11431_v4 = vld [vmem:[%s15280_s5 + $0xe20] sm:$0xff]  }
 0x46a   :  { %v11432_v52 = vld [vmem:[%s15280_s5 + $0xea0] sm:$0xff]  }
 0x46b   :  { %10133 = vmatpush3.bf16.msra.mxu0 %v11395_v20  ;;  %v11433_v20 = vld [vmem:[%s15280_s5 + $0xe68] sm:$0xff]  }
 0x46c   :  { %10155 = vmatpush3.bf16.msra.mxu1 %v11396_v7  ;;  %10134 = vmatprep.subr.bf16.mxu0 %v11397_v22  ;;  %v11434_v7 = vld [vmem:[%s15280_s5 + $0xee8] sm:$0xff]  }
 0x46d   :  { %10156 = vmatprep.subr.bf16.mxu1 %v11398_v61  ;;  %v11435_v22 = vld [vmem:[%s15280_s5 + $0xe28] sm:$0xff]  }
 0x46e   :  { %v11436_v61 = vld [vmem:[%s15280_s5 + $0xea8] sm:$0xff]  }
 0x46f   :  { %10135 = vmatpush3.bf16.msra.mxu0 %v11399_v48  ;;  %v11437_v48 = vld [vmem:[%s15280_s5 + $0xe70] sm:$0xff]  }
 0x470   :  { %10157 = vmatpush3.bf16.msra.mxu1 %v11400_v1  ;;  %10136 = vmatprep.subr.bf16.mxu0 %v11401_v0  ;;  %v11438_v0 = vld [vmem:[%s15280_s5 + $0xef0] sm:$0xff]  }
 0x471   :  { %v9834_v18 = vpop.f32.mrb[48].mxu0  ;;  %10158 = vmatprep.subr.bf16.mxu1 %v11402_v26 }
 0x472   :  { %v9856_v32 = vpop.f32.mrb[64].mxu1  ;;  %v9835_v41 = vpop.f32.mrb[49].mxu0 }
 0x473   :  { %v9836_v37 = vadd.f32 %v9835_v41, %v9834_v18  ;;  %v9857_v53 = vpop.f32.mrb[65].mxu1  ;;  %v9837_v16 = vpop.f32.mrb[50].mxu0  ;;  %10137 = vmatpush3.bf16.msra.mxu0 %v11403_v45 }
 0x474   :  { %v9858_v56 = vadd.f32 %v9857_v53, %v9856_v32  ;;  %v9859_v2 = vpop.f32.mrb[66].mxu1  ;;  %10159 = vmatpush3.bf16.msra.mxu1 %v11404_v30  ;;  %v9838_v13 = vpop.f32.mrb[51].mxu0  ;;  %10138 = vmatprep.subr.bf16.mxu0 %v11405_v29  ;;  %v11440_v53 = vld [vmem:[%s15280_s5 + $0xeb0] sm:$0xff]   ;;  %v11441_v16 = vld [vmem:[%s15280_s5 + $0xe78] sm:$0xff]  }
 0x475   :  { %v9860_v42 = vpop.f32.mrb[67].mxu1  ;;  %10160 = vmatprep.subr.bf16.mxu1 %v11406_v36  ;;  %v11439_v36 = vld [vmem:[%s15280_s5 + $0xe30] sm:$0xff]   ;;  %v11443_v13 = vld [vmem:[%s15280_s5 + $0xe38] sm:$0xff]  }
 0x476   :  { %v4434_v40 = vadd.f32 %v9858_v56, %v9836_v37  ;;  %v11442_v56 = vld [vmem:[%s15280_s5 + $0xef8] sm:$0xff]   ;;  %v11445_v42 = vld [vmem:[%s15280_s5 + $0xf40] sm:$0xff]  }
 0x477   :  { %10139 = vmatpush3.bf16.msra.mxu0 %v11407_v10 }
 0x478   :  { %v14984_v5 = vadd.f32 %v4434_v40, %v14877_v15  ;;  %10161 = vmatpush3.bf16.msra.mxu1 %v11408_v11  ;;  %10140 = vmatprep.subr.bf16.mxu0 %v11409_v14  ;;  %v6681_v15 = vpack.c.b16 %v15299_v19, %v15299_v19  ;;  %v11444_v14 = vld [vmem:[%s15280_s5 + $0xeb8] sm:$0xff]   ;;  %v11447_v40 = vld [vmem:[%s15280_s5 + $0xf00] sm:$0xff]   ;;  %v11452_v19 = vld [vmem:[%s15280_s5 + $0xf88] sm:$0xff]  }
 0x479   :  { %10162 = vmatprep.subr.bf16.mxu1 %v11410_v39  ;;  %v11446_v39 = vld [vmem:[%s15280_s5 + $0xfc0] sm:$0xff]  }
 0x47b   :  { %10141 = vmatpush3.bf16.msra.mxu0 %v11411_v57  ;;  %v7039_v57 = vpack.c.b16 %v13779_v28, %v13779_v28  ;;  %v11450_v28 = vld [vmem:[%s15280_s5 + $0xfc8] sm:$0xff]  }
 0x47c   :  { %10163 = vmatpush3.bf16.msra.mxu1 %v11412_v21  ;;  %10170 = vmatprep.subr.bf16.mxu0 %v11413_v55  ;;  %v7041_v21 = vpack.c.b16 %v13787_v46, %v13787_v46  ;;  %v11449_v55 = vld [vmem:[%s15280_s5 + $0xf48] sm:$0xff]  }
 0x47d   :  { %10192 = vmatprep.subr.bf16.mxu1 %v11414_v60  ;;  %v7398_v60 = vpack.c.b16 %v13792_v34, %v13792_v34  ;;  %v11451_v46 = vld [vmem:[%s15280_s5 + $0xf08] sm:$0xff]   ;;  %v11453_v34 = vld [vmem:[%s15280_s5 + $0xf50] sm:$0xff]  }
 0x47e   :  { %6914 = vmatmul.mubr.bf16.vlgmr.msra.gmra.mrb[76].mxu0 %v6681_v15  ;;  %v11455_v15 = vld [vmem:[%s15280_s5 + $0xf10] sm:$0xff]  }
 0x47f   :  { %6954 = vmatmul.mubr.bf16.vlgmr.msra.gmra.mrb[92].mxu1 %v6683_v6  ;;  %10171 = vmatpush3.bf16.msra.mxu0 %v11415_v27  ;;  %v7400_v27 = vpack.c.b16 %v13800_v49, %v13800_v49  ;;  %v11454_v49 = vld [vmem:[%s15280_s5 + $0xfd0] sm:$0xff]   ;;  %v11458_v6 = vld [vmem:[%s15280_s5 + $0xfd8] sm:$0xff]  }
 0x480   :  { %7271 = vmatprep.mubr.bf16.mxu0 %v7040_v38  ;;  %10193 = vmatpush3.bf16.msra.mxu1 %v11416_v62  ;;  %v11456_v62 = vld [vmem:[%s15280_s5 + $0xf90] sm:$0xff]   ;;  %v11461_v38 = vld [vmem:[%s15280_s5 + $0xf60] sm:$0xff]  }
 0x481   :  { %7311 = vmatprep.mubr.bf16.mxu1 %v7042_v8  ;;  %10172 = vmatprep.subr.bf16.mxu0 %v11417_v35  ;;  %v11459_v35 = vld [vmem:[%s15280_s5 + $0xf18] sm:$0xff]   ;;  %v11464_v8 = vld [vmem:[%s15280_s5 + $0xfa0] sm:$0xff]  }
 0x482   :  { %10194 = vmatprep.subr.bf16.mxu1 %v11418_v31  ;;  %v11462_v31 = vld [vmem:[%s15280_s5 + $0xfe0] sm:$0xff]  }
 0x483   :  { %10173 = vmatpush3.bf16.msra.mxu0 %v11419_v47  ;;  %v11465_v47 = vld [vmem:[%s15280_s5 + $0xf68] sm:$0xff]  }
 0x484   :  { %10195 = vmatpush3.bf16.msra.mxu1 %v11420_v23  ;;  %10174 = vmatprep.subr.bf16.mxu0 %v11421_v58  ;;  %v11466_v23 = vld [vmem:[%s15280_s5 + $0xfe8] sm:$0xff]  }
 0x485   :  { %10196 = vmatprep.subr.bf16.mxu1 %v11422_v12  ;;  %v11467_v58 = vld [vmem:[%s15280_s5 + $0xf28] sm:$0xff]  }
 0x486   :  { %v11468_v12 = vld [vmem:[%s15280_s5 + $0xfa8] sm:$0xff]  }
 0x487   :  { %10175 = vmatpush3.bf16.msra.mxu0 %v11423_v25  ;;  %v11469_v25 = vld [vmem:[%s15280_s5 + $0xf70] sm:$0xff]  }
 0x488   :  { %10197 = vmatpush3.bf16.msra.mxu1 %v11424_v33  ;;  %10176 = vmatprep.subr.bf16.mxu0 %v11425_v17  ;;  %v11470_v17 = vld [vmem:[%s15280_s5 + $0xff0] sm:$0xff]  }
 0x489   :  { %10198 = vmatprep.subr.bf16.mxu1 %v11426_v3 }
 0x48b   :  { %10177 = vmatpush3.bf16.msra.mxu0 %v11427_v51 }
 0x48c   :  { %10199 = vmatpush3.bf16.msra.mxu1 %v11428_v43  ;;  %10178 = vmatprep.subr.bf16.mxu0 %v11429_v44 }
 0x48d   :  { %10200 = vmatprep.subr.bf16.mxu1 %v11430_v24 }
 0x48f   :  { %10179 = vmatpush3.bf16.msra.mxu0 %v11431_v4  ;;  %v11471_v4 = vld [vmem:[%s15280_s5 + $0xf30] sm:$0xff]  }
 0x490   :  { %10201 = vmatpush3.bf16.msra.mxu1 %v11432_v52  ;;  %10180 = vmatprep.subr.bf16.mxu0 %v11433_v20 }
 0x491   :  { %v9878_v1 = vpop.f32.mrb[52].mxu0  ;;  %10202 = vmatprep.subr.bf16.mxu1 %v11434_v7 }
 0x492   :  { %v9900_v26 = vpop.f32.mrb[68].mxu1  ;;  %v9879_v45 = vpop.f32.mrb[53].mxu0 }
 0x493   :  { %v9880_v30 = vadd.f32 %v9879_v45, %v9878_v1  ;;  %v9901_v29 = vpop.f32.mrb[69].mxu1  ;;  %v9881_v18 = vpop.f32.mrb[54].mxu0  ;;  %10181 = vmatpush3.bf16.msra.mxu0 %v11435_v22  ;;  %v11472_v22 = vld [vmem:[%s15280_s5 + $0xfb0] sm:$0xff]   ;;  %v11474_v1 = vld [vmem:[%s15280_s5 + $0xff8] sm:$0xff]  }
 0x494   :  { %v9902_v32 = vadd.f32 %v9901_v29, %v9900_v26  ;;  %v9903_v41 = vpop.f32.mrb[70].mxu1  ;;  %10203 = vmatpush3.bf16.msra.mxu1 %v11436_v61  ;;  %v9882_v37 = vpop.f32.mrb[55].mxu0  ;;  %10182 = vmatprep.subr.bf16.mxu0 %v11437_v48  ;;  %v11473_v61 = vld [vmem:[%s15280_s5 + $0xf78] sm:$0xff]   ;;  %v7397_v29 = vpack.c.b16 %v13811_v54, %v13811_v54  ;;  %v7399_v18 = vpack.c.b16 %v13817_v9, %v13817_v9 }
 0x495   :  { %v9904_v10 = vpop.f32.mrb[71].mxu1  ;;  %10204 = vmatprep.subr.bf16.mxu1 %v11438_v0  ;;  %v11475_v26 = vld [vmem:[%s15280_s5 + $0xf38] sm:$0xff]  }
 0x496   :  { %v4792_v2 = vadd.f32 %v9902_v32, %v9880_v30  ;;  %v11476_v30 = vld [vmem:[%s15280_s5 + $0xfb8] sm:$0xff]  }
 0x497   :  { %10183 = vmatpush3.bf16.msra.mxu0 %v11439_v36 }
 0x498   :  { %v15091_v11 = vadd.f32 %v4792_v2, %v14984_v5  ;;  %10205 = vmatpush3.bf16.msra.mxu1 %v11440_v53  ;;  %10184 = vmatprep.subr.bf16.mxu0 %v11441_v16  ;;  %v11448_v5 = vld [vmem:[%s15280_s5 + $0xf80] sm:$0xff]  }
 0x499   :  { %10206 = vmatprep.subr.bf16.mxu1 %v11442_v56 }
 0x49b   :  { %10185 = vmatpush3.bf16.msra.mxu0 %v11443_v13 }
 0x49c   :  { %10207 = vmatpush3.bf16.msra.mxu1 %v11444_v14  ;;  %10214 = vmatprep.subr.bf16.mxu0 %v11445_v42 }
 0x49d   :  { %10236 = vmatprep.subr.bf16.mxu1 %v11446_v39 }
 0x49e   :  { %7272 = vmatmul.mubr.bf16.vlgmr.msra.gmra.mrb[80].mxu0 %v7039_v57 }
 0x49f   :  { %7312 = vmatmul.mubr.bf16.vlgmr.msra.gmra.mrb[96].mxu1 %v7041_v21  ;;  %10215 = vmatpush3.bf16.msra.mxu0 %v11447_v40 }
 0x4a0   :  { %7629 = vmatprep.mubr.bf16.mxu0 %v7398_v60  ;;  %10237 = vmatpush3.bf16.msra.mxu1 %v11448_v5 }
 0x4a1   :  { %7669 = vmatprep.mubr.bf16.mxu1 %v7400_v27  ;;  %10216 = vmatprep.subr.bf16.mxu0 %v11449_v55 }
 0x4a2   :  { %10238 = vmatprep.subr.bf16.mxu1 %v11450_v28 }
 0x4a3   :  { %10217 = vmatpush3.bf16.msra.mxu0 %v11451_v46  ;;  %v7687_v46 = vld [vmem:[%s15282_s7] sm:$0xff] }
 0x4a4   :  { %10239 = vmatpush3.bf16.msra.mxu1 %v11452_v19  ;;  %10218 = vmatprep.subr.bf16.mxu0 %v11453_v34  ;;  %v7688_v19 = vld [vmem:[%s15282_s7 + $0x8] sm:$0xff]  ;;  %v7689_v34 = vld [vmem:[%s15282_s7 + $0x10] sm:$0xff] }
 0x4a5   :  { %10240 = vmatprep.subr.bf16.mxu1 %v11454_v49  ;;  %v11537_v49 = vmov 0.0|0.0  }
 0x4a7   :  { %10219 = vmatpush3.bf16.msra.mxu0 %v11455_v15  ;;  %v10839_v15 = vpack.c.bf16 %v7688_v19, %v7687_v46 }
 0x4a8   :  { %10241 = vmatpush3.bf16.msra.mxu1 %v11456_v62  ;;  %10220 = vmatprep.subr.bf16.mxu0 %v11457_v63  ;;  %v7690_v62 = vld [vmem:[%s15282_s7 + $0x18] sm:$0xff] }
 0x4a9   :  { %10242 = vmatprep.subr.bf16.mxu1 %v11458_v6  ;;  %v10842_v63 = vpack.c.bf16 %v7690_v62, %v7689_v34  ;;  %v7691_v6 = vld [vmem:[%s15282_s7 + $0x20] sm:$0xff] }
 0x4ab   :  { %10221 = vmatpush3.bf16.msra.mxu0 %v11459_v35  ;;  %v7692_v35 = vld [vmem:[%s15282_s7 + $0x28] sm:$0xff] }
 0x4ac   :  { %10243 = vmatpush3.bf16.msra.mxu1 %v11460_v59  ;;  %10222 = vmatprep.subr.bf16.mxu0 %v11461_v38  ;;  %v10845_v59 = vpack.c.bf16 %v7692_v35, %v7691_v6  ;;  %v7693_v38 = vld [vmem:[%s15282_s7 + $0x30] sm:$0xff] }
 0x4ad   :  { %10244 = vmatprep.subr.bf16.mxu1 %v11462_v31  ;;  %v7694_v31 = vld [vmem:[%s15282_s7 + $0x38] sm:$0xff] }
 0x4af   :  { %10223 = vmatpush3.bf16.msra.mxu0 %v11463_v50  ;;  %v10848_v50 = vpack.c.bf16 %v7694_v31, %v7693_v38 }
 0x4b0   :  { %10245 = vmatpush3.bf16.msra.mxu1 %v11464_v8  ;;  %10224 = vmatprep.subr.bf16.mxu0 %v11465_v47  ;;  %v7695_v8 = vld [vmem:[%s15282_s7 + $0x40] sm:$0xff]  ;;  %v7696_v47 = vld [vmem:[%s15282_s7 + $0x48] sm:$0xff] }
 0x4b1   :  { %v9922_v33 = vpop.f32.mrb[56].mxu0  ;;  %10246 = vmatprep.subr.bf16.mxu1 %v11466_v23  ;;  %v10851_v23 = vpack.c.bf16 %v7696_v47, %v7695_v8 }
 0x4b2   :  { %v9944_v3 = vpop.f32.mrb[72].mxu1  ;;  %v9923_v51 = vpop.f32.mrb[57].mxu0 }
 0x4b3   :  { %v9924_v43 = vadd.f32 %v9923_v51, %v9922_v33  ;;  %v9945_v44 = vpop.f32.mrb[73].mxu1  ;;  %v9925_v24 = vpop.f32.mrb[58].mxu0  ;;  %10225 = vmatpush3.bf16.msra.mxu0 %v11467_v58 }
 0x4b4   :  { %v9946_v52 = vadd.f32 %v9945_v44, %v9944_v3  ;;  %v9947_v20 = vpop.f32.mrb[74].mxu1  ;;  %10247 = vmatpush3.bf16.msra.mxu1 %v11468_v12  ;;  %v9926_v7 = vpop.f32.mrb[59].mxu0  ;;  %10226 = vmatprep.subr.bf16.mxu0 %v11469_v25 }
 0x4b5   :  { %v9948_v48 = vpop.f32.mrb[75].mxu1  ;;  %10248 = vmatprep.subr.bf16.mxu1 %v11470_v17  ;;  %v7697_v20 = vld [vmem:[%s15282_s7 + $0x50] sm:$0xff]  ;;  %v7698_v7 = vld [vmem:[%s15282_s7 + $0x58] sm:$0xff] }
 0x4b6   :  { %v5170_v0 = vadd.f32 %v9946_v52, %v9924_v43  ;;  %v7700_v48 = vld [vmem:[%s15282_s7 + $0x68] sm:$0xff] }
 0x4b7   :  { %10227 = vmatpush3.bf16.msra.mxu0 %v11471_v4 }
 0x4b8   :  { %v5175_v45 = vadd.f32 %v5170_v0, %v15091_v11  ;;  %10249 = vmatpush3.bf16.msra.mxu1 %v11472_v22  ;;  %10228 = vmatprep.subr.bf16.mxu0 %v11473_v61  ;;  %v7699_v22 = vld [vmem:[%s15282_s7 + $0x60] sm:$0xff]  ;;  %v10854_v61 = vpack.c.bf16 %v7698_v7, %v7697_v20 }
 0x4b9   :  { %10250 = vmatprep.subr.bf16.mxu1 %v11474_v1  ;;  %v15303_v1 = vld [vmem:[#allocation9_spill] sm:$0xff]  ;;  %v10857_v0 = vpack.c.bf16 %v7700_v48, %v7699_v22 }
 0x4bb   :  { %10229 = vmatpush3.bf16.msra.mxu0 %v11475_v26  ;;  %v7701_v26 = vld [vmem:[%s15282_s7 + $0x70] sm:$0xff] }
 0x4bc   :  { %10251 = vmatpush3.bf16.msra.mxu1 %v11476_v30  ;;  %10838 = vmatprep.subr.bf16.mxu0 %v11537_v49 }
 0x4be   :  { %7630 = vmatmul.mubr.bf16.vlgmr.msra.gmra.mrb[84].mxu0 %v7397_v29 }
 0x4bf   :  { %7670 = vmatmul.mubr.bf16.vlgmr.msra.gmra.mrb[100].mxu1 %v7399_v18  ;;  %10840 = vmatpush3.bf16.msra.mxu0 %v10839_v15 }
 0x4c0   :  { %10841 = vmatprep.subr.bf16.mxu0 %v11537_v49  ;;  %10307 = vmatprep.mubr.msk.f32.mxu0 %vm11538_vm5, %v15303_v1 }
 0x4c3   :  { %10843 = vmatpush3.bf16.msra.mxu0 %v10842_v63 }
 0x4c4   :  { %10844 = vmatprep.subr.bf16.mxu0 %v11537_v49 }
 0x4c7   :  { %10846 = vmatpush3.bf16.msra.mxu0 %v10845_v59 }
 0x4c8   :  { %10847 = vmatprep.subr.bf16.mxu0 %v11537_v49 }
 0x4cb   :  { %10849 = vmatpush3.bf16.msra.mxu0 %v10848_v50 }
 0x4cc   :  { %10850 = vmatprep.subr.bf16.mxu0 %v11537_v49 }
 0x4cf   :  { %10852 = vmatpush3.bf16.msra.mxu0 %v10851_v23 }
 0x4d0   :  { %10853 = vmatprep.subr.bf16.mxu0 %v11537_v49 }
 0x4d1   :  { %v9966_v36 = vpop.f32.mrb[60].mxu0 }
 0x4d2   :  { %v9988_v32 = vpop.f32.mrb[76].mxu1  ;;  %v9967_v41 = vpop.f32.mrb[61].mxu0 }
 0x4d3   :  { %v9968_v37 = vadd.f32 %v9967_v41, %v9966_v36  ;;  %v9989_v53 = vpop.f32.mrb[77].mxu1  ;;  %v9969_v16 = vpop.f32.mrb[62].mxu0  ;;  %10855 = vmatpush3.bf16.msra.mxu0 %v10854_v61 }
 0x4d4   :  { %v9990_v10 = vadd.f32 %v9989_v53, %v9988_v32  ;;  %v9991_v56 = vpop.f32.mrb[78].mxu1  ;;  %v9970_v2 = vpop.f32.mrb[63].mxu0  ;;  %10856 = vmatprep.subr.bf16.mxu0 %v11537_v49 }
 0x4d5   :  { %v9992_v13 = vpop.f32.mrb[79].mxu1 }
 0x4d6   :  { %v5524_v11 = vadd.f32 %v9990_v10, %v9968_v37 }
 0x4d7   :  { %10858 = vmatpush3.bf16.msra.mxu0 %v10857_v0 }
 0x4d8   :  { %v5529_v14 = vadd.f32 %v5524_v11, %v5175_v45  ;;  %v7702_v45 = vld [vmem:[%s15282_s7 + $0x78] sm:$0xff]  ;;  %10859 = vmatprep.subr.bf16.mxu0 %v11537_v49 }
 0x4d9   :  { %v10860_v30 = vpack.c.bf16 %v7702_v45, %v7701_v26 }
 0x4db   :  { %10861 = vmatpush3.bf16.msra.mxu0 %v10860_v30 }
 0x4f1   :  { %v10010_v42 = vpop.f32.mrb[64].mxu0 }
 0x4f2   :  { %v10032_v39 = vpop.f32.mrb[80].mxu1  ;;  %v10011_v54 = vpop.f32.mrb[65].mxu0 }
 0x4f3   :  { %v10012_v40 = vadd.f32 %v10011_v54, %v10010_v42  ;;  %v10033_v57 = vpop.f32.mrb[81].mxu1  ;;  %v10013_v9 = vpop.f32.mrb[66].mxu0 }
 0x4f4   :  { %v10034_v5 = vadd.f32 %v10033_v57, %v10032_v39  ;;  %v10035_v21 = vpop.f32.mrb[82].mxu1  ;;  %v10014_v55 = vpop.f32.mrb[67].mxu0 }
 0x4f5   :  { %v10036_v60 = vpop.f32.mrb[83].mxu1 }
 0x4f6   :  { %v5882_v28 = vadd.f32 %v10034_v5, %v10012_v40 }
 0x4f8   :  { %v5887_v27 = vadd.f32 %v5882_v28, %v5529_v14 }
 0x511   :  { %v10054_v58 = vpop.f32.mrb[68].mxu0 }
 0x512   :  { %v10076_v12 = vpop.f32.mrb[84].mxu1  ;;  %v10055_v25 = vpop.f32.mrb[69].mxu0 }
 0x513   :  { %v10056_v33 = vadd.f32 %v10055_v25, %v10054_v58  ;;  %v10077_v17 = vpop.f32.mrb[85].mxu1  ;;  %v10057_v3 = vpop.f32.mrb[70].mxu0 }
 0x514   :  { %v10078_v51 = vadd.f32 %v10077_v17, %v10076_v12  ;;  %v10079_v43 = vpop.f32.mrb[86].mxu1  ;;  %v10058_v44 = vpop.f32.mrb[71].mxu0  ;;  %v9552_v3 = vld [vmem:[%s15281_s6] ss:$0 sm:$0xff]  ;;  %s11539_s6 = smov [#allocation6]  }
 0x515   :  { %v10080_v24 = vpop.f32.mrb[87].mxu1  ;;  %s7799_s12 = sshll.u32 %s11539_s6, 4  ;;  %s7800_s12 = int_to_ptr.vmem [resolvable:$true] %s7799_s12 }
 0x516   :  { %v6240_v4 = vadd.f32 %v10078_v51, %v10056_v33  ;;  %v9553_v24 = vld [vmem:[%s15283_s8] ss:$0 sm:$0xff]  ;;  %s11507_s8 = scalar_lea.vmem %s7800_s12, 32  ;;  %p11512_p9 = scmp.lt.s32.totalorder %s7800_s12, %s7800_s12 }
 0x517   :  { %p11508_p8 = scmp.ne.s32.totalorder %s7800_s12, %s11507_s8  ;;  %p11513_p10 = scmp.lt.s32.totalorder %s11507_s8, %s11507_s8 }
 0x518   :  { %v6245_v52 = vadd.f32 %v6240_v4, %v5887_v27 }
 0x519   :  { %p11514_p11 = por %p11513_p10, %p11512_p9 }
 0x51b   :  { %p11515_p12 = pnand %p11514_p11, %p11508_p8 }
 0x531   :  { %v10098_v29 = vpop.f32.mrb[72].mxu0 }
 0x532   :  { %v10120_v18 = vpop.f32.mrb[88].mxu1  ;;  %v10099_v36 = vpop.f32.mrb[73].mxu0 }
 0x533   :  { %v10100_v32 = vadd.f32 %v10099_v36, %v10098_v29  ;;  %v10121_v41 = vpop.f32.mrb[89].mxu1  ;;  %v10101_v37 = vpop.f32.mrb[74].mxu0 }
 0x534   :  { %v10122_v53 = vadd.f32 %v10121_v41, %v10120_v18  ;;  %v10123_v16 = vpop.f32.mrb[90].mxu1  ;;  %v10102_v10 = vpop.f32.mrb[75].mxu0 }
 0x535   :  { %v10124_v56 = vpop.f32.mrb[91].mxu1 }
 0x536   :  { %v6598_v2 = vadd.f32 %v10122_v53, %v10100_v32 }
 0x538   :  { %v6603_v13 = vadd.f32 %v6598_v2, %v6245_v52 }
 0x551   :  { %v10142_v11 = vpop.f32.mrb[76].mxu0 }
 0x552   :  { %v10164_v14 = vpop.f32.mrb[92].mxu1  ;;  %v10143_v42 = vpop.f32.mrb[77].mxu0 }
 0x553   :  { %v10144_v39 = vadd.f32 %v10143_v42, %v10142_v11  ;;  %v10165_v54 = vpop.f32.mrb[93].mxu1  ;;  %v10145_v40 = vpop.f32.mrb[78].mxu0 }
 0x554   :  { %v10166_v57 = vadd.f32 %v10165_v54, %v10164_v14  ;;  %v10167_v9 = vpop.f32.mrb[94].mxu1  ;;  %v10146_v5 = vpop.f32.mrb[79].mxu0 }
 0x555   :  { %v10168_v21 = vpop.f32.mrb[95].mxu1 }
 0x556   :  { %v6956_v55 = vadd.f32 %v10166_v57, %v10144_v39 }
 0x558   :  { %v6961_v60 = vadd.f32 %v6956_v55, %v6603_v13 }
 0x571   :  { %v10186_v28 = vpop.f32.mrb[80].mxu0 }
 0x572   :  { %v10208_v27 = vpop.f32.mrb[96].mxu1  ;;  %v10187_v46 = vpop.f32.mrb[81].mxu0 }
 0x573   :  { %v10188_v19 = vadd.f32 %v10187_v46, %v10186_v28  ;;  %v10209_v34 = vpop.f32.mrb[97].mxu1  ;;  %v10189_v49 = vpop.f32.mrb[82].mxu0 }
 0x574   :  { %v10210_v15 = vadd.f32 %v10209_v34, %v10208_v27  ;;  %v10211_v62 = vpop.f32.mrb[98].mxu1  ;;  %v10190_v63 = vpop.f32.mrb[83].mxu0 }
 0x575   :  { %v10212_v6 = vpop.f32.mrb[99].mxu1 }
 0x576   :  { %v7314_v35 = vadd.f32 %v10210_v15, %v10188_v19 }
 0x578   :  { %v7319_v59 = vadd.f32 %v7314_v35, %v6961_v60 }
 0x591   :  { %v10230_v38 = vpop.f32.mrb[84].mxu0 }
 0x592   :  { %v10252_v31 = vpop.f32.mrb[100].mxu1  ;;  %v10231_v50 = vpop.f32.mrb[85].mxu0 }
 0x593   :  { %v10232_v8 = vadd.f32 %v10231_v50, %v10230_v38  ;;  %v10253_v47 = vpop.f32.mrb[101].mxu1  ;;  %v10233_v23 = vpop.f32.mrb[86].mxu0 }
 0x594   :  { %v10254_v58 = vadd.f32 %v10253_v47, %v10252_v31  ;;  %v10255_v12 = vpop.f32.mrb[102].mxu1  ;;  %v10234_v25 = vpop.f32.mrb[87].mxu0 }
 0x595   :  { %v10256_v33 = vpop.f32.mrb[103].mxu1 }
 0x596   :  { %v7672_v17 = vadd.f32 %v10254_v58, %v10232_v8 }
 0x598   :  { %v7677_v51 = vadd.f32 %v7672_v17, %v7319_v59 }
 0x59a   :  { %v7685_v43 = vadd.f32 %v9552_v3, %v7677_v51 }
 0x59c   :  { %v7686_v44 = vmax.f32 %v7685_v43, 0.0 }
 0x59e   :  { %10308 = vmatmul.mubr.f32.vlgmr.msra.gmra.mrb[88].mxu0 %v7686_v44 }
 0x671   :  { %v7776_v4 = vpop.f32.mrb[88].mxu0 }
 0x672   :  { %v7777_v52 = vadd.f32 %v9553_v24, %v7776_v4  ;;  %v10309_v20 = vpop.f32.mrb[89].mxu0 }
 0x674   :  { %v7781_v7 = vsel %vm7780_vm6, %v7777_v52, -inf }
 0x675   :  { %7782 = vmax.xlane.f32.xlu0 %v7781_v7 }
 0x702   :  { %v7783_v22 = vpop.xlane.xlu0 %7782 }
 0x703   :  { %v7784_v61 = vsub.f32 %v7777_v52, %v7783_v22 }
 0x705   :  { %v7785_v48 = vmul.f32 1.442695, %v7784_v61 }
 0x707   :  { %11477 = vpow2.f32 %v7785_v48 }
 0x711   :  { %v11478_v1 = vpop.eup %11477 }
 0x712   :  { %v7787_v0 = vsel %vm7780_vm6, %v11478_v1, 0.0 }
 0x713   :  { %7788 = vadd.xlane.f32.xlu0 %v7787_v0 }
 0x7a0   :  { %v7789_v26 = vpop.xlane.xlu0 %7788 }
 0x7a1   :  { %11479 = vrcp.f32 %v7789_v26 }
 0x7ab   :  { %v11480_v45 = vpop.eup %11479 }
 0x7ac   :  { %v7791_v30 = vmul.f32 %v11480_v45, %v11478_v1 }
 0x7ae   :  { %7792 = vst.msk [vmem:[#allocation6] sm:$0x3] %vm7780_vm6, %v7791_v30 }
 0x7af   :  { %11518 = shalt.err (!%p11515_p12)
}
 0x7b0   :  { %s11519_s15 = scalar_lea.hbm %s15284_s9, 32 }
 0x7b1   :  { %p11520_p13 = scmp.ne.s32.totalorder %s15284_s9, %s11519_s15  ;;  %p11523_p0 = scmp.lt.u32.totalorder %s11519_s15, %s15284_s9 }
 0x7b3   :  { %p11525_p1 = pnand %p11523_p0, %p11520_p13 }
 0x7b5   :  { %11528 = shalt.err (!%p11525_p1)
}
 0x7b6   :  { %7802 = dma.vmem_to_hbm [thread:$0]  %s7800_s12, 32, %s15284_s9, [#allocation5]  }
 0x7b7   :  { %11531 = dma.done.wait [#allocation5], 32  }
 0x7b8   :  { %11532 = vsyncadd [#allocation5], 4294967264 }
 0x7b9   :  { %7806 = vsyncpa [#allocation4], 1 }
 0x7ba   :  { %7807 = vsyncpa [#allocation5], 1 }

</bundles_post_ra>
